<compile_context>
chip_gen: v7x
topology: tpu7x:2x2x1
jax: 0.10.0
libtpu: 0.0.40
codegen_flags: <defaults>
</compile_context>

<pallas_src>
import jax
import jax.numpy as jnp
from jax import lax
from jax.experimental import pallas as pl
from jax.experimental.pallas import tpu as pltpu  # noqa: F401  (imported per convention)

N, C_IN, H, W = 1, 144, 7, 7
HW = H * W
C_OUT = 864
EPS = 1e-5


def add_conv_bn_kernel(x1_ref, x2_ref, w_ref, gamma_ref, beta_ref, out_ref):
    # x1_ref/x2_ref: (Cin, HW) f32    w_ref: (Cout, Cin) bf16
    # gamma_ref/beta_ref: (Cout, 1) f32    out_ref: (Cout, HW) f32
    x = (x1_ref[...] + x2_ref[...]).astype(jnp.bfloat16)             # elementwise add
    # 1x1 conv == matmul on the MXU (bf16 inputs, f32 accumulation).
    y = jnp.dot(w_ref[...], x, preferred_element_type=jnp.float32)   # (Cout, HW) f32
    # BatchNorm (training mode): biased per-channel mean/var over the M = N*H*W
    # positions (PyTorch forward normalizes with 1/M).  Stats kept in f32.
    inv_m = 1.0 / HW
    mean = jnp.sum(y, axis=1, keepdims=True) * inv_m                 # (Cout, 1)
    centered = y - mean
    var = jnp.sum(centered * centered, axis=1, keepdims=True) * inv_m
    # Fold BN into a single per-channel scale/shift: out = y * s + b.
    s = gamma_ref[...] * lax.rsqrt(var + EPS)                        # (Cout, 1)
    b = beta_ref[...] - mean * s                                     # (Cout, 1)
    out_ref[...] = y * s + b


def add_conv_bn(x128, x120, conv_w, bn_gamma, bn_beta):
    """x128, x120: NCHW (1, 144, 7, 7); conv_w: (864, 144, 1, 1)."""
    n, c, h, w = x128.shape
    assert n == 1, "free NCHW->(C, H*W) reshape relies on N == 1"
    hw = h * w

    x1 = x128.reshape(c, hw).astype(jnp.float32)              # free reshape (no copy)
    x2 = x120.reshape(c, hw).astype(jnp.float32)               # free reshape (no copy)
    wmat = conv_w.reshape(C_OUT, C_IN).astype(jnp.bfloat16)    # free reshape; bf16 halves weight DMA
    gamma = bn_gamma.reshape(C_OUT, 1).astype(jnp.float32)
    beta = bn_beta.reshape(C_OUT, 1).astype(jnp.float32)

    out = pl.pallas_call(
        add_conv_bn_kernel,
        out_shape=jax.ShapeDtypeStruct((C_OUT, hw), jnp.float32),
        in_specs=[
            pl.BlockSpec((c, hw), lambda: (0, 0)),
            pl.BlockSpec((c, hw), lambda: (0, 0)),
            pl.BlockSpec((C_OUT, C_IN), lambda: (0, 0)),
            pl.BlockSpec((C_OUT, 1), lambda: (0, 0)),
            pl.BlockSpec((C_OUT, 1), lambda: (0, 0)),
        ],
        out_specs=pl.BlockSpec((C_OUT, hw), lambda: (0, 0)),
    )(x1, x2, wmat, gamma, beta)

    # (Cout, HW) -> NCHW is a free reshape since N == 1.
    return out.reshape(n, C_OUT, h, w)


def reference(x128, x120, conv_w, bn_gamma, bn_beta):
    x = (x128 + x120).astype(jnp.float32)
    wmat = conv_w.reshape(C_OUT, C_IN).astype(jnp.float32)
    y = jnp.einsum("nchw,oc->nohw", x, wmat)                  # 1x1 conv
    mean = jnp.mean(y, axis=(0, 2, 3), keepdims=True)
    var = jnp.mean((y - mean) ** 2, axis=(0, 2, 3), keepdims=True)
    y_hat = (y - mean) / jnp.sqrt(var + EPS)
    return y_hat * bn_gamma.reshape(1, C_OUT, 1, 1) + bn_beta.reshape(1, C_OUT, 1, 1)


if __name__ == "__main__":
    key = jax.random.PRNGKey(0)
    k1, k2, k3 = jax.random.split(key, 3)

    # deterministic synthetic inputs / parameters
    x128 = jax.random.normal(k1, (N, C_IN, H, W), dtype=jnp.float32)
    x120 = jax.random.normal(k2, (N, C_IN, H, W), dtype=jnp.float32)
    conv_w = 0.1 * jax.random.normal(k3, (C_OUT, C_IN, 1, 1), dtype=jnp.float32)
    bn_gamma = jnp.ones((C_OUT,), dtype=jnp.float32)   # PyTorch BatchNorm2d default init
    bn_beta = jnp.zeros((C_OUT,), dtype=jnp.float32)

    out = add_conv_bn(x128, x120, conv_w, bn_gamma, bn_beta)
    out = jax.block_until_ready(out)

    ref = reference(x128, x120, conv_w, bn_gamma, bn_beta)
    assert out.shape == (N, C_OUT, H, W)
    # bf16 matmul (f32 accumulate) vs f32 reference -> loosened tolerance per review.
    assert jnp.allclose(out, ref, atol=5e-2, rtol=5e-2), float(jnp.max(jnp.abs(out - ref)))

    print("KERNEL_OK")
</pallas_src>

<mosaic_0001>
module attributes {stable_mosaic.version = 11 : i64} {
  func.func @add_conv_bn_kernel(%arg0: memref<144x49xf32, #tpu.memory_space<vmem>>, %arg1: memref<144x49xf32, #tpu.memory_space<vmem>>, %arg2: memref<864x144xbf16, #tpu.memory_space<vmem>>, %arg3: memref<864x1xf32, #tpu.memory_space<vmem>>, %arg4: memref<864x1xf32, #tpu.memory_space<vmem>>, %arg5: memref<864x49xf32, #tpu.memory_space<vmem>>) attributes {dimension_semantics = [], scalar_prefetch = 0 : i64, scratch_operands = 0 : i64, tpu.core_type = #tpu.core_type<tc>} {
    %c0 = arith.constant 0 : index
    %c0_0 = arith.constant 0 : index
    %0 = vector.load %arg0[%c0, %c0_0] : memref<144x49xf32, #tpu.memory_space<vmem>>, vector<144x49xf32>
    %c0_1 = arith.constant 0 : index
    %c0_2 = arith.constant 0 : index
    %1 = vector.load %arg1[%c0_1, %c0_2] : memref<144x49xf32, #tpu.memory_space<vmem>>, vector<144x49xf32>
    %2 = arith.addf %0, %1 : vector<144x49xf32>
    %3 = arith.truncf %2 : vector<144x49xf32> to vector<144x49xbf16>
    %c0_3 = arith.constant 0 : index
    %c0_4 = arith.constant 0 : index
    %4 = vector.load %arg2[%c0_3, %c0_4] : memref<864x144xbf16, #tpu.memory_space<vmem>>, vector<864x144xbf16>
    %cst = arith.constant dense<0.000000e+00> : vector<864x49xf32>
    %5 = tpu.matmul %4, %3, %cst {dimension_numbers = #tpu.dot_dimension_numbers<[1], [0], [0], [1], [0, 0, 1, 1], [], []>} : vector<864x144xbf16>, vector<144x49xbf16>, vector<864x49xf32> -> vector<864x49xf32>
    %cst_5 = arith.constant dense<0.000000e+00> : vector<864xf32>
    %6 = vector.multi_reduction <add>, %5, %cst_5 [1] : vector<864x49xf32> to vector<864xf32>
    %7 = vector.shape_cast %6 : vector<864xf32> to vector<864x1xf32>
    %cst_6 = arith.constant 0.0204081628 : f32
    %8 = vector.broadcast %cst_6 : f32 to vector<864x1xf32>
    %9 = arith.mulf %7, %8 : vector<864x1xf32>
    %10 = vector.broadcast %9 : vector<864x1xf32> to vector<864x49xf32>
    %11 = arith.subf %5, %10 : vector<864x49xf32>
    %12 = arith.mulf %11, %11 : vector<864x49xf32>
    %cst_7 = arith.constant dense<0.000000e+00> : vector<864xf32>
    %13 = vector.multi_reduction <add>, %12, %cst_7 [1] : vector<864x49xf32> to vector<864xf32>
    %14 = vector.shape_cast %13 : vector<864xf32> to vector<864x1xf32>
    %cst_8 = arith.constant 0.0204081628 : f32
    %15 = vector.broadcast %cst_8 : f32 to vector<864x1xf32>
    %16 = arith.mulf %14, %15 : vector<864x1xf32>
    %c0_9 = arith.constant 0 : index
    %c0_10 = arith.constant 0 : index
    %17 = vector.load %arg3[%c0_9, %c0_10] : memref<864x1xf32, #tpu.memory_space<vmem>>, vector<864x1xf32>
    %cst_11 = arith.constant 9.99999974E-6 : f32
    %18 = vector.broadcast %cst_11 : f32 to vector<864x1xf32>
    %19 = arith.addf %16, %18 : vector<864x1xf32>
    %20 = math.rsqrt %19 : vector<864x1xf32>
    %21 = arith.mulf %17, %20 : vector<864x1xf32>
    %c0_12 = arith.constant 0 : index
    %c0_13 = arith.constant 0 : index
    %22 = vector.load %arg4[%c0_12, %c0_13] : memref<864x1xf32, #tpu.memory_space<vmem>>, vector<864x1xf32>
    %23 = arith.mulf %9, %21 : vector<864x1xf32>
    %24 = arith.subf %22, %23 : vector<864x1xf32>
    %25 = vector.broadcast %21 : vector<864x1xf32> to vector<864x49xf32>
    %26 = arith.mulf %5, %25 : vector<864x49xf32>
    %27 = vector.broadcast %24 : vector<864x1xf32> to vector<864x49xf32>
    %28 = arith.addf %26, %27 : vector<864x49xf32>
    %c0_14 = arith.constant 0 : index
    %c0_15 = arith.constant 0 : index
    %29 = vector.load %arg5[%c0_14, %c0_15] : memref<864x49xf32, #tpu.memory_space<vmem>>, vector<864x49xf32>
    tpu.vector_store %arg5[%c0_14, %c0_15], %28 {strides = array<i32>} : memref<864x49xf32, #tpu.memory_space<vmem>>, vector<864x49xf32>,
    return
  }
}

</mosaic_0001>

<bundles_post_ra>
// kernel: tpu_custom_call.1
= control target key start
LH: loop header
LB: loop body
LE: loop exit
PB: predicated region body
PF: predicated region fallthrough
CT: control target
= control target key end

     0   :  { %v5112_v0 = vmov 0   ;;  %vm678_vm0 = vcmask 130048   ;;  %vm1306_vm1 = vcmask 400384   ;;  %s8927_s0 = inlined_call_operand.vmem [shape: f32[144,49], index: 0, kind: input, shape index: {}]   ;;  %s8928_s1 = inlined_call_operand.vmem [shape: f32[144,49], index: 1, kind: input, shape index: {}]   ;;  %s8929_s2 = inlined_call_operand.vmem [shape: bf16[864,144], index: 2, kind: input, shape index: {}]   ;;  %s8930_s3 = inlined_call_operand.vmem [shape: f32[864,1], index: 3, kind: input, shape index: {}]   ;;  %s8931_s4 = inlined_call_operand.vmem [shape: f32[864,1], index: 4, kind: input, shape index: {}]   ;;  %s8932_s5 = inlined_call_operand.vmem [shape: f32[864,49], index: 5, kind: output, shape index: {}]  }
   0x1   :  { %841 = vmatprep.subr.bf16.mxu0 %v5112_v0  ;;  %4713 = vmatprep.subr.bf16.mxu1 %v5112_v0  ;;  %v21_v1 = vld [vmem:[%s8927_s0] sm:$0xff]  ;;  %v22_v2 = vld [vmem:[%s8927_s0 + $0x8] sm:$0xff]  ;;  %v23_v6 = vld [vmem:[%s8927_s0 + $0x10] sm:$0xff] }
   0x2   :  { %v39_v3 = vld [vmem:[%s8928_s1] sm:$0xff]  ;;  %v40_v4 = vld [vmem:[%s8928_s1 + $0x8] sm:$0xff]  ;;  %v24_v7 = vld [vmem:[%s8927_s0 + $0x18] sm:$0xff]  ;;  %4733 = vset.pattern.permute.xlu1 %v5112_v0  ;;  %4732 = vset.pattern.permute.xlu0 %v5112_v0 }
   0x3   :  { %v57_v5 = vadd.f32 %v39_v3, %v21_v1  ;;  %v58_v8 = vadd.f32 %v40_v4, %v22_v2  ;;  %v41_v9 = vld [vmem:[%s8928_s1 + $0x10] sm:$0xff]  ;;  %v42_v10 = vld [vmem:[%s8928_s1 + $0x18] sm:$0xff]  ;;  %v25_v11 = vld [vmem:[%s8927_s0 + $0x20] sm:$0xff] }
   0x4   :  { %v59_v12 = vadd.f32 %v41_v9, %v23_v6  ;;  %v60_v13 = vadd.f32 %v42_v10, %v24_v7  ;;  %v26_v14 = vld [vmem:[%s8927_s0 + $0x28] sm:$0xff]  ;;  %v43_v15 = vld [vmem:[%s8928_s1 + $0x20] sm:$0xff]  ;;  %v27_v21 = vld [vmem:[%s8927_s0 + $0x30] sm:$0xff] }
   0x5   :  { %v44_v16 = vld [vmem:[%s8928_s1 + $0x28] sm:$0xff]  ;;  %v75_v17 = vpack.c.bf16 %v58_v8, %v57_v5  ;;  %v61_v19 = vadd.f32 %v43_v15, %v25_v11  ;;  %v28_v22 = vld [vmem:[%s8927_s0 + $0x38] sm:$0xff]  ;;  %v45_v23 = vld [vmem:[%s8928_s1 + $0x30] sm:$0xff] }
   0x6   :  { %v76_v18 = vpack.c.bf16 %v60_v13, %v59_v12  ;;  %v62_v20 = vadd.f32 %v44_v16, %v26_v14  ;;  %v46_v24 = vld [vmem:[%s8928_s1 + $0x38] sm:$0xff]  ;;  %v63_v26 = vadd.f32 %v45_v23, %v27_v21  ;;  %v29_v28 = vld [vmem:[%s8927_s0 + $0x40] sm:$0xff]  ;;  %v30_v29 = vld [vmem:[%s8927_s0 + $0x48] sm:$0xff] }
   0x7   :  { %842 = vmatpush1.bf16.msra.mxu0 %v75_v17  ;;  %4722 = vmatpush1.bf16.msra.mxu1 %v75_v17  ;;  %v64_v27 = vadd.f32 %v46_v24, %v28_v22  ;;  %v47_v30 = vld [vmem:[%s8928_s1 + $0x40] sm:$0xff]  ;;  %v48_v31 = vld [vmem:[%s8928_s1 + $0x48] sm:$0xff]  ;;  %v31_v32 = vld [vmem:[%s8927_s0 + $0x50] sm:$0xff] }
   0x8   :  { %843 = vmatprep.subr.bf16.mxu0 %v5112_v0  ;;  %4714 = vmatprep.subr.bf16.mxu1 %v5112_v0  ;;  %v77_v25 = vpack.c.bf16 %v62_v20, %v61_v19  ;;  %v4736_v33 = vld [vmem:[%s8929_s2 + $0x4] ss:$8 sps:$4 sm:$0xff]   ;;  %v65_v35 = vadd.f32 %v47_v30, %v29_v28  ;;  %v66_v36 = vadd.f32 %v48_v31, %v30_v29  ;;  %v32_v37 = vld [vmem:[%s8927_s0 + $0x58] sm:$0xff]  ;;  %v49_v39 = vld [vmem:[%s8928_s1 + $0x50] sm:$0xff] }
   0x9   :  { %v78_v34 = vpack.c.bf16 %v64_v27, %v63_v26  ;;  %v4739_v38 = vld [vmem:[%s8929_s2 + $0x1b4] ss:$8 sps:$4 sm:$0xff]   ;;  %4659 = vmatprep.mubr.msk.bf16.mxu0 %vm678_vm0, %v4736_v33  ;;  %v67_v42 = vadd.f32 %v49_v39, %v31_v32  ;;  %v33_v44 = vld [vmem:[%s8927_s0 + $0x60] sm:$0xff]  ;;  %v34_v45 = vld [vmem:[%s8927_s0 + $0x68] sm:$0xff] }
   0xa   :  { %v50_v40 = vld [vmem:[%s8928_s1 + $0x58] sm:$0xff]  ;;  %4686 = vmatprep.mubr.msk.bf16.mxu1 %vm678_vm0, %v4739_v38  ;;  %v79_v41 = vpack.c.bf16 %v66_v36, %v65_v35  ;;  %v51_v46 = vld [vmem:[%s8928_s1 + $0x60] sm:$0xff]  ;;  %v52_v47 = vld [vmem:[%s8928_s1 + $0x68] sm:$0xff] }
   0xb   :  { %844 = vmatpush1.bf16.msra.mxu0 %v76_v18  ;;  %4723 = vmatpush1.bf16.msra.mxu1 %v76_v18  ;;  %v68_v43 = vadd.f32 %v50_v40, %v32_v37  ;;  %v69_v49 = vadd.f32 %v51_v46, %v33_v44  ;;  %v70_v50 = vadd.f32 %v52_v47, %v34_v45  ;;  %v35_v51 = vld [vmem:[%s8927_s0 + $0x70] sm:$0xff]  ;;  %v36_v52 = vld [vmem:[%s8927_s0 + $0x78] sm:$0xff]  ;;  %v37_v58 = vld [vmem:[%s8927_s0 + $0x80] sm:$0xff] }
   0xc   :  { %845 = vmatprep.subr.bf16.mxu0 %v5112_v0  ;;  %4715 = vmatprep.subr.bf16.mxu1 %v5112_v0  ;;  %v53_v53 = vld [vmem:[%s8928_s1 + $0x70] sm:$0xff]  ;;  %v54_v54 = vld [vmem:[%s8928_s1 + $0x78] sm:$0xff]  ;;  %v38_v59 = vld [vmem:[%s8927_s0 + $0x88] sm:$0xff] }
   0xd   :  { %v80_v48 = vpack.c.bf16 %v68_v43, %v67_v42  ;;  %v81_v55 = vpack.c.bf16 %v70_v50, %v69_v49  ;;  %v71_v56 = vadd.f32 %v53_v53, %v35_v51  ;;  %v72_v57 = vadd.f32 %v54_v54, %v36_v52  ;;  %v55_v60 = vld [vmem:[%s8928_s1 + $0x80] sm:$0xff]  ;;  %v56_v61 = vld [vmem:[%s8928_s1 + $0x88] sm:$0xff]  ;;  %v4737_v4 = vld [vmem:[%s8929_s2 + $0x1b0] ss:$8 sps:$4 sm:$0xff]  }
   0xe   :  { %v73_v63 = vadd.f32 %v55_v60, %v37_v58  ;;  %v74_v1 = vadd.f32 %v56_v61, %v38_v59  ;;  %v4734_v3 = vld [vmem:[%s8929_s2] ss:$8 sps:$4 sm:$0xff]   ;;  %v4740_v5 = vld [vmem:[%s8929_s2 + $0x14] ss:$8 sps:$4 sm:$0xff]   ;;  %v4743_v6 = vld [vmem:[%s8929_s2 + $0x1c4] ss:$8 sps:$4 sm:$0xff]  }
   0xf   :  { %846 = vmatpush1.bf16.msra.mxu0 %v77_v25  ;;  %4724 = vmatpush1.bf16.msra.mxu1 %v77_v25  ;;  %v82_v62 = vpack.c.bf16 %v72_v57, %v71_v56  ;;  %v4745_v7 = vld [vmem:[%s8929_s2 + $0x1c0] ss:$8 sps:$4 sm:$0xff]   ;;  %v4746_v8 = vld [vmem:[%s8929_s2 + $0x24] ss:$8 sps:$4 sm:$0xff]   ;;  %v4749_v9 = vld [vmem:[%s8929_s2 + $0x1d4] ss:$8 sps:$4 sm:$0xff]  }
  0x10   :  { %847 = vmatprep.subr.bf16.mxu0 %v5112_v0  ;;  %4716 = vmatprep.subr.bf16.mxu1 %v5112_v0  ;;  %v83_v2 = vpack.c.bf16 %v74_v1, %v73_v63  ;;  %v4748_v10 = vld [vmem:[%s8929_s2 + $0x20] ss:$8 sps:$4 sm:$0xff]   ;;  %v4751_v11 = vld [vmem:[%s8929_s2 + $0x1d0] ss:$8 sps:$4 sm:$0xff]   ;;  %v4752_v12 = vld [vmem:[%s8929_s2 + $0x34] ss:$8 sps:$4 sm:$0xff]  }
  0x11   :  { %v4755_v13 = vld [vmem:[%s8929_s2 + $0x1e4] ss:$8 sps:$4 sm:$0xff]   ;;  %v4754_v14 = vld [vmem:[%s8929_s2 + $0x30] ss:$8 sps:$4 sm:$0xff]   ;;  %v4757_v15 = vld [vmem:[%s8929_s2 + $0x1e0] ss:$8 sps:$4 sm:$0xff]  }
  0x12   :  { %v4758_v16 = vld [vmem:[%s8929_s2 + $0x44] ss:$8 sps:$4 sm:$0xff]   ;;  %v4761_v17 = vld [vmem:[%s8929_s2 + $0x1f4] ss:$8 sps:$4 sm:$0xff]   ;;  %v4760_v18 = vld [vmem:[%s8929_s2 + $0x40] ss:$8 sps:$4 sm:$0xff]  }
  0x13   :  { %848 = vmatpush1.bf16.msra.mxu0 %v78_v34  ;;  %4725 = vmatpush1.bf16.msra.mxu1 %v78_v34  ;;  %v4763_v19 = vld [vmem:[%s8929_s2 + $0x1f0] ss:$8 sps:$4 sm:$0xff]   ;;  %v4764_v20 = vld [vmem:[%s8929_s2 + $0x54] ss:$8 sps:$4 sm:$0xff]   ;;  %v4767_v21 = vld [vmem:[%s8929_s2 + $0x204] ss:$8 sps:$4 sm:$0xff]  }
  0x14   :  { %849 = vmatprep.subr.bf16.mxu0 %v5112_v0  ;;  %4717 = vmatprep.subr.bf16.mxu1 %v5112_v0  ;;  %v4766_v22 = vld [vmem:[%s8929_s2 + $0x50] ss:$8 sps:$4 sm:$0xff]   ;;  %v4769_v23 = vld [vmem:[%s8929_s2 + $0x200] ss:$8 sps:$4 sm:$0xff]   ;;  %v4770_v24 = vld [vmem:[%s8929_s2 + $0x64] ss:$8 sps:$4 sm:$0xff]  }
  0x15   :  { %v4773_v25 = vld [vmem:[%s8929_s2 + $0x214] ss:$8 sps:$4 sm:$0xff]   ;;  %v4772_v26 = vld [vmem:[%s8929_s2 + $0x60] ss:$8 sps:$4 sm:$0xff]   ;;  %v4775_v27 = vld [vmem:[%s8929_s2 + $0x210] ss:$8 sps:$4 sm:$0xff]  }
  0x16   :  { %v4776_v28 = vld [vmem:[%s8929_s2 + $0x74] ss:$8 sps:$4 sm:$0xff]   ;;  %v4779_v29 = vld [vmem:[%s8929_s2 + $0x224] ss:$8 sps:$4 sm:$0xff]   ;;  %v4778_v30 = vld [vmem:[%s8929_s2 + $0x70] ss:$8 sps:$4 sm:$0xff]  }
  0x17   :  { %850 = vmatpush1.bf16.msra.mxu0 %v79_v41  ;;  %4726 = vmatpush1.bf16.msra.mxu1 %v79_v41  ;;  %v4781_v31 = vld [vmem:[%s8929_s2 + $0x220] ss:$8 sps:$4 sm:$0xff]   ;;  %v4782_v32 = vld [vmem:[%s8929_s2 + $0x84] ss:$8 sps:$4 sm:$0xff]   ;;  %v4785_v33 = vld [vmem:[%s8929_s2 + $0x234] ss:$8 sps:$4 sm:$0xff]  }
  0x18   :  { %851 = vmatprep.subr.bf16.mxu0 %v5112_v0  ;;  %4718 = vmatprep.subr.bf16.mxu1 %v5112_v0  ;;  %v4784_v34 = vld [vmem:[%s8929_s2 + $0x80] ss:$8 sps:$4 sm:$0xff]   ;;  %v4787_v35 = vld [vmem:[%s8929_s2 + $0x230] ss:$8 sps:$4 sm:$0xff]   ;;  %v4788_v36 = vld [vmem:[%s8929_s2 + $0x94] ss:$8 sps:$4 sm:$0xff]  }
  0x19   :  { %v4791_v37 = vld [vmem:[%s8929_s2 + $0x244] ss:$8 sps:$4 sm:$0xff]   ;;  %v4790_v38 = vld [vmem:[%s8929_s2 + $0x90] ss:$8 sps:$4 sm:$0xff]   ;;  %v4793_v39 = vld [vmem:[%s8929_s2 + $0x240] ss:$8 sps:$4 sm:$0xff]  }
  0x1a   :  { %v4794_v40 = vld [vmem:[%s8929_s2 + $0xa4] ss:$8 sps:$4 sm:$0xff]   ;;  %v4797_v41 = vld [vmem:[%s8929_s2 + $0x254] ss:$8 sps:$4 sm:$0xff]   ;;  %v4796_v42 = vld [vmem:[%s8929_s2 + $0xa0] ss:$8 sps:$4 sm:$0xff]  }
  0x1b   :  { %852 = vmatpush1.bf16.msra.mxu0 %v80_v48  ;;  %4727 = vmatpush1.bf16.msra.mxu1 %v80_v48  ;;  %v4799_v43 = vld [vmem:[%s8929_s2 + $0x250] ss:$8 sps:$4 sm:$0xff]   ;;  %v4800_v44 = vld [vmem:[%s8929_s2 + $0xb4] ss:$8 sps:$4 sm:$0xff]   ;;  %v4803_v45 = vld [vmem:[%s8929_s2 + $0x264] ss:$8 sps:$4 sm:$0xff]  }
  0x1c   :  { %853 = vmatprep.subr.bf16.mxu0 %v5112_v0  ;;  %4719 = vmatprep.subr.bf16.mxu1 %v5112_v0  ;;  %v4802_v46 = vld [vmem:[%s8929_s2 + $0xb0] ss:$8 sps:$4 sm:$0xff]   ;;  %v4805_v47 = vld [vmem:[%s8929_s2 + $0x260] ss:$8 sps:$4 sm:$0xff]   ;;  %v4806_v48 = vld [vmem:[%s8929_s2 + $0xc4] ss:$8 sps:$4 sm:$0xff]  }
  0x1d   :  { %v4809_v49 = vld [vmem:[%s8929_s2 + $0x274] ss:$8 sps:$4 sm:$0xff]   ;;  %v4808_v50 = vld [vmem:[%s8929_s2 + $0xc0] ss:$8 sps:$4 sm:$0xff]   ;;  %v4811_v51 = vld [vmem:[%s8929_s2 + $0x270] ss:$8 sps:$4 sm:$0xff]  }
  0x1e   :  { %v4812_v52 = vld [vmem:[%s8929_s2 + $0xd4] ss:$8 sps:$4 sm:$0xff]   ;;  %v4815_v53 = vld [vmem:[%s8929_s2 + $0x284] ss:$8 sps:$4 sm:$0xff]   ;;  %v4814_v54 = vld [vmem:[%s8929_s2 + $0xd0] ss:$8 sps:$4 sm:$0xff]  }
  0x1f   :  { %854 = vmatpush1.bf16.msra.mxu0 %v81_v55  ;;  %4728 = vmatpush1.bf16.msra.mxu1 %v81_v55  ;;  %v4817_v55 = vld [vmem:[%s8929_s2 + $0x280] ss:$8 sps:$4 sm:$0xff]   ;;  %v4818_v56 = vld [vmem:[%s8929_s2 + $0xe4] ss:$8 sps:$4 sm:$0xff]   ;;  %v4821_v57 = vld [vmem:[%s8929_s2 + $0x294] ss:$8 sps:$4 sm:$0xff]  }
  0x20   :  { %855 = vmatprep.subr.bf16.mxu0 %v5112_v0  ;;  %4720 = vmatprep.subr.bf16.mxu1 %v5112_v0  ;;  %v4820_v58 = vld [vmem:[%s8929_s2 + $0xe0] ss:$8 sps:$4 sm:$0xff]   ;;  %v4823_v59 = vld [vmem:[%s8929_s2 + $0x290] ss:$8 sps:$4 sm:$0xff]   ;;  %v4824_v60 = vld [vmem:[%s8929_s2 + $0xf4] ss:$8 sps:$4 sm:$0xff]  }
  0x21   :  { %v4827_v61 = vld [vmem:[%s8929_s2 + $0x2a4] ss:$8 sps:$4 sm:$0xff]   ;;  %v4829_v63 = vld [vmem:[%s8929_s2 + $0x2a0] ss:$8 sps:$4 sm:$0xff]  }
  0x22   :  { %v4830_v1 = vld [vmem:[%s8929_s2 + $0x104] ss:$8 sps:$4 sm:$0xff]  }
  0x23   :  { %856 = vmatpush1.bf16.msra.mxu0 %v82_v62  ;;  %4729 = vmatpush1.bf16.msra.mxu1 %v82_v62  ;;  %v4826_v62 = vld [vmem:[%s8929_s2 + $0xf0] ss:$8 sps:$4 sm:$0xff]  }
  0x24   :  { %857 = vmatprep.subr.bf16.mxu0 %v5112_v0  ;;  %4721 = vmatprep.subr.bf16.mxu1 %v5112_v0  ;;  %v4742_v0 = vld [vmem:[%s8929_s2 + $0x10] ss:$8 sps:$4 sm:$0xff]  }
  0x27   :  { %858 = vmatpush1.bf16.msra.mxu0 %v83_v2  ;;  %4730 = vmatpush1.bf16.msra.mxu1 %v83_v2  ;;  %v4833_v2 = vld [vmem:[%s8929_s2 + $0x2b4] ss:$8 sps:$4 sm:$0xff]  }
  0x2a   :  { %874 = vmatmul.mubr.bf16.vlgmr.msra.gmra.mrb[0].mxu0 %v4734_v3  ;;  %1090 = vmatmul.mubr.bf16.vlgmr.msra.gmra.mrb[0].mxu1 %v4737_v4  ;;  %v4832_v3 = vld [vmem:[%s8929_s2 + $0x100] ss:$8 sps:$4 sm:$0xff]   ;;  %v4835_v4 = vld [vmem:[%s8929_s2 + $0x2b0] ss:$8 sps:$4 sm:$0xff]  }
  0x2b   :  { %4660 = vmatprep.mubr.msk.bf16.mxu0 %vm678_vm0, %v4740_v5  ;;  %4687 = vmatprep.mubr.msk.bf16.mxu1 %vm678_vm0, %v4743_v6  ;;  %v4836_v5 = vld [vmem:[%s8929_s2 + $0x114] ss:$8 sps:$4 sm:$0xff]   ;;  %v4839_v6 = vld [vmem:[%s8929_s2 + $0x2c4] ss:$8 sps:$4 sm:$0xff]  }
  0x32   :  { %882 = vmatmul.mubr.bf16.gmra.mrb[4].mxu0 %v4742_v0  ;;  %1098 = vmatmul.mubr.bf16.gmra.mrb[4].mxu1 %v4745_v7  ;;  %v4838_v0 = vld [vmem:[%s8929_s2 + $0x110] ss:$8 sps:$4 sm:$0xff]   ;;  %v4841_v7 = vld [vmem:[%s8929_s2 + $0x2c0] ss:$8 sps:$4 sm:$0xff]  }
  0x33   :  { %4661 = vmatprep.mubr.msk.bf16.mxu0 %vm678_vm0, %v4746_v8  ;;  %4688 = vmatprep.mubr.msk.bf16.mxu1 %vm678_vm0, %v4749_v9  ;;  %v4842_v8 = vld [vmem:[%s8929_s2 + $0x124] ss:$8 sps:$4 sm:$0xff]   ;;  %v4845_v9 = vld [vmem:[%s8929_s2 + $0x2d4] ss:$8 sps:$4 sm:$0xff]  }
  0x3a   :  { %890 = vmatmul.mubr.bf16.gmra.mrb[8].mxu0 %v4748_v10  ;;  %1106 = vmatmul.mubr.bf16.gmra.mrb[8].mxu1 %v4751_v11  ;;  %v4844_v10 = vld [vmem:[%s8929_s2 + $0x120] ss:$8 sps:$4 sm:$0xff]   ;;  %v4847_v11 = vld [vmem:[%s8929_s2 + $0x2d0] ss:$8 sps:$4 sm:$0xff]  }
  0x3b   :  { %4662 = vmatprep.mubr.msk.bf16.mxu0 %vm678_vm0, %v4752_v12  ;;  %4689 = vmatprep.mubr.msk.bf16.mxu1 %vm678_vm0, %v4755_v13  ;;  %v4848_v12 = vld [vmem:[%s8929_s2 + $0x134] ss:$8 sps:$4 sm:$0xff]   ;;  %v4851_v13 = vld [vmem:[%s8929_s2 + $0x2e4] ss:$8 sps:$4 sm:$0xff]  }
  0x42   :  { %898 = vmatmul.mubr.bf16.gmra.mrb[12].mxu0 %v4754_v14  ;;  %1114 = vmatmul.mubr.bf16.gmra.mrb[12].mxu1 %v4757_v15  ;;  %v4850_v14 = vld [vmem:[%s8929_s2 + $0x130] ss:$8 sps:$4 sm:$0xff]   ;;  %v4853_v15 = vld [vmem:[%s8929_s2 + $0x2e0] ss:$8 sps:$4 sm:$0xff]  }
  0x43   :  { %4663 = vmatprep.mubr.msk.bf16.mxu0 %vm678_vm0, %v4758_v16  ;;  %4690 = vmatprep.mubr.msk.bf16.mxu1 %vm678_vm0, %v4761_v17  ;;  %v4854_v16 = vld [vmem:[%s8929_s2 + $0x144] ss:$8 sps:$4 sm:$0xff]   ;;  %v4857_v17 = vld [vmem:[%s8929_s2 + $0x2f4] ss:$8 sps:$4 sm:$0xff]  }
  0x4a   :  { %906 = vmatmul.mubr.bf16.gmra.mrb[16].mxu0 %v4760_v18  ;;  %1122 = vmatmul.mubr.bf16.gmra.mrb[16].mxu1 %v4763_v19  ;;  %v4856_v18 = vld [vmem:[%s8929_s2 + $0x140] ss:$8 sps:$4 sm:$0xff]   ;;  %v4859_v19 = vld [vmem:[%s8929_s2 + $0x2f0] ss:$8 sps:$4 sm:$0xff]  }
  0x4b   :  { %4664 = vmatprep.mubr.msk.bf16.mxu0 %vm678_vm0, %v4764_v20  ;;  %4691 = vmatprep.mubr.msk.bf16.mxu1 %vm678_vm0, %v4767_v21  ;;  %v4860_v20 = vld [vmem:[%s8929_s2 + $0x154] ss:$8 sps:$4 sm:$0xff]   ;;  %v4863_v21 = vld [vmem:[%s8929_s2 + $0x304] ss:$8 sps:$4 sm:$0xff]  }
  0x52   :  { %914 = vmatmul.mubr.bf16.gmra.mrb[20].mxu0 %v4766_v22  ;;  %1130 = vmatmul.mubr.bf16.gmra.mrb[20].mxu1 %v4769_v23  ;;  %v4862_v22 = vld [vmem:[%s8929_s2 + $0x150] ss:$8 sps:$4 sm:$0xff]   ;;  %v4865_v23 = vld [vmem:[%s8929_s2 + $0x300] ss:$8 sps:$4 sm:$0xff]  }
  0x53   :  { %4665 = vmatprep.mubr.msk.bf16.mxu0 %vm678_vm0, %v4770_v24  ;;  %4692 = vmatprep.mubr.msk.bf16.mxu1 %vm678_vm0, %v4773_v25  ;;  %v4866_v24 = vld [vmem:[%s8929_s2 + $0x164] ss:$8 sps:$4 sm:$0xff]   ;;  %v4869_v25 = vld [vmem:[%s8929_s2 + $0x314] ss:$8 sps:$4 sm:$0xff]  }
  0x5a   :  { %922 = vmatmul.mubr.bf16.gmra.mrb[24].mxu0 %v4772_v26  ;;  %1138 = vmatmul.mubr.bf16.gmra.mrb[24].mxu1 %v4775_v27  ;;  %v4868_v26 = vld [vmem:[%s8929_s2 + $0x160] ss:$8 sps:$4 sm:$0xff]   ;;  %v4871_v27 = vld [vmem:[%s8929_s2 + $0x310] ss:$8 sps:$4 sm:$0xff]  }
  0x5b   :  { %4666 = vmatprep.mubr.msk.bf16.mxu0 %vm678_vm0, %v4776_v28  ;;  %4693 = vmatprep.mubr.msk.bf16.mxu1 %vm678_vm0, %v4779_v29  ;;  %v4872_v28 = vld [vmem:[%s8929_s2 + $0x174] ss:$8 sps:$4 sm:$0xff]   ;;  %v4875_v29 = vld [vmem:[%s8929_s2 + $0x324] ss:$8 sps:$4 sm:$0xff]  }
  0x62   :  { %930 = vmatmul.mubr.bf16.gmra.mrb[28].mxu0 %v4778_v30  ;;  %1146 = vmatmul.mubr.bf16.gmra.mrb[28].mxu1 %v4781_v31  ;;  %v4874_v30 = vld [vmem:[%s8929_s2 + $0x170] ss:$8 sps:$4 sm:$0xff]   ;;  %v4877_v31 = vld [vmem:[%s8929_s2 + $0x320] ss:$8 sps:$4 sm:$0xff]  }
  0x63   :  { %4667 = vmatprep.mubr.msk.bf16.mxu0 %vm678_vm0, %v4782_v32  ;;  %4694 = vmatprep.mubr.msk.bf16.mxu1 %vm678_vm0, %v4785_v33  ;;  %v4878_v32 = vld [vmem:[%s8929_s2 + $0x184] ss:$8 sps:$4 sm:$0xff]   ;;  %v4881_v33 = vld [vmem:[%s8929_s2 + $0x334] ss:$8 sps:$4 sm:$0xff]  }
  0x6a   :  { %938 = vmatmul.mubr.bf16.gmra.mrb[32].mxu0 %v4784_v34  ;;  %1154 = vmatmul.mubr.bf16.gmra.mrb[32].mxu1 %v4787_v35  ;;  %v4880_v34 = vld [vmem:[%s8929_s2 + $0x180] ss:$8 sps:$4 sm:$0xff]   ;;  %v4883_v35 = vld [vmem:[%s8929_s2 + $0x330] ss:$8 sps:$4 sm:$0xff]  }
  0x6b   :  { %4668 = vmatprep.mubr.msk.bf16.mxu0 %vm678_vm0, %v4788_v36  ;;  %4695 = vmatprep.mubr.msk.bf16.mxu1 %vm678_vm0, %v4791_v37  ;;  %v4884_v36 = vld [vmem:[%s8929_s2 + $0x194] ss:$8 sps:$4 sm:$0xff]   ;;  %v4887_v37 = vld [vmem:[%s8929_s2 + $0x344] ss:$8 sps:$4 sm:$0xff]  }
  0x72   :  { %946 = vmatmul.mubr.bf16.gmra.mrb[36].mxu0 %v4790_v38  ;;  %1162 = vmatmul.mubr.bf16.gmra.mrb[36].mxu1 %v4793_v39  ;;  %v4886_v38 = vld [vmem:[%s8929_s2 + $0x190] ss:$8 sps:$4 sm:$0xff]   ;;  %v4889_v39 = vld [vmem:[%s8929_s2 + $0x340] ss:$8 sps:$4 sm:$0xff]  }
  0x73   :  { %4669 = vmatprep.mubr.msk.bf16.mxu0 %vm678_vm0, %v4794_v40  ;;  %4696 = vmatprep.mubr.msk.bf16.mxu1 %vm678_vm0, %v4797_v41  ;;  %v4890_v40 = vld [vmem:[%s8929_s2 + $0x1a4] ss:$8 sps:$4 sm:$0xff]   ;;  %v4893_v41 = vld [vmem:[%s8929_s2 + $0x354] ss:$8 sps:$4 sm:$0xff]  }
  0x7a   :  { %954 = vmatmul.mubr.bf16.gmra.mrb[40].mxu0 %v4796_v42  ;;  %1170 = vmatmul.mubr.bf16.gmra.mrb[40].mxu1 %v4799_v43  ;;  %v4892_v42 = vld [vmem:[%s8929_s2 + $0x1a0] ss:$8 sps:$4 sm:$0xff]   ;;  %v4895_v43 = vld [vmem:[%s8929_s2 + $0x350] ss:$8 sps:$4 sm:$0xff]  }
  0x7b   :  { %4670 = vmatprep.mubr.msk.bf16.mxu0 %vm678_vm0, %v4800_v44  ;;  %4697 = vmatprep.mubr.msk.bf16.mxu1 %vm678_vm0, %v4803_v45 }
  0x82   :  { %962 = vmatmul.mubr.bf16.gmra.mrb[44].mxu0 %v4802_v46  ;;  %1178 = vmatmul.mubr.bf16.gmra.mrb[44].mxu1 %v4805_v47 }
  0x83   :  { %4671 = vmatprep.mubr.msk.bf16.mxu0 %vm678_vm0, %v4806_v48  ;;  %4698 = vmatprep.mubr.msk.bf16.mxu1 %vm678_vm0, %v4809_v49 }
  0x8a   :  { %970 = vmatmul.mubr.bf16.gmra.mrb[48].mxu0 %v4808_v50  ;;  %1186 = vmatmul.mubr.bf16.gmra.mrb[48].mxu1 %v4811_v51 }
  0x8b   :  { %4672 = vmatprep.mubr.msk.bf16.mxu0 %vm678_vm0, %v4812_v52  ;;  %4699 = vmatprep.mubr.msk.bf16.mxu1 %vm678_vm0, %v4815_v53 }
  0x92   :  { %978 = vmatmul.mubr.bf16.gmra.mrb[52].mxu0 %v4814_v54  ;;  %1194 = vmatmul.mubr.bf16.gmra.mrb[52].mxu1 %v4817_v55 }
  0x93   :  { %4673 = vmatprep.mubr.msk.bf16.mxu0 %vm678_vm0, %v4818_v56  ;;  %4700 = vmatprep.mubr.msk.bf16.mxu1 %vm678_vm0, %v4821_v57 }
  0x9a   :  { %986 = vmatmul.mubr.bf16.gmra.mrb[56].mxu0 %v4820_v58  ;;  %1202 = vmatmul.mubr.bf16.gmra.mrb[56].mxu1 %v4823_v59 }
  0x9b   :  { %4674 = vmatprep.mubr.msk.bf16.mxu0 %vm678_vm0, %v4824_v60  ;;  %4701 = vmatprep.mubr.msk.bf16.mxu1 %vm678_vm0, %v4827_v61 }
  0xa2   :  { %994 = vmatmul.mubr.bf16.gmra.mrb[60].mxu0 %v4826_v62  ;;  %1210 = vmatmul.mubr.bf16.gmra.mrb[60].mxu1 %v4829_v63 }
  0xa3   :  { %4675 = vmatprep.mubr.msk.bf16.mxu0 %vm678_vm0, %v4830_v1  ;;  %4702 = vmatprep.mubr.msk.bf16.mxu1 %vm678_vm0, %v4833_v2 }
  0xaa   :  { %1002 = vmatmul.mubr.bf16.gmra.mrb[64].mxu0 %v4832_v3  ;;  %1218 = vmatmul.mubr.bf16.gmra.mrb[64].mxu1 %v4835_v4 }
  0xab   :  { %4676 = vmatprep.mubr.msk.bf16.mxu0 %vm678_vm0, %v4836_v5  ;;  %4703 = vmatprep.mubr.msk.bf16.mxu1 %vm678_vm0, %v4839_v6 }
  0xb2   :  { %1010 = vmatmul.mubr.bf16.gmra.mrb[68].mxu0 %v4838_v0  ;;  %1226 = vmatmul.mubr.bf16.gmra.mrb[68].mxu1 %v4841_v7 }
  0xb3   :  { %4677 = vmatprep.mubr.msk.bf16.mxu0 %vm678_vm0, %v4842_v8  ;;  %4704 = vmatprep.mubr.msk.bf16.mxu1 %vm678_vm0, %v4845_v9 }
  0xba   :  { %1018 = vmatmul.mubr.bf16.gmra.mrb[72].mxu0 %v4844_v10  ;;  %1234 = vmatmul.mubr.bf16.gmra.mrb[72].mxu1 %v4847_v11 }
  0xbb   :  { %4678 = vmatprep.mubr.msk.bf16.mxu0 %vm678_vm0, %v4848_v12  ;;  %4705 = vmatprep.mubr.msk.bf16.mxu1 %vm678_vm0, %v4851_v13 }
  0xc2   :  { %1026 = vmatmul.mubr.bf16.gmra.mrb[76].mxu0 %v4850_v14  ;;  %1242 = vmatmul.mubr.bf16.gmra.mrb[76].mxu1 %v4853_v15 }
  0xc3   :  { %4679 = vmatprep.mubr.msk.bf16.mxu0 %vm678_vm0, %v4854_v16  ;;  %4706 = vmatprep.mubr.msk.bf16.mxu1 %vm678_vm0, %v4857_v17 }
  0xca   :  { %1034 = vmatmul.mubr.bf16.gmra.mrb[80].mxu0 %v4856_v18  ;;  %1250 = vmatmul.mubr.bf16.gmra.mrb[80].mxu1 %v4859_v19 }
  0xcb   :  { %4680 = vmatprep.mubr.msk.bf16.mxu0 %vm678_vm0, %v4860_v20  ;;  %4707 = vmatprep.mubr.msk.bf16.mxu1 %vm678_vm0, %v4863_v21 }
  0xd2   :  { %1042 = vmatmul.mubr.bf16.gmra.mrb[84].mxu0 %v4862_v22  ;;  %1258 = vmatmul.mubr.bf16.gmra.mrb[84].mxu1 %v4865_v23 }
  0xd3   :  { %4681 = vmatprep.mubr.msk.bf16.mxu0 %vm678_vm0, %v4866_v24  ;;  %4708 = vmatprep.mubr.msk.bf16.mxu1 %vm678_vm0, %v4869_v25 }
  0xda   :  { %1050 = vmatmul.mubr.bf16.gmra.mrb[88].mxu0 %v4868_v26  ;;  %1266 = vmatmul.mubr.bf16.gmra.mrb[88].mxu1 %v4871_v27 }
  0xdb   :  { %4682 = vmatprep.mubr.msk.bf16.mxu0 %vm678_vm0, %v4872_v28  ;;  %4709 = vmatprep.mubr.msk.bf16.mxu1 %vm678_vm0, %v4875_v29 }
  0xe2   :  { %1058 = vmatmul.mubr.bf16.gmra.mrb[92].mxu0 %v4874_v30  ;;  %1274 = vmatmul.mubr.bf16.gmra.mrb[92].mxu1 %v4877_v31 }
  0xe3   :  { %4683 = vmatprep.mubr.msk.bf16.mxu0 %vm678_vm0, %v4878_v32  ;;  %4710 = vmatprep.mubr.msk.bf16.mxu1 %vm678_vm0, %v4881_v33 }
  0xea   :  { %1066 = vmatmul.mubr.bf16.gmra.mrb[96].mxu0 %v4880_v34  ;;  %1282 = vmatmul.mubr.bf16.gmra.mrb[96].mxu1 %v4883_v35 }
  0xeb   :  { %4684 = vmatprep.mubr.msk.bf16.mxu0 %vm678_vm0, %v4884_v36  ;;  %4711 = vmatprep.mubr.msk.bf16.mxu1 %vm678_vm0, %v4887_v37 }
  0xf2   :  { %1074 = vmatmul.mubr.bf16.gmra.mrb[100].mxu0 %v4886_v38  ;;  %1290 = vmatmul.mubr.bf16.gmra.mrb[100].mxu1 %v4889_v39 }
  0xf3   :  { %4685 = vmatprep.mubr.msk.bf16.mxu0 %vm678_vm0, %v4890_v40  ;;  %4712 = vmatprep.mubr.msk.bf16.mxu1 %vm678_vm0, %v4893_v41 }
  0xfa   :  { %1082 = vmatmul.mubr.bf16.gmra.mrb[104].mxu0 %v4892_v42  ;;  %1298 = vmatmul.mubr.bf16.gmra.mrb[104].mxu1 %v4895_v43 }
  0xfd   :  { %v5649_v44 = vpop.f32.mrb[0].mxu0  ;;  %v5651_v45 = vpop.f32.mrb[0].mxu1 }
  0xfe   :  { %9230 = vst [vmem:[#allocation2_spill] sm:$0xff] %v5649_v44  ;;  %9231 = vst [vmem:[#allocation3_spill] sm:$0xff] %v5651_v45  ;;  %v877_v46 = vpop.f32.mrb[1].mxu0  ;;  %v1093_v47 = vpop.f32.mrb[1].mxu1  ;;  %v1307_v48 = vsel %vm1306_vm1, %v5649_v44, 0.0  ;;  %v1469_v54 = vsel %vm1306_vm1, %v5651_v45, 0.0 }
  0xff   :  { %v5655_v49 = vpop.f32.mrb[2].mxu1  ;;  %1308 = vadd.xlane.f32.xlu0 %v1307_v48  ;;  %v5657_v50 = vpop.f32.mrb[2].mxu0 }
 0x100   :  { %9232 = vst [vmem:[#allocation4_spill] sm:$0xff] %v5655_v49  ;;  %9233 = vst [vmem:[#allocation5_spill] sm:$0xff] %v5657_v50  ;;  %v880_v51 = vpop.f32.mrb[3].mxu0  ;;  %v1096_v52 = vpop.f32.mrb[3].mxu1  ;;  %v1472_v53 = vsel %vm1306_vm1, %v5655_v49, 0.0  ;;  %v1310_v58 = vsel %vm1306_vm1, %v5657_v50, 0.0 }
 0x101   :  { %1473 = vadd.xlane.f32.xlu1 %v1472_v53 }
 0x103   :  { %1470 = vadd.xlane.f32.xlu0 %v1469_v54 }
 0x105   :  { %v5663_v55 = vpop.f32.mrb[4].mxu0  ;;  %v5665_v56 = vpop.f32.mrb[4].mxu1 }
 0x106   :  { %9234 = vst [vmem:[#allocation6_spill] sm:$0xff] %v5663_v55  ;;  %9235 = vst [vmem:[#allocation7_spill] sm:$0xff] %v5665_v56  ;;  %v885_v57 = vpop.f32.mrb[5].mxu0  ;;  %v1313_v59 = vsel %vm1306_vm1, %v5663_v55, 0.0  ;;  %v1101_v60 = vpop.f32.mrb[5].mxu1  ;;  %v1475_v1 = vsel %vm1306_vm1, %v5665_v56, 0.0 }
 0x107   :  { %1311 = vadd.xlane.f32.xlu0 %v1310_v58  ;;  %1314 = vadd.xlane.f32.xlu1 %v1313_v59  ;;  %v5671_v61 = vpop.f32.mrb[6].mxu0  ;;  %v5673_v62 = vpop.f32.mrb[6].mxu1 }
 0x108   :  { %9236 = vst [vmem:[#allocation8_spill] sm:$0xff] %v5671_v61  ;;  %9237 = vst [vmem:[#allocation9_spill] sm:$0xff] %v5673_v62  ;;  %v888_v63 = vpop.f32.mrb[7].mxu0  ;;  %v1104_v2 = vpop.f32.mrb[7].mxu1  ;;  %v1316_v3 = vsel %vm1306_vm1, %v5671_v61, 0.0  ;;  %v1478_v4 = vsel %vm1306_vm1, %v5673_v62, 0.0 }
 0x10b   :  { %1476 = vadd.xlane.f32.xlu0 %v1475_v1  ;;  %1317 = vadd.xlane.f32.xlu1 %v1316_v3 }
 0x10d   :  { %v5681_v5 = vpop.f32.mrb[8].mxu0  ;;  %v5683_v6 = vpop.f32.mrb[8].mxu1 }
 0x10e   :  { %9238 = vst [vmem:[#allocation10_spill] sm:$0xff] %v5681_v5  ;;  %9239 = vst [vmem:[#allocation11_spill] sm:$0xff] %v5683_v6  ;;  %v893_v0 = vpop.f32.mrb[9].mxu0  ;;  %v1319_v7 = vsel %vm1306_vm1, %v5681_v5, 0.0  ;;  %v1109_v8 = vpop.f32.mrb[9].mxu1  ;;  %v1481_v12 = vsel %vm1306_vm1, %v5683_v6, 0.0 }
 0x10f   :  { %1479 = vadd.xlane.f32.xlu1 %v1478_v4  ;;  %1320 = vadd.xlane.f32.xlu0 %v1319_v7  ;;  %v5687_v9 = vpop.f32.mrb[10].mxu0  ;;  %v5689_v10 = vpop.f32.mrb[10].mxu1 }
 0x110   :  { %9240 = vst [vmem:[#allocation12_spill] sm:$0xff] %v5687_v9  ;;  %9241 = vst [vmem:[#allocation13_spill] sm:$0xff] %v5689_v10  ;;  %v896_v11 = vpop.f32.mrb[11].mxu0  ;;  %v1322_v13 = vsel %vm1306_vm1, %v5687_v9, 0.0  ;;  %v1112_v14 = vpop.f32.mrb[11].mxu1  ;;  %v1484_v15 = vsel %vm1306_vm1, %v5689_v10, 0.0 }
 0x113   :  { %1482 = vadd.xlane.f32.xlu0 %v1481_v12  ;;  %1323 = vadd.xlane.f32.xlu1 %v1322_v13 }
 0x115   :  { %v5697_v16 = vpop.f32.mrb[12].mxu0  ;;  %v5699_v17 = vpop.f32.mrb[12].mxu1 }
 0x116   :  { %9242 = vst [vmem:[#allocation14_spill] sm:$0xff] %v5697_v16  ;;  %9243 = vst [vmem:[#allocation15_spill] sm:$0xff] %v5699_v17  ;;  %v901_v18 = vpop.f32.mrb[13].mxu0  ;;  %v1325_v19 = vsel %vm1306_vm1, %v5697_v16, 0.0  ;;  %v1117_v20 = vpop.f32.mrb[13].mxu1  ;;  %v1487_v24 = vsel %vm1306_vm1, %v5699_v17, 0.0 }
 0x117   :  { %1485 = vadd.xlane.f32.xlu1 %v1484_v15  ;;  %1326 = vadd.xlane.f32.xlu0 %v1325_v19  ;;  %v5703_v21 = vpop.f32.mrb[14].mxu0  ;;  %v5705_v22 = vpop.f32.mrb[14].mxu1 }
 0x118   :  { %9244 = vst [vmem:[#allocation16_spill] sm:$0xff] %v5703_v21  ;;  %9245 = vst [vmem:[#allocation17_spill] sm:$0xff] %v5705_v22  ;;  %v904_v23 = vpop.f32.mrb[15].mxu0  ;;  %v1328_v25 = vsel %vm1306_vm1, %v5703_v21, 0.0  ;;  %v1120_v26 = vpop.f32.mrb[15].mxu1  ;;  %v1490_v27 = vsel %vm1306_vm1, %v5705_v22, 0.0 }
 0x11b   :  { %1488 = vadd.xlane.f32.xlu0 %v1487_v24  ;;  %1329 = vadd.xlane.f32.xlu1 %v1328_v25 }
 0x11d   :  { %v5713_v28 = vpop.f32.mrb[16].mxu0  ;;  %v5715_v29 = vpop.f32.mrb[16].mxu1 }
 0x11e   :  { %9246 = vst [vmem:[#allocation18_spill] sm:$0xff] %v5713_v28  ;;  %9247 = vst [vmem:[#allocation19_spill] sm:$0xff] %v5715_v29  ;;  %v909_v30 = vpop.f32.mrb[17].mxu0  ;;  %v1331_v31 = vsel %vm1306_vm1, %v5713_v28, 0.0  ;;  %v1125_v32 = vpop.f32.mrb[17].mxu1  ;;  %v1493_v36 = vsel %vm1306_vm1, %v5715_v29, 0.0 }
 0x11f   :  { %1491 = vadd.xlane.f32.xlu1 %v1490_v27  ;;  %1332 = vadd.xlane.f32.xlu0 %v1331_v31  ;;  %v5719_v33 = vpop.f32.mrb[18].mxu0  ;;  %v5721_v34 = vpop.f32.mrb[18].mxu1 }
 0x120   :  { %9248 = vst [vmem:[#allocation20_spill] sm:$0xff] %v5719_v33  ;;  %9249 = vst [vmem:[#allocation21_spill] sm:$0xff] %v5721_v34  ;;  %v912_v35 = vpop.f32.mrb[19].mxu0  ;;  %v1334_v37 = vsel %vm1306_vm1, %v5719_v33, 0.0  ;;  %v1128_v38 = vpop.f32.mrb[19].mxu1  ;;  %v1496_v39 = vsel %vm1306_vm1, %v5721_v34, 0.0 }
 0x123   :  { %1494 = vadd.xlane.f32.xlu0 %v1493_v36  ;;  %1335 = vadd.xlane.f32.xlu1 %v1334_v37 }
 0x125   :  { %v5729_v40 = vpop.f32.mrb[20].mxu0  ;;  %v5731_v41 = vpop.f32.mrb[20].mxu1 }
 0x126   :  { %9250 = vst [vmem:[#allocation22_spill] sm:$0xff] %v5729_v40  ;;  %9251 = vst [vmem:[#allocation23_spill] sm:$0xff] %v5731_v41  ;;  %v917_v42 = vpop.f32.mrb[21].mxu0  ;;  %v1337_v43 = vsel %vm1306_vm1, %v5729_v40, 0.0  ;;  %v1133_v46 = vpop.f32.mrb[21].mxu1  ;;  %v1499_v52 = vsel %vm1306_vm1, %v5731_v41, 0.0 }
 0x127   :  { %1497 = vadd.xlane.f32.xlu1 %v1496_v39  ;;  %1338 = vadd.xlane.f32.xlu0 %v1337_v43  ;;  %v5735_v47 = vpop.f32.mrb[22].mxu0  ;;  %v5737_v48 = vpop.f32.mrb[22].mxu1 }
 0x128   :  { %9252 = vst [vmem:[#allocation24_spill] sm:$0xff] %v5735_v47  ;;  %9253 = vst [vmem:[#allocation25_spill] sm:$0xff] %v5737_v48  ;;  %v920_v51 = vpop.f32.mrb[23].mxu0  ;;  %v1340_v53 = vsel %vm1306_vm1, %v5735_v47, 0.0  ;;  %v1136_v54 = vpop.f32.mrb[23].mxu1  ;;  %v1502_v57 = vsel %vm1306_vm1, %v5737_v48, 0.0 }
 0x12b   :  { %1500 = vadd.xlane.f32.xlu0 %v1499_v52  ;;  %1341 = vadd.xlane.f32.xlu1 %v1340_v53 }
 0x12d   :  { %v5745_v58 = vpop.f32.mrb[24].mxu0  ;;  %v5747_v59 = vpop.f32.mrb[24].mxu1 }
 0x12e   :  { %9254 = vst [vmem:[#allocation26_spill] sm:$0xff] %v5745_v58  ;;  %9255 = vst [vmem:[#allocation27_spill] sm:$0xff] %v5747_v59  ;;  %v925_v60 = vpop.f32.mrb[25].mxu0  ;;  %v1343_v63 = vsel %vm1306_vm1, %v5745_v58, 0.0  ;;  %v1141_v1 = vpop.f32.mrb[25].mxu1  ;;  %v1505_v0 = vsel %vm1306_vm1, %v5747_v59, 0.0 }
 0x12f   :  { %1503 = vadd.xlane.f32.xlu1 %v1502_v57  ;;  %1344 = vadd.xlane.f32.xlu0 %v1343_v63  ;;  %v5751_v2 = vpop.f32.mrb[26].mxu0  ;;  %v5753_v3 = vpop.f32.mrb[26].mxu1 }
 0x130   :  { %9256 = vst [vmem:[#allocation28_spill] sm:$0xff] %v5751_v2  ;;  %9257 = vst [vmem:[#allocation29_spill] sm:$0xff] %v5753_v3  ;;  %v928_v4 = vpop.f32.mrb[27].mxu0  ;;  %v1346_v7 = vsel %vm1306_vm1, %v5751_v2, 0.0  ;;  %v1144_v8 = vpop.f32.mrb[27].mxu1  ;;  %v1508_v11 = vsel %vm1306_vm1, %v5753_v3, 0.0 }
 0x133   :  { %1506 = vadd.xlane.f32.xlu0 %v1505_v0  ;;  %1347 = vadd.xlane.f32.xlu1 %v1346_v7 }
 0x135   :  { %v5761_v12 = vpop.f32.mrb[28].mxu0  ;;  %v5763_v13 = vpop.f32.mrb[28].mxu1 }
 0x136   :  { %9258 = vst [vmem:[#allocation30_spill] sm:$0xff] %v5761_v12  ;;  %9259 = vst [vmem:[#allocation31_spill] sm:$0xff] %v5763_v13  ;;  %v933_v14 = vpop.f32.mrb[29].mxu0  ;;  %v1349_v15 = vsel %vm1306_vm1, %v5761_v12, 0.0  ;;  %v1149_v18 = vpop.f32.mrb[29].mxu1  ;;  %v1511_v24 = vsel %vm1306_vm1, %v5763_v13, 0.0 }
 0x137   :  { %1509 = vadd.xlane.f32.xlu1 %v1508_v11  ;;  %1350 = vadd.xlane.f32.xlu0 %v1349_v15  ;;  %v5767_v19 = vpop.f32.mrb[30].mxu0  ;;  %v5769_v20 = vpop.f32.mrb[30].mxu1 }
 0x138   :  { %9260 = vst [vmem:[#allocation32_spill] sm:$0xff] %v5767_v19  ;;  %9261 = vst [vmem:[#allocation33_spill] sm:$0xff] %v5769_v20  ;;  %v936_v23 = vpop.f32.mrb[31].mxu0  ;;  %v1352_v25 = vsel %vm1306_vm1, %v5767_v19, 0.0  ;;  %v1152_v26 = vpop.f32.mrb[31].mxu1  ;;  %v1514_v27 = vsel %vm1306_vm1, %v5769_v20, 0.0 }
 0x13b   :  { %1512 = vadd.xlane.f32.xlu0 %v1511_v24  ;;  %1353 = vadd.xlane.f32.xlu1 %v1352_v25 }
 0x13d   :  { %v5777_v30 = vpop.f32.mrb[32].mxu0  ;;  %v5779_v31 = vpop.f32.mrb[32].mxu1 }
 0x13e   :  { %9262 = vst [vmem:[#allocation34_spill] sm:$0xff] %v5777_v30  ;;  %9263 = vst [vmem:[#allocation35_spill] sm:$0xff] %v5779_v31  ;;  %v941_v32 = vpop.f32.mrb[33].mxu0  ;;  %v1355_v35 = vsel %vm1306_vm1, %v5777_v30, 0.0  ;;  %v1157_v36 = vpop.f32.mrb[33].mxu1  ;;  %v1517_v42 = vsel %vm1306_vm1, %v5779_v31, 0.0 }
 0x13f   :  { %1515 = vadd.xlane.f32.xlu1 %v1514_v27  ;;  %1356 = vadd.xlane.f32.xlu0 %v1355_v35  ;;  %v5783_v37 = vpop.f32.mrb[34].mxu0  ;;  %v5785_v38 = vpop.f32.mrb[34].mxu1 }
 0x140   :  { %9264 = vst [vmem:[#allocation36_spill] sm:$0xff] %v5783_v37  ;;  %9265 = vst [vmem:[#allocation37_spill] sm:$0xff] %v5785_v38  ;;  %v944_v39 = vpop.f32.mrb[35].mxu0  ;;  %v1358_v43 = vsel %vm1306_vm1, %v5783_v37, 0.0  ;;  %v1160_v46 = vpop.f32.mrb[35].mxu1  ;;  %v1520_v51 = vsel %vm1306_vm1, %v5785_v38, 0.0 }
 0x143   :  { %1518 = vadd.xlane.f32.xlu0 %v1517_v42  ;;  %1359 = vadd.xlane.f32.xlu1 %v1358_v43 }
 0x145   :  { %v5793_v52 = vpop.f32.mrb[36].mxu0  ;;  %v5795_v53 = vpop.f32.mrb[36].mxu1 }
 0x146   :  { %9266 = vst [vmem:[#allocation38_spill] sm:$0xff] %v5793_v52  ;;  %9267 = vst [vmem:[#allocation39_spill] sm:$0xff] %v5795_v53  ;;  %v949_v54 = vpop.f32.mrb[37].mxu0  ;;  %v1361_v57 = vsel %vm1306_vm1, %v5793_v52, 0.0  ;;  %v1165_v60 = vpop.f32.mrb[37].mxu1  ;;  %v1523_v0 = vsel %vm1306_vm1, %v5795_v53, 0.0 }
 0x147   :  { %1521 = vadd.xlane.f32.xlu1 %v1520_v51  ;;  %1362 = vadd.xlane.f32.xlu0 %v1361_v57  ;;  %v5799_v63 = vpop.f32.mrb[38].mxu0  ;;  %v5801_v1 = vpop.f32.mrb[38].mxu1 }
 0x148   :  { %9268 = vst [vmem:[#allocation40_spill] sm:$0xff] %v5799_v63  ;;  %9269 = vst [vmem:[#allocation41_spill] sm:$0xff] %v5801_v1  ;;  %v952_v4 = vpop.f32.mrb[39].mxu0  ;;  %v1364_v7 = vsel %vm1306_vm1, %v5799_v63, 0.0  ;;  %v1168_v8 = vpop.f32.mrb[39].mxu1  ;;  %v1526_v11 = vsel %vm1306_vm1, %v5801_v1, 0.0 }
 0x14b   :  { %1524 = vadd.xlane.f32.xlu0 %v1523_v0  ;;  %1365 = vadd.xlane.f32.xlu1 %v1364_v7 }
 0x14d   :  { %v5809_v14 = vpop.f32.mrb[40].mxu0  ;;  %v5811_v15 = vpop.f32.mrb[40].mxu1 }
 0x14e   :  { %9270 = vst [vmem:[#allocation42_spill] sm:$0xff] %v5809_v14  ;;  %9271 = vst [vmem:[#allocation43_spill] sm:$0xff] %v5811_v15  ;;  %v957_v18 = vpop.f32.mrb[41].mxu0  ;;  %v1367_v23 = vsel %vm1306_vm1, %v5809_v14, 0.0  ;;  %v1173_v24 = vpop.f32.mrb[41].mxu1  ;;  %v1529_v32 = vsel %vm1306_vm1, %v5811_v15, 0.0 }
 0x14f   :  { %1527 = vadd.xlane.f32.xlu1 %v1526_v11  ;;  %1368 = vadd.xlane.f32.xlu0 %v1367_v23  ;;  %v5815_v25 = vpop.f32.mrb[42].mxu0  ;;  %v5817_v26 = vpop.f32.mrb[42].mxu1 }
 0x150   :  { %9272 = vst [vmem:[#allocation44_spill] sm:$0xff] %v5815_v25  ;;  %9273 = vst [vmem:[#allocation45_spill] sm:$0xff] %v5817_v26  ;;  %v960_v27 = vpop.f32.mrb[43].mxu0  ;;  %v1370_v35 = vsel %vm1306_vm1, %v5815_v25, 0.0  ;;  %v1176_v36 = vpop.f32.mrb[43].mxu1  ;;  %v1532_v39 = vsel %vm1306_vm1, %v5817_v26, 0.0 }
 0x153   :  { %1530 = vadd.xlane.f32.xlu0 %v1529_v32  ;;  %1371 = vadd.xlane.f32.xlu1 %v1370_v35 }
 0x155   :  { %v5825_v42 = vpop.f32.mrb[44].mxu0  ;;  %v5827_v43 = vpop.f32.mrb[44].mxu1 }
 0x156   :  { %9274 = vst [vmem:[#allocation46_spill] sm:$0xff] %v5825_v42  ;;  %9275 = vst [vmem:[#allocation47_spill] sm:$0xff] %v5827_v43  ;;  %v965_v46 = vpop.f32.mrb[45].mxu0  ;;  %v1373_v51 = vsel %vm1306_vm1, %v5825_v42, 0.0  ;;  %v1181_v54 = vpop.f32.mrb[45].mxu1  ;;  %v1535_v0 = vsel %vm1306_vm1, %v5827_v43, 0.0 }
 0x157   :  { %1533 = vadd.xlane.f32.xlu1 %v1532_v39  ;;  %1374 = vadd.xlane.f32.xlu0 %v1373_v51  ;;  %v5831_v57 = vpop.f32.mrb[46].mxu0  ;;  %v5833_v60 = vpop.f32.mrb[46].mxu1 }
 0x158   :  { %9276 = vst [vmem:[#allocation48_spill] sm:$0xff] %v5831_v57  ;;  %9277 = vst [vmem:[#allocation49_spill] sm:$0xff] %v5833_v60  ;;  %v968_v4 = vpop.f32.mrb[47].mxu0  ;;  %v1376_v7 = vsel %vm1306_vm1, %v5831_v57, 0.0  ;;  %v1184_v8 = vpop.f32.mrb[47].mxu1  ;;  %v1538_v11 = vsel %vm1306_vm1, %v5833_v60, 0.0 }
 0x15b   :  { %1536 = vadd.xlane.f32.xlu0 %v1535_v0  ;;  %1377 = vadd.xlane.f32.xlu1 %v1376_v7 }
 0x15d   :  { %v5841_v18 = vpop.f32.mrb[48].mxu0  ;;  %v5843_v23 = vpop.f32.mrb[48].mxu1 }
 0x15e   :  { %9278 = vst [vmem:[#allocation50_spill] sm:$0xff] %v5841_v18  ;;  %9279 = vst [vmem:[#allocation51_spill] sm:$0xff] %v5843_v23  ;;  %v973_v24 = vpop.f32.mrb[49].mxu0  ;;  %v1379_v27 = vsel %vm1306_vm1, %v5841_v18, 0.0  ;;  %v1189_v32 = vpop.f32.mrb[49].mxu1  ;;  %v1541_v46 = vsel %vm1306_vm1, %v5843_v23, 0.0 }
 0x15f   :  { %1539 = vadd.xlane.f32.xlu1 %v1538_v11  ;;  %1380 = vadd.xlane.f32.xlu0 %v1379_v27  ;;  %v5847_v35 = vpop.f32.mrb[50].mxu0  ;;  %v5849_v36 = vpop.f32.mrb[50].mxu1 }
 0x160   :  { %9280 = vst [vmem:[#allocation52_spill] sm:$0xff] %v5847_v35  ;;  %9281 = vst [vmem:[#allocation53_spill] sm:$0xff] %v5849_v36  ;;  %v976_v39 = vpop.f32.mrb[51].mxu0  ;;  %v1382_v51 = vsel %vm1306_vm1, %v5847_v35, 0.0  ;;  %v1192_v54 = vpop.f32.mrb[51].mxu1  ;;  %v1544_v4 = vsel %vm1306_vm1, %v5849_v36, 0.0 }
 0x163   :  { %1542 = vadd.xlane.f32.xlu0 %v1541_v46  ;;  %1383 = vadd.xlane.f32.xlu1 %v1382_v51 }
 0x165   :  { %v5857_v0 = vpop.f32.mrb[52].mxu0  ;;  %v5859_v7 = vpop.f32.mrb[52].mxu1 }
 0x166   :  { %9282 = vst [vmem:[#allocation54_spill] sm:$0xff] %v5857_v0  ;;  %9283 = vst [vmem:[#allocation55_spill] sm:$0xff] %v5859_v7  ;;  %v981_v8 = vpop.f32.mrb[53].mxu0  ;;  %v1385_v11 = vsel %vm1306_vm1, %v5857_v0, 0.0  ;;  %v1197_v24 = vpop.f32.mrb[53].mxu1  ;;  %v1547_v46 = vsel %vm1306_vm1, %v5859_v7, 0.0 }
 0x167   :  { %1545 = vadd.xlane.f32.xlu1 %v1544_v4  ;;  %1386 = vadd.xlane.f32.xlu0 %v1385_v11  ;;  %v5863_v27 = vpop.f32.mrb[54].mxu0  ;;  %v5865_v32 = vpop.f32.mrb[54].mxu1 }
 0x168   :  { %9284 = vst [vmem:[#allocation56_spill] sm:$0xff] %v5863_v27  ;;  %9285 = vst [vmem:[#allocation57_spill] sm:$0xff] %v5865_v32  ;;  %v984_v39 = vpop.f32.mrb[55].mxu0  ;;  %v1388_v51 = vsel %vm1306_vm1, %v5863_v27, 0.0  ;;  %v1200_v54 = vpop.f32.mrb[55].mxu1  ;;  %v1550_v8 = vsel %vm1306_vm1, %v5865_v32, 0.0 }
 0x16b   :  { %1548 = vadd.xlane.f32.xlu0 %v1547_v46  ;;  %1389 = vadd.xlane.f32.xlu1 %v1388_v51 }
 0x16d   :  { %v5873_v24 = vpop.f32.mrb[56].mxu0  ;;  %v5875_v4 = vpop.f32.mrb[56].mxu1 }
 0x16e   :  { %9286 = vst [vmem:[#allocation58_spill] sm:$0xff] %v5873_v24  ;;  %9287 = vst [vmem:[#allocation59_spill] sm:$0xff] %v5875_v4  ;;  %v989_v11 = vpop.f32.mrb[57].mxu0  ;;  %v1391_v39 = vsel %vm1306_vm1, %v5873_v24, 0.0  ;;  %v1205_v36 = vpop.f32.mrb[57].mxu1  ;;  %v1553_v51 = vsel %vm1306_vm1, %v5875_v4, 0.0 }
 0x16f   :  { %1551 = vadd.xlane.f32.xlu1 %v1550_v8  ;;  %1392 = vadd.xlane.f32.xlu0 %v1391_v39  ;;  %v5879_v7 = vpop.f32.mrb[58].mxu0  ;;  %v5881_v27 = vpop.f32.mrb[58].mxu1 }
 0x170   :  { %9288 = vst [vmem:[#allocation60_spill] sm:$0xff] %v5879_v7  ;;  %9289 = vst [vmem:[#allocation61_spill] sm:$0xff] %v5881_v27  ;;  %v992_v46 = vpop.f32.mrb[59].mxu0  ;;  %v1394_v54 = vsel %vm1306_vm1, %v5879_v7, 0.0  ;;  %v1208_v32 = vpop.f32.mrb[59].mxu1  ;;  %v1556_v11 = vsel %vm1306_vm1, %v5881_v27, 0.0 }
 0x173   :  { %1554 = vadd.xlane.f32.xlu0 %v1553_v51  ;;  %1395 = vadd.xlane.f32.xlu1 %v1394_v54 }
 0x175   :  { %v5889_v36 = vpop.f32.mrb[60].mxu0  ;;  %v5891_v8 = vpop.f32.mrb[60].mxu1 }
 0x176   :  { %9290 = vst [vmem:[#allocation62_spill] sm:$0xff] %v5889_v36  ;;  %9291 = vst [vmem:[#allocation63_spill] sm:$0xff] %v5891_v8  ;;  %v997_v39 = vpop.f32.mrb[61].mxu0  ;;  %v1397_v46 = vsel %vm1306_vm1, %v5889_v36, 0.0  ;;  %v1213_v24 = vpop.f32.mrb[61].mxu1  ;;  %v1559_v51 = vsel %vm1306_vm1, %v5891_v8, 0.0 }
 0x177   :  { %1557 = vadd.xlane.f32.xlu1 %v1556_v11  ;;  %1398 = vadd.xlane.f32.xlu0 %v1397_v46  ;;  %v5895_v4 = vpop.f32.mrb[62].mxu0  ;;  %v5897_v7 = vpop.f32.mrb[62].mxu1 }
 0x178   :  { %9292 = vst [vmem:[#allocation64_spill] sm:$0xff] %v5895_v4  ;;  %9293 = vst [vmem:[#allocation65_spill] sm:$0xff] %v5897_v7  ;;  %v1000_v32 = vpop.f32.mrb[63].mxu0  ;;  %v1400_v54 = vsel %vm1306_vm1, %v5895_v4, 0.0  ;;  %v1216_v27 = vpop.f32.mrb[63].mxu1  ;;  %v1562_v39 = vsel %vm1306_vm1, %v5897_v7, 0.0 }
 0x17b   :  { %1560 = vadd.xlane.f32.xlu0 %v1559_v51  ;;  %1401 = vadd.xlane.f32.xlu1 %v1400_v54 }
 0x17d   :  { %v5905_v24 = vpop.f32.mrb[64].mxu0  ;;  %v5907_v11 = vpop.f32.mrb[64].mxu1 }
 0x17e   :  { %9294 = vst [vmem:[#allocation66_spill] sm:$0xff] %v5905_v24  ;;  %9295 = vst [vmem:[#allocation67_spill] sm:$0xff] %v5907_v11  ;;  %v1005_v46 = vpop.f32.mrb[65].mxu0  ;;  %v1403_v32 = vsel %vm1306_vm1, %v5905_v24, 0.0  ;;  %v1221_v36 = vpop.f32.mrb[65].mxu1  ;;  %v1565_v51 = vsel %vm1306_vm1, %v5907_v11, 0.0 }
 0x17f   :  { %1563 = vadd.xlane.f32.xlu1 %v1562_v39  ;;  %1404 = vadd.xlane.f32.xlu0 %v1403_v32  ;;  %v5911_v8 = vpop.f32.mrb[66].mxu0  ;;  %v5913_v4 = vpop.f32.mrb[66].mxu1 }
 0x180   :  { %9296 = vst [vmem:[#allocation68_spill] sm:$0xff] %v5911_v8  ;;  %9297 = vst [vmem:[#allocation69_spill] sm:$0xff] %v5913_v4  ;;  %v1008_v27 = vpop.f32.mrb[67].mxu0  ;;  %v1406_v54 = vsel %vm1306_vm1, %v5911_v8, 0.0  ;;  %v1224_v7 = vpop.f32.mrb[67].mxu1  ;;  %v1568_v46 = vsel %vm1306_vm1, %v5913_v4, 0.0 }
 0x183   :  { %1566 = vadd.xlane.f32.xlu0 %v1565_v51  ;;  %1407 = vadd.xlane.f32.xlu1 %v1406_v54 }
 0x185   :  { %v5921_v36 = vpop.f32.mrb[68].mxu0  ;;  %v5923_v39 = vpop.f32.mrb[68].mxu1 }
 0x186   :  { %9298 = vst [vmem:[#allocation70_spill] sm:$0xff] %v5921_v36  ;;  %9299 = vst [vmem:[#allocation71_spill] sm:$0xff] %v5923_v39  ;;  %v1013_v32 = vpop.f32.mrb[69].mxu0  ;;  %v1409_v27 = vsel %vm1306_vm1, %v5921_v36, 0.0  ;;  %v1229_v24 = vpop.f32.mrb[69].mxu1  ;;  %v1571_v51 = vsel %vm1306_vm1, %v5923_v39, 0.0 }
 0x187   :  { %1569 = vadd.xlane.f32.xlu1 %v1568_v46  ;;  %1410 = vadd.xlane.f32.xlu0 %v1409_v27  ;;  %v5927_v11 = vpop.f32.mrb[70].mxu0  ;;  %v5929_v8 = vpop.f32.mrb[70].mxu1 }
 0x188   :  { %9300 = vst [vmem:[#allocation72_spill] sm:$0xff] %v5927_v11  ;;  %9301 = vst [vmem:[#allocation73_spill] sm:$0xff] %v5929_v8  ;;  %v1016_v7 = vpop.f32.mrb[71].mxu0  ;;  %v1412_v54 = vsel %vm1306_vm1, %v5927_v11, 0.0  ;;  %v1232_v4 = vpop.f32.mrb[71].mxu1  ;;  %v1574_v24 = vsel %vm1306_vm1, %v5929_v8, 0.0 }
 0x18b   :  { %1572 = vadd.xlane.f32.xlu0 %v1571_v51  ;;  %1413 = vadd.xlane.f32.xlu1 %v1412_v54 }
 0x18c   :  { %v1309_v32 = vpop.xlane.xlu0 %1308 }
 0x18d   :  { %v5937_v46 = vmul.f32 0.020408163, %v1309_v32  ;;  %v5939_v27 = vpop.f32.mrb[72].mxu0  ;;  %v5941_v36 = vpop.f32.mrb[72].mxu1 }
 0x18e   :  { %9303 = vst [vmem:[#allocation75_spill] sm:$0xff] %v5939_v27  ;;  %9304 = vst [vmem:[#allocation76_spill] sm:$0xff] %v5941_v36  ;;  %v1474_v7 = vpop.xlane.xlu1 %1473  ;;  %v1021_v0 = vpop.f32.mrb[73].mxu0  ;;  %v1415_v39 = vsel %vm1306_vm1, %v5939_v27, 0.0  ;;  %v1577_v11 = vsel %vm1306_vm1, %v5941_v36, 0.0 }
 0x18f   :  { %9302 = vst [vmem:[#allocation74_spill] sm:$0xff] %v5937_v46  ;;  %1575 = vadd.xlane.f32.xlu1 %v1574_v24  ;;  %1416 = vadd.xlane.f32.xlu0 %v1415_v39  ;;  %v5945_v4 = vpop.f32.mrb[74].mxu0  ;;  %v1237_v51 = vpop.f32.mrb[73].mxu1  ;;  %v1739_v54 = vsub.f32 %v5649_v44, %v5937_v46  ;;  %v5957_v27 = vmul.f32 0.020408163, %v1474_v7 }
 0x190   :  { %9305 = vst [vmem:[#allocation77_spill] sm:$0xff] %v5945_v4  ;;  %v1471_v8 = vpop.xlane.xlu0 %1470  ;;  %v1024_v32 = vpop.f32.mrb[75].mxu0  ;;  %v1418_v35 = vsel %vm1306_vm1, %v5945_v4, 0.0 }
 0x191   :  { %v5953_v0 = vmul.f32 0.020408163, %v1471_v8  ;;  %v5955_v23 = vpop.f32.mrb[74].mxu1  ;;  %v1847_v39 = vmul.f32 %v1739_v54, %v1739_v54  ;;  %9308 = vst [vmem:[#allocation80_spill] sm:$0xff] %v5957_v27 }
 0x192   :  { %9307 = vst [vmem:[#allocation79_spill] sm:$0xff] %v5955_v23  ;;  %v1240_v24 = vpop.f32.mrb[75].mxu1  ;;  %v1580_v46 = vsel %vm1306_vm1, %v5955_v23, 0.0 }
 0x193   :  { %9306 = vst [vmem:[#allocation78_spill] sm:$0xff] %v5953_v0  ;;  %1578 = vadd.xlane.f32.xlu0 %v1577_v11  ;;  %1419 = vadd.xlane.f32.xlu1 %v1418_v35  ;;  %v1793_v51 = vsub.f32 %v5651_v45, %v5953_v0  ;;  %v1955_v4 = vsel %vm1306_vm1, %v1847_v39, 0.0  ;;  %v1794_v45 = vsub.f32 %v5655_v49, %v5957_v27 }
 0x194   :  { %v1312_v32 = vpop.xlane.xlu0 %1311  ;;  %v1315_v44 = vpop.xlane.xlu1 %1314 }
 0x195   :  { %v5963_v36 = vmul.f32 0.020408163, %v1312_v32  ;;  %v5965_v8 = vpop.f32.mrb[76].mxu0  ;;  %v1901_v24 = vmul.f32 %v1793_v51, %v1793_v51  ;;  %v5968_v7 = vpop.f32.mrb[76].mxu1  ;;  %v5978_v51 = vmul.f32 0.020408163, %v1315_v44 }
 0x196   :  { %9310 = vst [vmem:[#allocation82_spill] sm:$0xff] %v5965_v8  ;;  %v1029_v54 = vpop.f32.mrb[77].mxu0  ;;  %9311 = vst [vmem:[#allocation83_spill] sm:$0xff] %v5968_v7  ;;  %v1245_v32 = vpop.f32.mrb[77].mxu1 }
 0x197   :  { %9309 = vst [vmem:[#allocation81_spill] sm:$0xff] %v5963_v36  ;;  %1956 = vadd.xlane.f32.xlu0 %v1955_v4  ;;  %1581 = vadd.xlane.f32.xlu1 %v1580_v46  ;;  %v1740_v35 = vsub.f32 %v5657_v50, %v5963_v36  ;;  %v5972_v11 = vpop.f32.mrb[78].mxu0  ;;  %v5976_v39 = vpop.f32.mrb[78].mxu1  ;;  %9314 = vst [vmem:[#allocation86_spill] sm:$0xff] %v5978_v51  ;;  %v2117_v4 = vsel %vm1306_vm1, %v1901_v24, 0.0  ;;  %v1902_v50 = vmul.f32 %v1794_v45, %v1794_v45 }
 0x198   :  { %9312 = vst [vmem:[#allocation84_spill] sm:$0xff] %v5972_v11  ;;  %v1477_v0 = vpop.xlane.xlu0 %1476  ;;  %v1318_v23 = vpop.xlane.xlu1 %1317  ;;  %9313 = vst [vmem:[#allocation85_spill] sm:$0xff] %v5976_v39  ;;  %v1421_v32 = vsel %vm1306_vm1, %v5965_v8, 0.0  ;;  %v1741_v44 = vsub.f32 %v5663_v55, %v5978_v51 }
 0x199   :  { %v1848_v60 = vmul.f32 %v1740_v35, %v1740_v35  ;;  %v1032_v18 = vpop.f32.mrb[79].mxu0  ;;  %v1248_v46 = vpop.f32.mrb[79].mxu1  ;;  %v5988_v35 = vmul.f32 0.020408163, %v1477_v0  ;;  %v2120_v45 = vsel %vm1306_vm1, %v1902_v50, 0.0  ;;  %v1583_v0 = vsel %vm1306_vm1, %v5968_v7, 0.0 }
 0x19a   :  { %v5992_v46 = vmul.f32 0.020408163, %v1318_v23  ;;  %v1849_v55 = vmul.f32 %v1741_v44, %v1741_v44  ;;  %v1424_v50 = vsel %vm1306_vm1, %v5972_v11, 0.0 }
 0x19b   :  { %2118 = vadd.xlane.f32.xlu0 %v2117_v4  ;;  %v1958_v54 = vsel %vm1306_vm1, %v1848_v60, 0.0  ;;  %9317 = vst [vmem:[#allocation89_spill] sm:$0xff] %v5988_v35  ;;  %v1795_v23 = vsub.f32 %v5665_v56, %v5988_v35 }
 0x19c   :  { %v1480_v36 = vpop.xlane.xlu1 %1479  ;;  %v1321_v57 = vpop.xlane.xlu0 %1320  ;;  %1959 = vadd.xlane.f32.xlu1 %v1958_v54  ;;  %9318 = vst [vmem:[#allocation90_spill] sm:$0xff] %v5992_v46 }
 0x19d   :  { %v5984_v49 = vpop.f32.mrb[80].mxu0  ;;  %v5986_v18 = vpop.f32.mrb[80].mxu1  ;;  %v1903_v44 = vmul.f32 %v1795_v23, %v1795_v23 }
 0x19e   :  { %9315 = vst [vmem:[#allocation87_spill] sm:$0xff] %v5984_v49  ;;  %9316 = vst [vmem:[#allocation88_spill] sm:$0xff] %v5986_v18  ;;  %v1037_v24 = vpop.f32.mrb[81].mxu0  ;;  %v1253_v4 = vpop.f32.mrb[81].mxu1 }
 0x19f   :  { %1422 = vadd.xlane.f32.xlu0 %v1421_v32  ;;  %v5995_v60 = vpop.f32.mrb[82].mxu0  ;;  %v5997_v54 = vpop.f32.mrb[82].mxu1  ;;  %v6003_v24 = vmul.f32 0.020408163, %v1480_v36  ;;  %v1742_v32 = vsub.f32 %v5671_v61, %v5992_v46 }
 0x1a0   :  { %9319 = vst [vmem:[#allocation91_spill] sm:$0xff] %v5995_v60  ;;  %9320 = vst [vmem:[#allocation92_spill] sm:$0xff] %v5997_v54  ;;  %v1483_v27 = vpop.xlane.xlu0 %1482  ;;  %v1324_v8 = vpop.xlane.xlu1 %1323  ;;  %2121 = vadd.xlane.f32.xlu1 %v2120_v45 }
 0x1a1   :  { %v1040_v43 = vpop.f32.mrb[83].mxu0  ;;  %v1256_v26 = vpop.f32.mrb[83].mxu1  ;;  %9321 = vst [vmem:[#allocation93_spill] sm:$0xff] %v6003_v24  ;;  %v1850_v35 = vmul.f32 %v1742_v32, %v1742_v32  ;;  %v1796_v61 = vsub.f32 %v5673_v62, %v6003_v24 }
 0x1a2   :  { %v1961_v43 = vsel %vm1306_vm1, %v1849_v55, 0.0 }
 0x1a3   :  { %1584 = vadd.xlane.f32.xlu0 %v1583_v0  ;;  %v1586_v0 = vsel %vm1306_vm1, %v5976_v39, 0.0  ;;  %v1964_v32 = vsel %vm1306_vm1, %v1850_v35, 0.0  ;;  %v1427_v39 = vsel %vm1306_vm1, %v5984_v49, 0.0 }
 0x1a4   :  { %v1486_v4 = vpop.xlane.xlu1 %1485  ;;  %v6009_v45 = vpop.xlane.xlu0 %1326  ;;  %1425 = vadd.xlane.f32.xlu1 %v1424_v50 }
 0x1a5   :  { %v6011_v51 = vpop.f32.mrb[84].mxu0  ;;  %v6013_v26 = vpop.f32.mrb[84].mxu1 }
 0x1a6   :  { %9322 = vst [vmem:[#allocation94_spill] sm:$0xff] %v6011_v51  ;;  %9323 = vst [vmem:[#allocation95_spill] sm:$0xff] %v6013_v26  ;;  %v1045_v36 = vpop.f32.mrb[85].mxu0  ;;  %v1261_v56 = vpop.f32.mrb[85].mxu1 }
 0x1a7   :  { %1962 = vadd.xlane.f32.xlu0 %v1961_v43  ;;  %v6020_v46 = vpop.f32.mrb[86].mxu0  ;;  %v6022_v50 = vpop.f32.mrb[86].mxu1  ;;  %v6028_v56 = vmul.f32 0.020408163, %v1321_v57  ;;  %v2123_v43 = vsel %vm1306_vm1, %v1903_v44, 0.0  ;;  %v1904_v36 = vmul.f32 %v1796_v61, %v1796_v61 }
 0x1a8   :  { %9324 = vst [vmem:[#allocation96_spill] sm:$0xff] %v6020_v46  ;;  %9325 = vst [vmem:[#allocation97_spill] sm:$0xff] %v6022_v50  ;;  %v6024_v11 = vpop.xlane.xlu0 %1488  ;;  %v6026_v7 = vpop.xlane.xlu1 %1329  ;;  %1587 = vadd.xlane.f32.xlu1 %v1586_v0  ;;  %v6042_v57 = vmul.f32 0.020408163, %v1483_v27  ;;  %v6046_v61 = vmul.f32 0.020408163, %v1324_v8 }
 0x1a9   :  { %v1048_v55 = vpop.f32.mrb[87].mxu0  ;;  %v1264_v23 = vpop.f32.mrb[87].mxu1  ;;  %9326 = vst [vmem:[#allocation98_spill] sm:$0xff] %v6028_v56  ;;  %v1743_v44 = vsub.f32 %v5681_v5, %v6028_v56  ;;  %v1589_v27 = vsel %vm1306_vm1, %v5986_v18, 0.0 }
 0x1aa   :  { %9329 = vst [vmem:[#allocation101_spill] sm:$0xff] %v6042_v57  ;;  %9330 = vst [vmem:[#allocation102_spill] sm:$0xff] %v6046_v61  ;;  %v2126_v23 = vsel %vm1306_vm1, %v1904_v36, 0.0  ;;  %v1797_v8 = vsub.f32 %v5683_v6, %v6042_v57  ;;  %v1430_v36 = vsel %vm1306_vm1, %v5995_v60, 0.0  ;;  %v1744_v56 = vsub.f32 %v5687_v9, %v6046_v61 }
 0x1ab   :  { %2124 = vadd.xlane.f32.xlu0 %v2123_v43  ;;  %v1592_v57 = vsel %vm1306_vm1, %v5997_v54, 0.0  ;;  %v1433_v54 = vsel %vm1306_vm1, %v6011_v51, 0.0 }
 0x1ac   :  { %v6032_v62 = vpop.xlane.xlu1 %1491  ;;  %v6034_v24 = vpop.xlane.xlu0 %1332  ;;  %1965 = vadd.xlane.f32.xlu1 %v1964_v32  ;;  %v1852_v60 = vmul.f32 %v1744_v56, %v1744_v56 }
 0x1ad   :  { %v6038_v42 = vpop.f32.mrb[88].mxu0  ;;  %v6040_v0 = vpop.f32.mrb[88].mxu1 }
 0x1ae   :  { %9327 = vst [vmem:[#allocation99_spill] sm:$0xff] %v6038_v42  ;;  %9328 = vst [vmem:[#allocation100_spill] sm:$0xff] %v6040_v0  ;;  %v1053_v55 = vpop.f32.mrb[89].mxu0  ;;  %v1269_v35 = vpop.f32.mrb[89].mxu1  ;;  %v1970_v56 = vsel %vm1306_vm1, %v1852_v60, 0.0 }
 0x1af   :  { %1428 = vadd.xlane.f32.xlu0 %v1427_v39  ;;  %v6049_v43 = vpop.f32.mrb[90].mxu0  ;;  %v6051_v32 = vpop.f32.mrb[90].mxu1  ;;  %v1851_v35 = vmul.f32 %v1743_v44, %v1743_v44  ;;  %v6061_v39 = vmul.f32 0.020408163, %v1486_v4  ;;  %v1905_v4 = vmul.f32 %v1797_v8, %v1797_v8  ;;  %v6089_v8 = vmul.f32 0.020408163, %v6009_v45 }
 0x1b0   :  { %9331 = vst [vmem:[#allocation103_spill] sm:$0xff] %v6049_v43  ;;  %9332 = vst [vmem:[#allocation104_spill] sm:$0xff] %v6051_v32  ;;  %v6053_v49 = vpop.xlane.xlu0 %1494  ;;  %v6055_v25 = vpop.xlane.xlu1 %1335  ;;  %2127 = vadd.xlane.f32.xlu1 %v2126_v23 }
 0x1b1   :  { %v1056_v5 = vpop.f32.mrb[91].mxu0  ;;  %v1272_v55 = vpop.f32.mrb[91].mxu1  ;;  %9333 = vst [vmem:[#allocation105_spill] sm:$0xff] %v6061_v39  ;;  %v1798_v9 = vsub.f32 %v5689_v10, %v6061_v39  ;;  %9338 = vst [vmem:[#allocation110_spill] sm:$0xff] %v6089_v8  ;;  %v1745_v45 = vsub.f32 %v5697_v16, %v6089_v8  ;;  %v6127_v16 = vmul.f32 0.020408163, %v6032_v62 }
 0x1b2   :  { %v1967_v55 = vsel %vm1306_vm1, %v1851_v35, 0.0  ;;  %v1436_v8 = vsel %vm1306_vm1, %v6020_v46, 0.0 }
 0x1b3   :  { %1590 = vadd.xlane.f32.xlu0 %v1589_v27  ;;  %9345 = vst [vmem:[#allocation117_spill] sm:$0xff] %v6127_v16  ;;  %v1800_v62 = vsub.f32 %v5705_v22, %v6127_v16 }
 0x1b4   :  { %v6067_v15 = vpop.xlane.xlu1 %1497  ;;  %v6069_v23 = vpop.xlane.xlu0 %1338  ;;  %1431 = vadd.xlane.f32.xlu1 %v1430_v36 }
 0x1b5   :  { %v6071_v5 = vpop.f32.mrb[92].mxu0  ;;  %v6073_v44 = vpop.f32.mrb[92].mxu1 }
 0x1b6   :  { %9334 = vst [vmem:[#allocation106_spill] sm:$0xff] %v6071_v5  ;;  %9335 = vst [vmem:[#allocation107_spill] sm:$0xff] %v6073_v44  ;;  %v1061_v6 = vpop.f32.mrb[93].mxu0  ;;  %v1277_v27 = vpop.f32.mrb[93].mxu1 }
 0x1b7   :  { %1968 = vadd.xlane.f32.xlu0 %v1967_v55  ;;  %v6080_v61 = vpop.f32.mrb[94].mxu0  ;;  %v6082_v36 = vpop.f32.mrb[94].mxu1  ;;  %v2129_v55 = vsel %vm1306_vm1, %v1905_v4, 0.0  ;;  %v1906_v27 = vmul.f32 %v1798_v9, %v1798_v9  ;;  %v6106_v4 = vmul.f32 0.020408163, %v6024_v11  ;;  %v1595_v11 = vsel %vm1306_vm1, %v6013_v26, 0.0 }
 0x1b8   :  { %9336 = vst [vmem:[#allocation108_spill] sm:$0xff] %v6080_v61  ;;  %9337 = vst [vmem:[#allocation109_spill] sm:$0xff] %v6082_v36  ;;  %v6084_v18 = vpop.xlane.xlu0 %1500  ;;  %v6086_v1 = vpop.xlane.xlu1 %1341  ;;  %1593 = vadd.xlane.f32.xlu1 %v1592_v57 }
 0x1b9   :  { %v1064_v35 = vpop.f32.mrb[95].mxu0  ;;  %v1280_v6 = vpop.f32.mrb[95].mxu1  ;;  %9341 = vst [vmem:[#allocation113_spill] sm:$0xff] %v6106_v4 }
 0x1ba   :  { %v6109_v6 = vmul.f32 0.020408163, %v6026_v7  ;;  %v1799_v7 = vsub.f32 %v5699_v17, %v6106_v4 }
 0x1bb   :  { %2130 = vadd.xlane.f32.xlu0 %v2129_v55  ;;  %v2132_v55 = vsel %vm1306_vm1, %v1906_v27, 0.0 }
 0x1bc   :  { %v6093_v10 = vpop.xlane.xlu1 %1503  ;;  %v6095_v39 = vpop.xlane.xlu0 %1344  ;;  %1971 = vadd.xlane.f32.xlu1 %v1970_v56  ;;  %9342 = vst [vmem:[#allocation114_spill] sm:$0xff] %v6109_v6  ;;  %v1746_v27 = vsub.f32 %v5703_v21, %v6109_v6  ;;  %v1907_v17 = vmul.f32 %v1799_v7, %v1799_v7 }
 0x1bd   :  { %v6099_v57 = vpop.f32.mrb[96].mxu0  ;;  %v6101_v35 = vpop.f32.mrb[96].mxu1 }
 0x1be   :  { %9339 = vst [vmem:[#allocation111_spill] sm:$0xff] %v6099_v57  ;;  %9340 = vst [vmem:[#allocation112_spill] sm:$0xff] %v6101_v35  ;;  %v1069_v60 = vpop.f32.mrb[97].mxu0  ;;  %v1285_v9 = vpop.f32.mrb[97].mxu1  ;;  %v1854_v6 = vmul.f32 %v1746_v27, %v1746_v27  ;;  %v1908_v27 = vmul.f32 %v1800_v62, %v1800_v62 }
 0x1bf   :  { %1434 = vadd.xlane.f32.xlu0 %v1433_v54  ;;  %v6112_v56 = vpop.f32.mrb[98].mxu0  ;;  %v6114_v51 = vpop.f32.mrb[98].mxu1  ;;  %v1853_v54 = vmul.f32 %v1745_v45, %v1745_v45 }
 0x1c0   :  { %9343 = vst [vmem:[#allocation115_spill] sm:$0xff] %v6112_v56  ;;  %9344 = vst [vmem:[#allocation116_spill] sm:$0xff] %v6114_v51  ;;  %v6116_v14 = vpop.xlane.xlu0 %1506  ;;  %v6118_v63 = vpop.xlane.xlu1 %1347  ;;  %2133 = vadd.xlane.f32.xlu1 %v2132_v55 }
 0x1c1   :  { %v1072_v60 = vpop.f32.mrb[99].mxu0  ;;  %v1288_v9 = vpop.f32.mrb[99].mxu1  ;;  %v1973_v45 = vsel %vm1306_vm1, %v1853_v54, 0.0  ;;  %v2135_v54 = vsel %vm1306_vm1, %v1907_v17, 0.0  ;;  %v6170_v17 = vmul.f32 0.020408163, %v6053_v49 }
 0x1c2   :  { %v1601_v49 = vsel %vm1306_vm1, %v6040_v0, 0.0 }
 0x1c3   :  { %1596 = vadd.xlane.f32.xlu0 %v1595_v11  ;;  %v1598_v11 = vsel %vm1306_vm1, %v6022_v50, 0.0  ;;  %v1439_v50 = vsel %vm1306_vm1, %v6038_v42, 0.0  ;;  %9353 = vst [vmem:[#allocation125_spill] sm:$0xff] %v6170_v17 }
 0x1c4   :  { %v6131_v55 = vpop.xlane.xlu1 %1509  ;;  %v6133_v53 = vpop.xlane.xlu0 %1350  ;;  %1437 = vadd.xlane.f32.xlu1 %v1436_v8 }
 0x1c5   :  { %v6135_v60 = vpop.f32.mrb[100].mxu0  ;;  %v6137_v9 = vpop.f32.mrb[100].mxu1 }
 0x1c6   :  { %9346 = vst [vmem:[#allocation118_spill] sm:$0xff] %v6135_v60  ;;  %9347 = vst [vmem:[#allocation119_spill] sm:$0xff] %v6137_v9  ;;  %v1077_v4 = vpop.f32.mrb[101].mxu0  ;;  %v1293_v21 = vpop.f32.mrb[101].mxu1 }
 0x1c7   :  { %1974 = vadd.xlane.f32.xlu0 %v1973_v45  ;;  %v6144_v46 = vpop.f32.mrb[102].mxu0  ;;  %v6146_v8 = vpop.f32.mrb[102].mxu1  ;;  %v6153_v21 = vmul.f32 0.020408163, %v6034_v24  ;;  %v1976_v45 = vsel %vm1306_vm1, %v1854_v6, 0.0 }
 0x1c8   :  { %9348 = vst [vmem:[#allocation120_spill] sm:$0xff] %v6144_v46  ;;  %9349 = vst [vmem:[#allocation121_spill] sm:$0xff] %v6146_v8  ;;  %v6148_v26 = vpop.xlane.xlu0 %1512  ;;  %v6150_v38 = vpop.xlane.xlu1 %1353  ;;  %1599 = vadd.xlane.f32.xlu1 %v1598_v11 }
 0x1c9   :  { %v1080_v7 = vpop.f32.mrb[103].mxu0  ;;  %v1296_v4 = vpop.f32.mrb[103].mxu1  ;;  %9350 = vst [vmem:[#allocation122_spill] sm:$0xff] %v6153_v21  ;;  %v1747_v24 = vsub.f32 %v5713_v28, %v6153_v21  ;;  %v6191_v28 = vmul.f32 0.020408163, %v6067_v15  ;;  %v1442_v21 = vsel %vm1306_vm1, %v6049_v43, 0.0 }
 0x1ca   :  { %v6173_v4 = vmul.f32 0.020408163, %v6055_v25  ;;  %v1801_v25 = vsub.f32 %v5715_v29, %v6170_v17  ;;  %v1604_v15 = vsel %vm1306_vm1, %v6051_v32, 0.0 }
 0x1cb   :  { %2136 = vadd.xlane.f32.xlu0 %v2135_v54  ;;  %v2138_v54 = vsel %vm1306_vm1, %v1908_v27, 0.0  ;;  %9357 = vst [vmem:[#allocation129_spill] sm:$0xff] %v6191_v28 }
 0x1cc   :  { %v6157_v22 = vpop.xlane.xlu1 %1515  ;;  %v6159_v16 = vpop.xlane.xlu0 %1356  ;;  %1977 = vadd.xlane.f32.xlu1 %v1976_v45  ;;  %9354 = vst [vmem:[#allocation126_spill] sm:$0xff] %v6173_v4  ;;  %v1748_v27 = vsub.f32 %v5719_v33, %v6173_v4  ;;  %v6209_v33 = vmul.f32 0.020408163, %v6069_v23  ;;  %v6222_v23 = vmul.f32 0.020408163, %v6084_v18 }
 0x1cd   :  { %v6163_v11 = vpop.f32.mrb[104].mxu0  ;;  %v6165_v7 = vpop.f32.mrb[104].mxu1 }
 0x1ce   :  { %9351 = vst [vmem:[#allocation123_spill] sm:$0xff] %v6163_v11  ;;  %9352 = vst [vmem:[#allocation124_spill] sm:$0xff] %v6165_v7  ;;  %v1085_v6 = vpop.f32.mrb[105].mxu0  ;;  %v1301_v62 = vpop.f32.mrb[105].mxu1  ;;  %v1856_v29 = vmul.f32 %v1748_v27, %v1748_v27  ;;  %v1445_v27 = vsel %vm1306_vm1, %v6071_v5, 0.0 }
 0x1cf   :  { %1440 = vadd.xlane.f32.xlu0 %v1439_v50  ;;  %v6176_v45 = vpop.f32.mrb[106].mxu0  ;;  %v6178_v42 = vpop.f32.mrb[106].mxu1  ;;  %v1855_v50 = vmul.f32 %v1747_v24, %v1747_v24  ;;  %v1802_v24 = vsub.f32 %v5721_v34, %v6191_v28  ;;  %9358 = vst [vmem:[#allocation130_spill] sm:$0xff] %v6209_v33  ;;  %9359 = vst [vmem:[#allocation131_spill] sm:$0xff] %v6222_v23  ;;  %v1803_v28 = vsub.f32 %v5731_v41, %v6222_v23 }
 0x1d0   :  { %9355 = vst [vmem:[#allocation127_spill] sm:$0xff] %v6176_v45  ;;  %9356 = vst [vmem:[#allocation128_spill] sm:$0xff] %v6178_v42  ;;  %v6180_v52 = vpop.xlane.xlu0 %1518  ;;  %v6182_v37 = vpop.xlane.xlu1 %1359  ;;  %2139 = vadd.xlane.f32.xlu1 %v2138_v54 }
 0x1d1   :  { %v1088_v6 = vpop.f32.mrb[107].mxu0  ;;  %v1304_v62 = vpop.f32.mrb[107].mxu1  ;;  %v1911_v4 = vmul.f32 %v1803_v28, %v1803_v28 }
 0x1d2   :  { %v1979_v6 = vsel %vm1306_vm1, %v1855_v50, 0.0  ;;  %v1909_v62 = vmul.f32 %v1801_v25, %v1801_v25  ;;  %v1982_v25 = vsel %vm1306_vm1, %v1856_v29, 0.0  ;;  %v1910_v50 = vmul.f32 %v1802_v24, %v1802_v24 }
 0x1d3   :  { %1602 = vadd.xlane.f32.xlu0 %v1601_v49 }
 0x1d4   :  { %v6195_v54 = vpop.xlane.xlu1 %1521  ;;  %v6197_v42 = vpop.xlane.xlu0 %1362  ;;  %1443 = vadd.xlane.f32.xlu1 %v1442_v21  ;;  %v2141_v21 = vsel %vm1306_vm1, %v1909_v62, 0.0  ;;  %v6225_v62 = vmul.f32 0.020408163, %v6086_v1  ;;  %v2144_v29 = vsel %vm1306_vm1, %v1910_v50, 0.0  ;;  %v6239_v1 = vmul.f32 0.020408163, %v6093_v10 }
 0x1d5   :  { %v1448_v50 = vsel %vm1306_vm1, %v6080_v61, 0.0  ;;  %v1610_v10 = vsel %vm1306_vm1, %v6082_v36, 0.0 }
 0x1d6   :  { %9360 = vst [vmem:[#allocation132_spill] sm:$0xff] %v6225_v62  ;;  %v1750_v18 = vsub.f32 %v5735_v47, %v6225_v62  ;;  %9361 = vst [vmem:[#allocation133_spill] sm:$0xff] %v6239_v1  ;;  %v6257_v47 = vmul.f32 0.020408163, %v6095_v39  ;;  %v6270_v39 = vmul.f32 0.020408163, %v6116_v14 }
 0x1d7   :  { %1980 = vadd.xlane.f32.xlu0 %v1979_v6 }
 0x1d8   :  { %v6204_v49 = vpop.xlane.xlu0 %1524  ;;  %v6206_v17 = vpop.xlane.xlu1 %1365  ;;  %1605 = vadd.xlane.f32.xlu1 %v1604_v15  ;;  %v1749_v15 = vsub.f32 %v5729_v40, %v6209_v33  ;;  %v1858_v41 = vmul.f32 %v1750_v18, %v1750_v18  ;;  %9362 = vst [vmem:[#allocation134_spill] sm:$0xff] %v6257_v47  ;;  %v1451_v18 = vsel %vm1306_vm1, %v6099_v57, 0.0  ;;  %9363 = vst [vmem:[#allocation135_spill] sm:$0xff] %v6270_v39 }
 0x1da   :  { %v1857_v40 = vmul.f32 %v1749_v15, %v1749_v15  ;;  %v1804_v15 = vsub.f32 %v5737_v48, %v6239_v1  ;;  %v1988_v28 = vsel %vm1306_vm1, %v1858_v41, 0.0  ;;  %v1805_v1 = vsub.f32 %v5747_v59, %v6270_v39 }
 0x1db   :  { %2142 = vadd.xlane.f32.xlu0 %v2141_v21 }
 0x1dc   :  { %v6213_v34 = vpop.xlane.xlu1 %1527  ;;  %v6215_v6 = vpop.xlane.xlu0 %1368  ;;  %1983 = vadd.xlane.f32.xlu1 %v1982_v25  ;;  %v1607_v25 = vsel %vm1306_vm1, %v6073_v44, 0.0  ;;  %v1985_v33 = vsel %vm1306_vm1, %v1857_v40, 0.0  ;;  %v1912_v40 = vmul.f32 %v1804_v15, %v1804_v15  ;;  %v1913_v62 = vmul.f32 %v1805_v1, %v1805_v1 }
 0x1de   :  { %v2150_v41 = vsel %vm1306_vm1, %v1912_v40, 0.0  ;;  %v1454_v40 = vsel %vm1306_vm1, %v6112_v56, 0.0 }
 0x1df   :  { %1446 = vadd.xlane.f32.xlu0 %v1445_v27 }
 0x1e0   :  { %v6228_v24 = vpop.xlane.xlu0 %1530  ;;  %v6230_v21 = vpop.xlane.xlu1 %1371  ;;  %2145 = vadd.xlane.f32.xlu1 %v2144_v29 }
 0x1e3   :  { %1608 = vadd.xlane.f32.xlu0 %v1607_v25 }
 0x1e4   :  { %v6243_v27 = vpop.xlane.xlu1 %1533  ;;  %v6245_v29 = vpop.xlane.xlu0 %1374  ;;  %1449 = vadd.xlane.f32.xlu1 %v1448_v50  ;;  %v2147_v50 = vsel %vm1306_vm1, %v1911_v4, 0.0  ;;  %v6273_v4 = vmul.f32 0.020408163, %v6118_v63  ;;  %v6287_v63 = vmul.f32 0.020408163, %v6131_v55  ;;  %v1616_v55 = vsel %vm1306_vm1, %v6114_v51, 0.0 }
 0x1e6   :  { %9364 = vst [vmem:[#allocation136_spill] sm:$0xff] %v6273_v4  ;;  %v1752_v14 = vsub.f32 %v5751_v2, %v6273_v4  ;;  %9365 = vst [vmem:[#allocation137_spill] sm:$0xff] %v6287_v63  ;;  %v6305_v2 = vmul.f32 0.020408163, %v6133_v53  ;;  %v6318_v53 = vmul.f32 0.020408163, %v6148_v26 }
 0x1e7   :  { %1986 = vadd.xlane.f32.xlu0 %v1985_v33 }
 0x1e8   :  { %v6252_v25 = vpop.xlane.xlu0 %1536  ;;  %v6254_v23 = vpop.xlane.xlu1 %1377  ;;  %1611 = vadd.xlane.f32.xlu1 %v1610_v10  ;;  %v1751_v10 = vsub.f32 %v5745_v58, %v6257_v47  ;;  %v1860_v59 = vmul.f32 %v1752_v14, %v1752_v14  ;;  %9366 = vst [vmem:[#allocation138_spill] sm:$0xff] %v6305_v2  ;;  %v1457_v14 = vsel %vm1306_vm1, %v6135_v60, 0.0  ;;  %9367 = vst [vmem:[#allocation139_spill] sm:$0xff] %v6318_v53 }
 0x1ea   :  { %v1859_v58 = vmul.f32 %v1751_v10, %v1751_v10  ;;  %v1806_v10 = vsub.f32 %v5753_v3, %v6287_v63  ;;  %v1807_v63 = vsub.f32 %v5763_v13, %v6318_v53 }
 0x1eb   :  { %2148 = vadd.xlane.f32.xlu0 %v2147_v50 }
 0x1ec   :  { %v6261_v48 = vpop.xlane.xlu1 %1539  ;;  %v6263_v33 = vpop.xlane.xlu0 %1380  ;;  %1989 = vadd.xlane.f32.xlu1 %v1988_v28  ;;  %v1613_v28 = vsel %vm1306_vm1, %v6101_v35, 0.0  ;;  %v1991_v47 = vsel %vm1306_vm1, %v1859_v58, 0.0  ;;  %v1994_v58 = vsel %vm1306_vm1, %v1860_v59, 0.0  ;;  %v1914_v1 = vmul.f32 %v1806_v10, %v1806_v10 }
 0x1ed   :  { %v1915_v4 = vmul.f32 %v1807_v63, %v1807_v63 }
 0x1ee   :  { %v2156_v59 = vsel %vm1306_vm1, %v1914_v1, 0.0  ;;  %v1460_v1 = vsel %vm1306_vm1, %v6144_v46, 0.0 }
 0x1ef   :  { %1452 = vadd.xlane.f32.xlu0 %v1451_v18 }
 0x1f0   :  { %v6276_v15 = vpop.xlane.xlu0 %1542  ;;  %v6278_v50 = vpop.xlane.xlu1 %1383  ;;  %2151 = vadd.xlane.f32.xlu1 %v2150_v41 }
 0x1f3   :  { %1614 = vadd.xlane.f32.xlu0 %v1613_v28 }
 0x1f4   :  { %v6291_v18 = vpop.xlane.xlu1 %1545  ;;  %v6293_v41 = vpop.xlane.xlu0 %1386  ;;  %1455 = vadd.xlane.f32.xlu1 %v1454_v40  ;;  %v2153_v40 = vsel %vm1306_vm1, %v1913_v62, 0.0  ;;  %v6321_v62 = vmul.f32 0.020408163, %v6150_v38  ;;  %v6335_v38 = vmul.f32 0.020408163, %v6157_v22  ;;  %v1622_v22 = vsel %vm1306_vm1, %v6146_v8, 0.0 }
 0x1f6   :  { %9368 = vst [vmem:[#allocation140_spill] sm:$0xff] %v6321_v62  ;;  %v1754_v26 = vsub.f32 %v5767_v19, %v6321_v62  ;;  %9369 = vst [vmem:[#allocation141_spill] sm:$0xff] %v6335_v38  ;;  %v6353_v19 = vmul.f32 0.020408163, %v6159_v16  ;;  %v6366_v16 = vmul.f32 0.020408163, %v6180_v52 }
 0x1f7   :  { %1992 = vadd.xlane.f32.xlu0 %v1991_v47  ;;  %v6381_v52 = vmul.f32 0.020408163, %v6197_v42 }
 0x1f8   :  { %v6300_v28 = vpop.xlane.xlu0 %1548  ;;  %v6302_v39 = vpop.xlane.xlu1 %1389  ;;  %1617 = vadd.xlane.f32.xlu1 %v1616_v55  ;;  %v1753_v55 = vsub.f32 %v5761_v12, %v6305_v2  ;;  %v1862_v13 = vmul.f32 %v1754_v26, %v1754_v26  ;;  %9370 = vst [vmem:[#allocation142_spill] sm:$0xff] %v6353_v19  ;;  %v1463_v26 = vsel %vm1306_vm1, %v6163_v11, 0.0  ;;  %9371 = vst [vmem:[#allocation143_spill] sm:$0xff] %v6366_v16 }
 0x1f9   :  { %9373 = vst [vmem:[#allocation145_spill] sm:$0xff] %v6381_v52 }
 0x1fa   :  { %v1861_v12 = vmul.f32 %v1753_v55, %v1753_v55  ;;  %v1808_v55 = vsub.f32 %v5769_v20, %v6335_v38  ;;  %v1809_v38 = vsub.f32 %v5779_v31, %v6366_v16  ;;  %v9376_v31 = vld [vmem:[#allocation38_spill] sm:$0xff] }
 0x1fb   :  { %2154 = vadd.xlane.f32.xlu0 %v2153_v40  ;;  %v1757_v42 = vsub.f32 %v9376_v31, %v6381_v52  ;;  %v6420_v52 = vmul.f32 0.020408163, %v6213_v34  ;;  %v9387_v34 = vld [vmem:[#allocation41_spill] sm:$0xff] }
 0x1fc   :  { %v6309_v3 = vpop.xlane.xlu1 %1551  ;;  %v6311_v47 = vpop.xlane.xlu0 %1392  ;;  %1995 = vadd.xlane.f32.xlu1 %v1994_v58  ;;  %v1619_v58 = vsel %vm1306_vm1, %v6137_v9, 0.0  ;;  %v1997_v2 = vsel %vm1306_vm1, %v1861_v12, 0.0  ;;  %v2000_v12 = vsel %vm1306_vm1, %v1862_v13, 0.0  ;;  %v1916_v63 = vmul.f32 %v1808_v55, %v1808_v55 }
 0x1fd   :  { %9384 = vst [vmem:[#allocation150_spill] sm:$0xff] %v6420_v52 }
 0x1fe   :  { %v2162_v13 = vsel %vm1306_vm1, %v1916_v63, 0.0  ;;  %v6386_v63 = vmul.f32 0.020408163, %v6195_v54  ;;  %v9378_v54 = vld [vmem:[#allocation37_spill] sm:$0xff] }
 0x1ff   :  { %1458 = vadd.xlane.f32.xlu0 %v1457_v14 }
 0x200   :  { %v6324_v10 = vpop.xlane.xlu0 %1554  ;;  %v6326_v40 = vpop.xlane.xlu1 %1395  ;;  %2157 = vadd.xlane.f32.xlu1 %v2156_v59  ;;  %9375 = vst [vmem:[#allocation146_spill] sm:$0xff] %v6386_v63 }
 0x203   :  { %1620 = vadd.xlane.f32.xlu0 %v1619_v58 }
 0x204   :  { %v6339_v14 = vpop.xlane.xlu1 %1557  ;;  %v6341_v59 = vpop.xlane.xlu0 %1398  ;;  %1461 = vadd.xlane.f32.xlu1 %v1460_v1  ;;  %v2159_v1 = vsel %vm1306_vm1, %v1915_v4, 0.0  ;;  %v6369_v4 = vmul.f32 0.020408163, %v6182_v37  ;;  %v9374_v37 = vld [vmem:[#allocation36_spill] sm:$0xff] }
 0x206   :  { %9372 = vst [vmem:[#allocation144_spill] sm:$0xff] %v6369_v4 }
 0x207   :  { %1998 = vadd.xlane.f32.xlu0 %v1997_v2 }
 0x208   :  { %v6348_v58 = vpop.xlane.xlu0 %1560  ;;  %v6350_v53 = vpop.xlane.xlu1 %1401  ;;  %1623 = vadd.xlane.f32.xlu1 %v1622_v22  ;;  %v1755_v22 = vsub.f32 %v5777_v30, %v6353_v19 }
 0x20a   :  { %v1863_v30 = vmul.f32 %v1755_v22, %v1755_v22  ;;  %v6397_v22 = vmul.f32 0.020408163, %v6204_v49  ;;  %v9381_v49 = vld [vmem:[#allocation39_spill] sm:$0xff] }
 0x20b   :  { %2160 = vadd.xlane.f32.xlu0 %v2159_v1 }
 0x20c   :  { %v6357_v20 = vpop.xlane.xlu1 %1563  ;;  %v6359_v2 = vpop.xlane.xlu0 %1404  ;;  %2001 = vadd.xlane.f32.xlu1 %v2000_v12  ;;  %v1625_v12 = vsel %vm1306_vm1, %v6165_v7, 0.0  ;;  %9377 = vst [vmem:[#allocation147_spill] sm:$0xff] %v6397_v22  ;;  %v2003_v16 = vsel %vm1306_vm1, %v1863_v30, 0.0  ;;  %v1811_v30 = vsub.f32 %v9381_v49, %v6397_v22 }
 0x20e   :  { %v1919_v22 = vmul.f32 %v1811_v30, %v1811_v30  ;;  %v6446_v30 = vmul.f32 0.020408163, %v6245_v29  ;;  %v9393_v29 = vld [vmem:[#allocation46_spill] sm:$0xff] }
 0x20f   :  { %1464 = vadd.xlane.f32.xlu0 %v1463_v26  ;;  %v1756_v26 = vsub.f32 %v9374_v37, %v6369_v4  ;;  %v1917_v37 = vmul.f32 %v1809_v38, %v1809_v38  ;;  %v6403_v4 = vmul.f32 0.020408163, %v6206_v17  ;;  %v6414_v38 = vmul.f32 0.020408163, %v6215_v6  ;;  %v9385_v6 = vld [vmem:[#allocation42_spill] sm:$0xff] }
 0x210   :  { %v6372_v55 = vpop.xlane.xlu0 %1566  ;;  %v6374_v1 = vpop.xlane.xlu1 %1407  ;;  %2163 = vadd.xlane.f32.xlu1 %v2162_v13  ;;  %v1466_v13 = vsel %vm1306_vm1, %v6176_v45, 0.0  ;;  %v9380_v45 = vld [vmem:[#allocation128_spill] sm:$0xff]  ;;  %v1865_v17 = vmul.f32 %v1757_v42, %v1757_v42  ;;  %9390 = vst [vmem:[#allocation153_spill] sm:$0xff] %v6446_v30 }
 0x211   :  { %9379 = vst [vmem:[#allocation148_spill] sm:$0xff] %v6403_v4  ;;  %v1628_v7 = vsel %vm1306_vm1, %v9380_v45, 0.0  ;;  %9382 = vst [vmem:[#allocation149_spill] sm:$0xff] %v6414_v38  ;;  %v1759_v49 = vsub.f32 %v9385_v6, %v6414_v38 }
 0x212   :  { %v2009_v42 = vsel %vm1306_vm1, %v1865_v17, 0.0  ;;  %v2171_v17 = vsel %vm1306_vm1, %v1919_v22, 0.0  ;;  %v6462_v22 = vmul.f32 0.020408163, %v6252_v25  ;;  %v9397_v25 = vld [vmem:[#allocation47_spill] sm:$0xff] }
 0x213   :  { %1626 = vadd.xlane.f32.xlu0 %v1625_v12  ;;  %v1810_v12 = vsub.f32 %v9378_v54, %v6386_v63  ;;  %v2165_v54 = vsel %vm1306_vm1, %v1917_v37, 0.0  ;;  %v6430_v37 = vmul.f32 0.020408163, %v6228_v24  ;;  %v9389_v24 = vld [vmem:[#allocation43_spill] sm:$0xff] }
 0x214   :  { %v6390_v19 = vpop.xlane.xlu1 %1569  ;;  %v6392_v62 = vpop.xlane.xlu0 %1410  ;;  %1467 = vadd.xlane.f32.xlu1 %v1466_v13  ;;  %v1864_v13 = vmul.f32 %v1756_v26, %v1756_v26  ;;  %9394 = vst [vmem:[#allocation155_spill] sm:$0xff] %v6462_v22 }
 0x215   :  { %v1918_v45 = vmul.f32 %v1810_v12, %v1810_v12  ;;  %9386 = vst [vmem:[#allocation151_spill] sm:$0xff] %v6430_v37  ;;  %v1813_v6 = vsub.f32 %v9389_v24, %v6430_v37  ;;  %v1761_v24 = vsub.f32 %v9393_v29, %v6446_v30  ;;  %v1815_v30 = vsub.f32 %v9397_v25, %v6462_v22 }
 0x216   :  { %v2006_v26 = vsel %vm1306_vm1, %v1864_v13, 0.0  ;;  %v6436_v13 = vmul.f32 0.020408163, %v6230_v21  ;;  %v9391_v21 = vld [vmem:[#allocation44_spill] sm:$0xff] }
 0x217   :  { %2004 = vadd.xlane.f32.xlu0 %v2003_v16  ;;  %v9383_v16 = vld [vmem:[#allocation40_spill] sm:$0xff]  ;;  %v2168_v12 = vsel %vm1306_vm1, %v1918_v45, 0.0  ;;  %v6452_v45 = vmul.f32 0.020408163, %v6243_v27  ;;  %v1921_v37 = vmul.f32 %v1813_v6, %v1813_v6  ;;  %v9395_v27 = vld [vmem:[#allocation45_spill] sm:$0xff] }
 0x218   :  { %v6407_v11 = vpop.xlane.xlu0 %1572  ;;  %v6409_v31 = vpop.xlane.xlu1 %1413  ;;  %1629 = vadd.xlane.f32.xlu1 %v1628_v7  ;;  %v1758_v63 = vsub.f32 %v9383_v16, %v6403_v4  ;;  %9388 = vst [vmem:[#allocation152_spill] sm:$0xff] %v6436_v13  ;;  %v6478_v6 = vmul.f32 0.020408163, %v6263_v33  ;;  %v9401_v33 = vld [vmem:[#allocation50_spill] sm:$0xff] }
 0x219   :  { %9392 = vst [vmem:[#allocation154_spill] sm:$0xff] %v6452_v45 }
 0x21a   :  { %v1866_v16 = vmul.f32 %v1758_v63, %v1758_v63  ;;  %9398 = vst [vmem:[#allocation157_spill] sm:$0xff] %v6478_v6  ;;  %v1763_v22 = vsub.f32 %v9401_v33, %v6478_v6 }
 0x21b   :  { %2166 = vadd.xlane.f32.xlu0 %v2165_v54  ;;  %v1812_v54 = vsub.f32 %v9387_v34, %v6420_v52  ;;  %v1867_v34 = vmul.f32 %v1759_v49, %v1759_v49 }
 0x21c   :  { %v6423_v7 = vpop.xlane.xlu1 %1575  ;;  %v6425_v8 = vpop.xlane.xlu0 %1416  ;;  %2007 = vadd.xlane.f32.xlu1 %v2006_v26  ;;  %v2012_v63 = vsel %vm1306_vm1, %v1866_v16, 0.0  ;;  %v6468_v16 = vmul.f32 0.020408163, %v6254_v23  ;;  %v9399_v23 = vld [vmem:[#allocation48_spill] sm:$0xff] }
 0x21d   :  { %v1920_v52 = vmul.f32 %v1812_v54, %v1812_v54  ;;  %v2015_v49 = vsel %vm1306_vm1, %v1867_v34, 0.0  ;;  %v2177_v34 = vsel %vm1306_vm1, %v1921_v37, 0.0  ;;  %v6494_v37 = vmul.f32 0.020408163, %v6276_v15  ;;  %v9405_v15 = vld [vmem:[#allocation51_spill] sm:$0xff] }
 0x21e   :  { %9396 = vst [vmem:[#allocation156_spill] sm:$0xff] %v6468_v16 }
 0x21f   :  { %2010 = vadd.xlane.f32.xlu0 %v2009_v42  ;;  %v1760_v42 = vsub.f32 %v9391_v21, %v6436_v13  ;;  %v2174_v54 = vsel %vm1306_vm1, %v1920_v52, 0.0  ;;  %v6484_v52 = vmul.f32 0.020408163, %v6261_v48  ;;  %9402 = vst [vmem:[#allocation159_spill] sm:$0xff] %v6494_v37  ;;  %v9403_v48 = vld [vmem:[#allocation49_spill] sm:$0xff]  ;;  %v1817_v6 = vsub.f32 %v9405_v15, %v6494_v37 }
 0x220   :  { %v6439_v26 = vpop.xlane.xlu0 %1578  ;;  %v6441_v4 = vpop.xlane.xlu1 %1419  ;;  %2169 = vadd.xlane.f32.xlu1 %v2168_v12 }
 0x221   :  { %v1868_v21 = vmul.f32 %v1760_v42, %v1760_v42  ;;  %9400 = vst [vmem:[#allocation158_spill] sm:$0xff] %v6484_v52 }
 0x223   :  { %2172 = vadd.xlane.f32.xlu0 %v2171_v17  ;;  %v1814_v17 = vsub.f32 %v9395_v27, %v6452_v45  ;;  %v1869_v27 = vmul.f32 %v1761_v24, %v1761_v24  ;;  %v2018_v42 = vsel %vm1306_vm1, %v1868_v21, 0.0  ;;  %v6500_v21 = vmul.f32 0.020408163, %v6278_v50  ;;  %v9407_v50 = vld [vmem:[#allocation52_spill] sm:$0xff] }
 0x224   :  { %v6455_v12 = vpop.xlane.xlu0 %1956  ;;  %v6457_v38 = vpop.xlane.xlu1 %1581  ;;  %2013 = vadd.xlane.f32.xlu1 %v2012_v63 }
 0x225   :  { %v2021_v24 = vsel %vm1306_vm1, %v1869_v27, 0.0  ;;  %9404 = vst [vmem:[#allocation160_spill] sm:$0xff] %v6500_v21 }
 0x227   :  { %2016 = vadd.xlane.f32.xlu0 %v2015_v49  ;;  %v1762_v49 = vsub.f32 %v9399_v23, %v6468_v16  ;;  %v1923_v23 = vmul.f32 %v1815_v30, %v1815_v30  ;;  %v6510_v30 = vmul.f32 0.020408163, %v6293_v41  ;;  %v9409_v41 = vld [vmem:[#allocation54_spill] sm:$0xff] }
 0x228   :  { %v6471_v63 = vpop.xlane.xlu0 %2118  ;;  %2175 = vadd.xlane.f32.xlu1 %v2174_v54  ;;  %v1922_v54 = vmul.f32 %v1814_v17, %v1814_v17 }
 0x229   :  { %v6473_v29 = vpop.xlane.xlu1 %1959  ;;  %9406 = vst [vmem:[#allocation161_spill] sm:$0xff] %v6510_v30  ;;  %v2183_v27 = vsel %vm1306_vm1, %v1923_v23, 0.0  ;;  %v1765_v37 = vsub.f32 %v9409_v41, %v6510_v30 }
 0x22a   :  { %v2180_v17 = vsel %vm1306_vm1, %v1922_v54, 0.0  ;;  %v6516_v54 = vmul.f32 0.020408163, %v6291_v18  ;;  %v9411_v18 = vld [vmem:[#allocation53_spill] sm:$0xff] }
 0x22b   :  { %2178 = vadd.xlane.f32.xlu0 %v2177_v34  ;;  %v1816_v34 = vsub.f32 %v9403_v48, %v6484_v52  ;;  %v1871_v48 = vmul.f32 %v1763_v22, %v1763_v22  ;;  %v6526_v22 = vmul.f32 0.020408163, %v6300_v28  ;;  %v9413_v28 = vld [vmem:[#allocation55_spill] sm:$0xff] }
 0x22c   :  { %v6487_v45 = vpop.xlane.xlu0 %1422  ;;  %2019 = vadd.xlane.f32.xlu1 %v2018_v42  ;;  %v1870_v42 = vmul.f32 %v1762_v49, %v1762_v49  ;;  %9408 = vst [vmem:[#allocation162_spill] sm:$0xff] %v6516_v54 }
 0x22d   :  { %v6489_v25 = vpop.xlane.xlu1 %2121  ;;  %9410 = vst [vmem:[#allocation163_spill] sm:$0xff] %v6526_v22  ;;  %v2027_v23 = vsel %vm1306_vm1, %v1871_v48, 0.0  ;;  %v1819_v30 = vsub.f32 %v9413_v28, %v6526_v22 }
 0x22e   :  { %v2024_v49 = vsel %vm1306_vm1, %v1870_v42, 0.0  ;;  %v6532_v42 = vmul.f32 0.020408163, %v6302_v39  ;;  %v9415_v39 = vld [vmem:[#allocation56_spill] sm:$0xff] }
 0x22f   :  { %2022 = vadd.xlane.f32.xlu0 %v2021_v24  ;;  %v1764_v24 = vsub.f32 %v9407_v50, %v6500_v21  ;;  %v1925_v50 = vmul.f32 %v1817_v6, %v1817_v6  ;;  %v6542_v6 = vmul.f32 0.020408163, %v6311_v47  ;;  %v9417_v47 = vld [vmem:[#allocation58_spill] sm:$0xff] }
 0x230   :  { %v6503_v16 = vpop.xlane.xlu0 %1584  ;;  %2181 = vadd.xlane.f32.xlu1 %v2180_v17  ;;  %v1924_v17 = vmul.f32 %v1816_v34, %v1816_v34  ;;  %9412 = vst [vmem:[#allocation164_spill] sm:$0xff] %v6532_v42 }
 0x231   :  { %v6505_v33 = vpop.xlane.xlu1 %1425  ;;  %9414 = vst [vmem:[#allocation165_spill] sm:$0xff] %v6542_v6  ;;  %v2189_v48 = vsel %vm1306_vm1, %v1925_v50, 0.0  ;;  %v1767_v22 = vsub.f32 %v9417_v47, %v6542_v6 }
 0x232   :  { %v2186_v34 = vsel %vm1306_vm1, %v1924_v17, 0.0  ;;  %v6548_v17 = vmul.f32 0.020408163, %v6309_v3  ;;  %v9419_v3 = vld [vmem:[#allocation57_spill] sm:$0xff] }
 0x233   :  { %2184 = vadd.xlane.f32.xlu0 %v2183_v27  ;;  %v1818_v27 = vsub.f32 %v9411_v18, %v6516_v54  ;;  %v1873_v18 = vmul.f32 %v1765_v37, %v1765_v37  ;;  %v6558_v37 = vmul.f32 0.020408163, %v6324_v10  ;;  %v9421_v10 = vld [vmem:[#allocation59_spill] sm:$0xff] }
 0x234   :  { %v6519_v52 = vpop.xlane.xlu0 %1962  ;;  %2025 = vadd.xlane.f32.xlu1 %v2024_v49  ;;  %v1872_v49 = vmul.f32 %v1764_v24, %v1764_v24  ;;  %9416 = vst [vmem:[#allocation166_spill] sm:$0xff] %v6548_v17 }
 0x235   :  { %v6521_v15 = vpop.xlane.xlu1 %1587  ;;  %9418 = vst [vmem:[#allocation167_spill] sm:$0xff] %v6558_v37  ;;  %v2033_v50 = vsel %vm1306_vm1, %v1873_v18, 0.0  ;;  %v1821_v6 = vsub.f32 %v9421_v10, %v6558_v37 }
 0x236   :  { %v2030_v24 = vsel %vm1306_vm1, %v1872_v49, 0.0  ;;  %v6564_v49 = vmul.f32 0.020408163, %v6326_v40  ;;  %v9423_v40 = vld [vmem:[#allocation60_spill] sm:$0xff] }
 0x237   :  { %2028 = vadd.xlane.f32.xlu0 %v2027_v23  ;;  %v1766_v23 = vsub.f32 %v9415_v39, %v6532_v42  ;;  %v1927_v39 = vmul.f32 %v1819_v30, %v1819_v30  ;;  %v6574_v30 = vmul.f32 0.020408163, %v6341_v59  ;;  %v9425_v59 = vld [vmem:[#allocation62_spill] sm:$0xff] }
 0x238   :  { %v6535_v21 = vpop.xlane.xlu0 %2124  ;;  %2187 = vadd.xlane.f32.xlu1 %v2186_v34  ;;  %v1926_v34 = vmul.f32 %v1818_v27, %v1818_v27  ;;  %9420 = vst [vmem:[#allocation168_spill] sm:$0xff] %v6564_v49 }
 0x239   :  { %v6537_v41 = vpop.xlane.xlu1 %1965  ;;  %9422 = vst [vmem:[#allocation169_spill] sm:$0xff] %v6574_v30  ;;  %v2195_v18 = vsel %vm1306_vm1, %v1927_v39, 0.0  ;;  %v1769_v37 = vsub.f32 %v9425_v59, %v6574_v30 }
 0x23a   :  { %v2192_v27 = vsel %vm1306_vm1, %v1926_v34, 0.0  ;;  %v6580_v34 = vmul.f32 0.020408163, %v6339_v14  ;;  %v9427_v14 = vld [vmem:[#allocation61_spill] sm:$0xff] }
 0x23b   :  { %2190 = vadd.xlane.f32.xlu0 %v2189_v48  ;;  %v1820_v48 = vsub.f32 %v9419_v3, %v6548_v17  ;;  %v1875_v3 = vmul.f32 %v1767_v22, %v1767_v22  ;;  %v6590_v22 = vmul.f32 0.020408163, %v6348_v58  ;;  %v9429_v58 = vld [vmem:[#allocation63_spill] sm:$0xff] }
 0x23c   :  { %v6551_v54 = vpop.xlane.xlu0 %1428  ;;  %2031 = vadd.xlane.f32.xlu1 %v2030_v24  ;;  %v1874_v24 = vmul.f32 %v1766_v23, %v1766_v23  ;;  %9424 = vst [vmem:[#allocation170_spill] sm:$0xff] %v6580_v34 }
 0x23d   :  { %v6553_v28 = vpop.xlane.xlu1 %2127  ;;  %9426 = vst [vmem:[#allocation171_spill] sm:$0xff] %v6590_v22  ;;  %v2039_v39 = vsel %vm1306_vm1, %v1875_v3, 0.0  ;;  %v1823_v30 = vsub.f32 %v9429_v58, %v6590_v22 }
 0x23e   :  { %v2036_v23 = vsel %vm1306_vm1, %v1874_v24, 0.0  ;;  %v6596_v24 = vmul.f32 0.020408163, %v6350_v53  ;;  %v9431_v53 = vld [vmem:[#allocation64_spill] sm:$0xff] }
 0x23f   :  { %2034 = vadd.xlane.f32.xlu0 %v2033_v50  ;;  %v1768_v50 = vsub.f32 %v9423_v40, %v6564_v49  ;;  %v1929_v40 = vmul.f32 %v1821_v6, %v1821_v6  ;;  %v6606_v6 = vmul.f32 0.020408163, %v6359_v2  ;;  %v9433_v2 = vld [vmem:[#allocation66_spill] sm:$0xff] }
 0x240   :  { %v6567_v42 = vpop.xlane.xlu0 %1590  ;;  %2193 = vadd.xlane.f32.xlu1 %v2192_v27  ;;  %v1928_v27 = vmul.f32 %v1820_v48, %v1820_v48  ;;  %9428 = vst [vmem:[#allocation172_spill] sm:$0xff] %v6596_v24 }
 0x241   :  { %v6569_v47 = vpop.xlane.xlu1 %1431  ;;  %9430 = vst [vmem:[#allocation173_spill] sm:$0xff] %v6606_v6  ;;  %v2201_v3 = vsel %vm1306_vm1, %v1929_v40, 0.0  ;;  %v1771_v22 = vsub.f32 %v9433_v2, %v6606_v6 }
 0x242   :  { %v2198_v48 = vsel %vm1306_vm1, %v1928_v27, 0.0  ;;  %v6612_v27 = vmul.f32 0.020408163, %v6357_v20  ;;  %v9435_v20 = vld [vmem:[#allocation65_spill] sm:$0xff] }
 0x243   :  { %2196 = vadd.xlane.f32.xlu0 %v2195_v18  ;;  %v1822_v18 = vsub.f32 %v9427_v14, %v6580_v34  ;;  %v1877_v14 = vmul.f32 %v1769_v37, %v1769_v37  ;;  %v6622_v37 = vmul.f32 0.020408163, %v6372_v55  ;;  %v9437_v55 = vld [vmem:[#allocation67_spill] sm:$0xff] }
 0x244   :  { %v6583_v17 = vpop.xlane.xlu0 %1968  ;;  %2037 = vadd.xlane.f32.xlu1 %v2036_v23  ;;  %v1876_v23 = vmul.f32 %v1768_v50, %v1768_v50  ;;  %9432 = vst [vmem:[#allocation174_spill] sm:$0xff] %v6612_v27 }
 0x245   :  { %v6585_v10 = vpop.xlane.xlu1 %1593  ;;  %9434 = vst [vmem:[#allocation175_spill] sm:$0xff] %v6622_v37  ;;  %v2045_v40 = vsel %vm1306_vm1, %v1877_v14, 0.0  ;;  %v1825_v6 = vsub.f32 %v9437_v55, %v6622_v37 }
 0x246   :  { %v2042_v50 = vsel %vm1306_vm1, %v1876_v23, 0.0  ;;  %v6628_v23 = vmul.f32 0.020408163, %v6374_v1  ;;  %v9439_v1 = vld [vmem:[#allocation68_spill] sm:$0xff] }
 0x247   :  { %2040 = vadd.xlane.f32.xlu0 %v2039_v39  ;;  %v1770_v39 = vsub.f32 %v9431_v53, %v6596_v24  ;;  %v1931_v53 = vmul.f32 %v1823_v30, %v1823_v30  ;;  %v6638_v30 = vmul.f32 0.020408163, %v6392_v62  ;;  %v9441_v62 = vld [vmem:[#allocation70_spill] sm:$0xff] }
 0x248   :  { %v6599_v49 = vpop.xlane.xlu0 %2130  ;;  %2199 = vadd.xlane.f32.xlu1 %v2198_v48  ;;  %v1930_v48 = vmul.f32 %v1822_v18, %v1822_v18  ;;  %9436 = vst [vmem:[#allocation176_spill] sm:$0xff] %v6628_v23 }
 0x249   :  { %v6601_v59 = vpop.xlane.xlu1 %1971  ;;  %9438 = vst [vmem:[#allocation177_spill] sm:$0xff] %v6638_v30  ;;  %v2207_v14 = vsel %vm1306_vm1, %v1931_v53, 0.0  ;;  %v1773_v37 = vsub.f32 %v9441_v62, %v6638_v30 }
 0x24a   :  { %v2204_v18 = vsel %vm1306_vm1, %v1930_v48, 0.0  ;;  %v6644_v48 = vmul.f32 0.020408163, %v6390_v19  ;;  %v9443_v19 = vld [vmem:[#allocation69_spill] sm:$0xff] }
 0x24b   :  { %2202 = vadd.xlane.f32.xlu0 %v2201_v3  ;;  %v1824_v3 = vsub.f32 %v9435_v20, %v6612_v27  ;;  %v1879_v20 = vmul.f32 %v1771_v22, %v1771_v22  ;;  %v6654_v22 = vmul.f32 0.020408163, %v6407_v11  ;;  %v9445_v11 = vld [vmem:[#allocation71_spill] sm:$0xff] }
 0x24c   :  { %v6615_v34 = vpop.xlane.xlu0 %1434  ;;  %2043 = vadd.xlane.f32.xlu1 %v2042_v50  ;;  %v1878_v50 = vmul.f32 %v1770_v39, %v1770_v39  ;;  %9440 = vst [vmem:[#allocation178_spill] sm:$0xff] %v6644_v48 }
 0x24d   :  { %v6617_v58 = vpop.xlane.xlu1 %2133  ;;  %9442 = vst [vmem:[#allocation179_spill] sm:$0xff] %v6654_v22  ;;  %v2051_v53 = vsel %vm1306_vm1, %v1879_v20, 0.0  ;;  %v1827_v30 = vsub.f32 %v9445_v11, %v6654_v22 }
 0x24e   :  { %v2048_v39 = vsel %vm1306_vm1, %v1878_v50, 0.0  ;;  %v6660_v50 = vmul.f32 0.020408163, %v6409_v31  ;;  %v9447_v31 = vld [vmem:[#allocation72_spill] sm:$0xff] }
 0x24f   :  { %2046 = vadd.xlane.f32.xlu0 %v2045_v40  ;;  %v1772_v40 = vsub.f32 %v9439_v1, %v6628_v23  ;;  %v1933_v1 = vmul.f32 %v1825_v6, %v1825_v6  ;;  %v6670_v6 = vmul.f32 0.020408163, %v6425_v8  ;;  %v9449_v8 = vld [vmem:[#allocation75_spill] sm:$0xff] }
 0x250   :  { %v6631_v24 = vpop.xlane.xlu0 %1596  ;;  %2205 = vadd.xlane.f32.xlu1 %v2204_v18  ;;  %v1932_v18 = vmul.f32 %v1824_v3, %v1824_v3  ;;  %9444 = vst [vmem:[#allocation180_spill] sm:$0xff] %v6660_v50 }
 0x251   :  { %v6633_v2 = vpop.xlane.xlu1 %1437  ;;  %9446 = vst [vmem:[#allocation181_spill] sm:$0xff] %v6670_v6  ;;  %v2213_v20 = vsel %vm1306_vm1, %v1933_v1, 0.0  ;;  %v1775_v22 = vsub.f32 %v9449_v8, %v6670_v6 }
 0x252   :  { %v2210_v3 = vsel %vm1306_vm1, %v1932_v18, 0.0  ;;  %v6676_v18 = vmul.f32 0.020408163, %v6423_v7  ;;  %v9451_v7 = vld [vmem:[#allocation73_spill] sm:$0xff] }
 0x253   :  { %2208 = vadd.xlane.f32.xlu0 %v2207_v14  ;;  %v1826_v14 = vsub.f32 %v9443_v19, %v6644_v48  ;;  %v1881_v19 = vmul.f32 %v1773_v37, %v1773_v37  ;;  %v6686_v37 = vmul.f32 0.020408163, %v6439_v26  ;;  %v9453_v26 = vld [vmem:[#allocation76_spill] sm:$0xff] }
 0x254   :  { %v6647_v27 = vpop.xlane.xlu0 %1974  ;;  %2049 = vadd.xlane.f32.xlu1 %v2048_v39  ;;  %v1880_v39 = vmul.f32 %v1772_v40, %v1772_v40  ;;  %9448 = vst [vmem:[#allocation182_spill] sm:$0xff] %v6676_v18 }
 0x255   :  { %v6649_v55 = vpop.xlane.xlu1 %1599  ;;  %9450 = vst [vmem:[#allocation183_spill] sm:$0xff] %v6686_v37  ;;  %v2057_v1 = vsel %vm1306_vm1, %v1881_v19, 0.0  ;;  %v1829_v6 = vsub.f32 %v9453_v26, %v6686_v37 }
 0x256   :  { %v2054_v40 = vsel %vm1306_vm1, %v1880_v39, 0.0  ;;  %v6692_v39 = vmul.f32 0.020408163, %v6441_v4  ;;  %v9455_v4 = vld [vmem:[#allocation77_spill] sm:$0xff] }
 0x257   :  { %2052 = vadd.xlane.f32.xlu0 %v2051_v53  ;;  %v1774_v53 = vsub.f32 %v9447_v31, %v6660_v50  ;;  %v1935_v31 = vmul.f32 %v1827_v30, %v1827_v30  ;;  %v6702_v30 = vmul.f32 0.020408163, %v6487_v45  ;;  %v9457_v45 = vld [vmem:[#allocation82_spill] sm:$0xff] }
 0x258   :  { %v6663_v23 = vpop.xlane.xlu0 %2136  ;;  %2211 = vadd.xlane.f32.xlu1 %v2210_v3  ;;  %v1934_v3 = vmul.f32 %v1826_v14, %v1826_v14  ;;  %9452 = vst [vmem:[#allocation184_spill] sm:$0xff] %v6692_v39 }
 0x259   :  { %v6665_v62 = vpop.xlane.xlu1 %1977  ;;  %9454 = vst [vmem:[#allocation185_spill] sm:$0xff] %v6702_v30  ;;  %v2219_v19 = vsel %vm1306_vm1, %v1935_v31, 0.0  ;;  %v1777_v37 = vsub.f32 %v9457_v45, %v6702_v30 }
 0x25a   :  { %v2216_v14 = vsel %vm1306_vm1, %v1934_v3, 0.0  ;;  %v6708_v3 = vmul.f32 0.020408163, %v6457_v38  ;;  %v9459_v38 = vld [vmem:[#allocation79_spill] sm:$0xff] }
 0x25b   :  { %2214 = vadd.xlane.f32.xlu0 %v2213_v20  ;;  %v1828_v20 = vsub.f32 %v9451_v7, %v6676_v18  ;;  %v1883_v7 = vmul.f32 %v1775_v22, %v1775_v22  ;;  %v6718_v22 = vmul.f32 0.020408163, %v6503_v16  ;;  %v9461_v16 = vld [vmem:[#allocation83_spill] sm:$0xff] }
 0x25c   :  { %v6679_v48 = vpop.xlane.xlu0 %1440  ;;  %2055 = vadd.xlane.f32.xlu1 %v2054_v40  ;;  %v1882_v40 = vmul.f32 %v1774_v53, %v1774_v53  ;;  %9456 = vst [vmem:[#allocation186_spill] sm:$0xff] %v6708_v3 }
 0x25d   :  { %v6681_v11 = vpop.xlane.xlu1 %2139  ;;  %9458 = vst [vmem:[#allocation187_spill] sm:$0xff] %v6718_v22  ;;  %v2063_v31 = vsel %vm1306_vm1, %v1883_v7, 0.0  ;;  %v1831_v30 = vsub.f32 %v9461_v16, %v6718_v22  ;;  %v1885_v7 = vmul.f32 %v1777_v37, %v1777_v37  ;;  %v9464_v37 = vld [vmem:[#allocation85_spill] sm:$0xff] }
 0x25e   :  { %v2060_v53 = vsel %vm1306_vm1, %v1882_v40, 0.0  ;;  %v6724_v40 = vmul.f32 0.020408163, %v6505_v33  ;;  %v6737_v33 = vmul.f32 0.020408163, %v6521_v15 }
 0x25f   :  { %2058 = vadd.xlane.f32.xlu0 %v2057_v1  ;;  %v1776_v1 = vsub.f32 %v9455_v4, %v6692_v39  ;;  %v1937_v4 = vmul.f32 %v1829_v6, %v1829_v6  ;;  %v2069_v16 = vsel %vm1306_vm1, %v1885_v7, 0.0  ;;  %v1939_v22 = vmul.f32 %v1831_v30, %v1831_v30 }
 0x260   :  { %v6695_v50 = vpop.xlane.xlu0 %1602  ;;  %2217 = vadd.xlane.f32.xlu1 %v2216_v14  ;;  %v1936_v14 = vmul.f32 %v1828_v20, %v1828_v20  ;;  %9460 = vst [vmem:[#allocation188_spill] sm:$0xff] %v6724_v40  ;;  %9463 = vst [vmem:[#allocation189_spill] sm:$0xff] %v6737_v33 }
 0x261   :  { %v6697_v8 = vpop.xlane.xlu1 %1443  ;;  %v2225_v6 = vsel %vm1306_vm1, %v1937_v4, 0.0  ;;  %v1832_v4 = vsub.f32 %v9464_v37, %v6737_v33 }
 0x262   :  { %v2222_v20 = vsel %vm1306_vm1, %v1936_v14, 0.0 }
 0x263   :  { %2220 = vadd.xlane.f32.xlu0 %v2219_v19  ;;  %v1830_v19 = vsub.f32 %v9459_v38, %v6708_v3  ;;  %v9462_v38 = vld [vmem:[#allocation84_spill] sm:$0xff]  ;;  %v1940_v7 = vmul.f32 %v1832_v4, %v1832_v4 }
 0x264   :  { %v6711_v18 = vpop.xlane.xlu0 %1980  ;;  %2061 = vadd.xlane.f32.xlu1 %v2060_v53  ;;  %v1884_v53 = vmul.f32 %v1776_v1, %v1776_v1  ;;  %v1778_v3 = vsub.f32 %v9462_v38, %v6724_v40 }
 0x265   :  { %v6713_v26 = vpop.xlane.xlu1 %1605  ;;  %v1938_v14 = vmul.f32 %v1830_v19, %v1830_v19  ;;  %v2279_v19 = vmul.f32 0.020408163, %v6455_v12  ;;  %v2234_v12 = vsel %vm1306_vm1, %v1940_v7, 0.0  ;;  %v2387_v7 = vld [vmem:[%s8930_s3] sm:$0xff] }
 0x266   :  { %v2066_v1 = vsel %vm1306_vm1, %v1884_v53, 0.0  ;;  %v1886_v15 = vmul.f32 %v1778_v3, %v1778_v3 }
 0x267   :  { %2064 = vadd.xlane.f32.xlu0 %v2063_v31  ;;  %v2228_v38 = vsel %vm1306_vm1, %v1938_v14, 0.0 }
 0x268   :  { %v6727_v39 = vpop.xlane.xlu0 %2142  ;;  %2223 = vadd.xlane.f32.xlu1 %v2222_v20  ;;  %v2072_v30 = vsel %vm1306_vm1, %v1886_v15, 0.0 }
 0x269   :  { %v6729_v45 = vpop.xlane.xlu1 %1983 }
 0x26b   :  { %2226 = vadd.xlane.f32.xlu0 %v2225_v6  ;;  %v2333_v6 = vmul.f32 0.020408163, %v6471_v63 }
 0x26c   :  { %v6740_v31 = vpop.xlane.xlu0 %1446  ;;  %2067 = vadd.xlane.f32.xlu1 %v2066_v1  ;;  %v2231_v1 = vsel %vm1306_vm1, %v1939_v22, 0.0 }
 0x26d   :  { %v6742_v20 = vpop.xlane.xlu1 %2145  ;;  %v2549_v14 = vadd.f32 1e-05, %v2333_v6 }
 0x26f   :  { %2070 = vadd.xlane.f32.xlu0 %v2069_v16  ;;  %v2495_v16 = vadd.f32 1e-05, %v2279_v19 }
 0x270   :  { %v6748_v40 = vpop.xlane.xlu0 %1608  ;;  %2229 = vadd.xlane.f32.xlu1 %v2228_v38  ;;  %v2280_v38 = vmul.f32 0.020408163, %v6473_v29 }
 0x271   :  { %v6751_v53 = vpop.xlane.xlu1 %1449  ;;  %4896 = vrsqrt.f32 %v2495_v16  ;;  %v2441_v16 = vld [vmem:[%s8930_s3 + $0x1b0] sm:$0xff] }
 0x272   :  { %4898 = vrsqrt.f32 %v2549_v14  ;;  %v2496_v22 = vadd.f32 1e-05, %v2280_v38 }
 0x273   :  { %2232 = vadd.xlane.f32.xlu0 %v2231_v1 }
 0x274   :  { %v6756_v37 = vpop.xlane.xlu0 %1986  ;;  %2073 = vadd.xlane.f32.xlu1 %v2072_v30  ;;  %4900 = vrsqrt.f32 %v2496_v22 }
 0x275   :  { %v6758_v3 = vpop.xlane.xlu1 %1611 }
 0x278   :  { %v6762_v33 = vpop.xlane.xlu0 %2148  ;;  %2235 = vadd.xlane.f32.xlu1 %v2234_v12 }
 0x279   :  { %v6764_v63 = vpop.xlane.xlu1 %1989 }
 0x27a   :  { %9465 = vst [vmem:[#allocation190_spill] sm:$0xff] %v6764_v63 }
 0x27b   :  { %v4897_v29 = vpop.eup %4896 }
 0x27c   :  { %v6766_v4 = vpop.xlane.xlu0 %1452  ;;  %v4899_v1 = vpop.eup %4898  ;;  %v6784_v38 = vmul.f32 %v4897_v29, %v2387_v7 }
 0x27d   :  { %v6768_v15 = vpop.xlane.xlu1 %2151  ;;  %v6786_v12 = vmul.f32 %v4899_v1, %v2441_v16 }
 0x27e   :  { %9466 = vst [vmem:[#allocation191_spill] sm:$0xff] %v6768_v15  ;;  %v4901_v22 = vpop.eup %4900 }
 0x27f   :  { %9468 = vst [vmem:[#allocation193_spill] sm:$0xff] %v6786_v12 }
 0x280   :  { %v6770_v19 = vpop.xlane.xlu0 %1614 }
 0x281   :  { %v6772_v6 = vpop.xlane.xlu1 %1455 }
 0x284   :  { %v6774_v30 = vpop.xlane.xlu0 %1992 }
 0x285   :  { %9467 = vst [vmem:[#allocation192_spill] sm:$0xff] %v6774_v30  ;;  %v6782_v14 = vpop.xlane.xlu1 %1617  ;;  %v2388_v30 = vld [vmem:[%s8930_s3 + $0x8] sm:$0xff] }
 0x286   :  { %v2712_v15 = vmul.f32 %v4901_v22, %v2388_v30 }
 0x288   :  { %v6788_v13 = vpop.xlane.xlu0 %2154 }
 0x289   :  { %9469 = vst [vmem:[#allocation194_spill] sm:$0xff] %v6788_v13  ;;  %v6793_v46 = vpop.xlane.xlu1 %1995  ;;  %3145 = vperm.xlu0 %4732, %v6784_v38   ;;  %3415 = vperm.xlu1 %4733, %v6786_v12   ;;  %v6814_v12 = vmul.f32 0.020408163, %v6551_v54  ;;  %v6832_v54 = vmul.f32 0.020408163, %v6569_v47 }
 0x28a   :  { %9470 = vst [vmem:[#allocation195_spill] sm:$0xff] %v6793_v46 }
 0x28b   :  { %9479 = vst [vmem:[#allocation204_spill] sm:$0xff] %v6814_v12  ;;  %9487 = vst [vmem:[#allocation210_spill] sm:$0xff] %v6832_v54 }
 0x28c   :  { %v6797_v63 = vpop.xlane.xlu0 %1458 }
 0x28d   :  { %9471 = vst [vmem:[#allocation196_spill] sm:$0xff] %v6797_v63  ;;  %v6799_v29 = vpop.xlane.xlu1 %2157  ;;  %3150 = vperm.xlu1 %4733, %v2712_v15  }
 0x28e   :  { %9472 = vst [vmem:[#allocation197_spill] sm:$0xff] %v6799_v29  ;;  %v9482_v29 = vld [vmem:[#allocation87_spill] sm:$0xff] }
 0x290   :  { %v6801_v1 = vpop.xlane.xlu0 %1620 }
 0x291   :  { %9473 = vst [vmem:[#allocation198_spill] sm:$0xff] %v6801_v1  ;;  %v6803_v7 = vpop.xlane.xlu1 %1461  ;;  %v1779_v1 = vsub.f32 %v9482_v29, %v6814_v12 }
 0x292   :  { %9474 = vst [vmem:[#allocation199_spill] sm:$0xff] %v6803_v7  ;;  %v6823_v7 = vmul.f32 0.020408163, %v6567_v42  ;;  %v9490_v42 = vld [vmem:[#allocation91_spill] sm:$0xff] }
 0x293   :  { %v1887_v60 = vmul.f32 %v1779_v1, %v1779_v1  ;;  %v1780_v63 = vsub.f32 %v9490_v42, %v6832_v54  ;;  %v2334_v1 = vmul.f32 0.020408163, %v6489_v25  ;;  %v2281_v25 = vmul.f32 0.020408163, %v6519_v52  ;;  %v2442_v52 = vld [vmem:[%s8930_s3 + $0x1b8] sm:$0xff] }
 0x294   :  { %v6805_v16 = vpop.xlane.xlu0 %1998  ;;  %9483 = vst [vmem:[#allocation207_spill] sm:$0xff] %v6823_v7 }
 0x295   :  { %9475 = vst [vmem:[#allocation200_spill] sm:$0xff] %v6805_v16  ;;  %v6807_v13 = vpop.xlane.xlu1 %1623  ;;  %v2075_v29 = vsel %vm1306_vm1, %v1887_v60, 0.0  ;;  %v2550_v42 = vadd.f32 1e-05, %v2334_v1 }
 0x296   :  { %9476 = vst [vmem:[#allocation201_spill] sm:$0xff] %v6807_v13 }
 0x297   :  { %4902 = vrsqrt.f32 %v2550_v42 }
 0x298   :  { %v6809_v9 = vpop.xlane.xlu0 %2160 }
 0x299   :  { %9477 = vst [vmem:[#allocation202_spill] sm:$0xff] %v6809_v9  ;;  %v6811_v46 = vpop.xlane.xlu1 %2001  ;;  %v9486_v9 = vld [vmem:[#allocation88_spill] sm:$0xff] }
 0x29a   :  { %9478 = vst [vmem:[#allocation203_spill] sm:$0xff] %v6811_v46  ;;  %v1833_v46 = vsub.f32 %v9486_v9, %v6823_v7  ;;  %v9492_v9 = vld [vmem:[#allocation92_spill] sm:$0xff] }
 0x29c   :  { %v6816_v30 = vpop.xlane.xlu0 %1464  ;;  %v1941_v12 = vmul.f32 %v1833_v46, %v1833_v46  ;;  %v1888_v46 = vmul.f32 %v1780_v63, %v1780_v63  ;;  %v2497_v63 = vadd.f32 1e-05, %v2281_v25 }
 0x29d   :  { %9480 = vst [vmem:[#allocation205_spill] sm:$0xff] %v6816_v30  ;;  %v6818_v22 = vpop.xlane.xlu1 %2163 }
 0x29e   :  { %9481 = vst [vmem:[#allocation206_spill] sm:$0xff] %v6818_v22  ;;  %v2237_v7 = vsel %vm1306_vm1, %v1941_v12, 0.0  ;;  %4904 = vrsqrt.f32 %v2497_v63 }
 0x2a0   :  { %v6825_v16 = vpop.xlane.xlu0 %1626 }
 0x2a1   :  { %9484 = vst [vmem:[#allocation208_spill] sm:$0xff] %v6825_v16  ;;  %v6827_v13 = vpop.xlane.xlu1 %1467  ;;  %v6842_v16 = vmul.f32 0.020408163, %v6585_v10  ;;  %v2078_v10 = vsel %vm1306_vm1, %v1888_v46, 0.0  ;;  %v2282_v46 = vmul.f32 0.020408163, %v6537_v41 }
 0x2a2   :  { %9485 = vst [vmem:[#allocation209_spill] sm:$0xff] %v6827_v13  ;;  %v2820_v41 = vld [vmem:[%s8931_s4 + $0x8] sm:$0xff] }
 0x2a3   :  { %9491 = vst [vmem:[#allocation213_spill] sm:$0xff] %v6842_v16 }
 0x2a4   :  { %v6834_v30 = vpop.xlane.xlu0 %2004 }
 0x2a5   :  { %9488 = vst [vmem:[#allocation211_spill] sm:$0xff] %v6834_v30  ;;  %v6836_v22 = vpop.xlane.xlu1 %1629  ;;  %v1834_v30 = vsub.f32 %v9492_v9, %v6842_v16  ;;  %v4903_v9 = vpop.eup %4902 }
 0x2a6   :  { %9489 = vst [vmem:[#allocation212_spill] sm:$0xff] %v6836_v22  ;;  %v6874_v25 = vmul.f32 %v4903_v9, %v2442_v52 }
 0x2a7   :  { %v1942_v54 = vmul.f32 %v1834_v30, %v1834_v30 }
 0x2a8   :  { %2076 = vadd.xlane.f32.xlu0 %v2075_v29  ;;  %v6847_v47 = vpop.xlane.xlu0 %2166  ;;  %9496 = vst [vmem:[#allocation217_spill] sm:$0xff] %v6874_v25 }
 0x2a9   :  { %v6844_v13 = vpop.xlane.xlu1 %2007  ;;  %v2240_v12 = vsel %vm1306_vm1, %v1942_v54, 0.0  ;;  %v2498_v54 = vadd.f32 1e-05, %v2282_v46  ;;  %v4905_v46 = vpop.eup %4904 }
 0x2ac   :  { %2238 = vadd.xlane.f32.xlu0 %v2237_v7  ;;  %v6855_v29 = vpop.xlane.xlu0 %2010  ;;  %v2335_v7 = vmul.f32 0.020408163, %v6535_v21  ;;  %v9497_v21 = vld [vmem:[#allocation81_spill] sm:$0xff] }
 0x2ad   :  { %v6852_v60 = vpop.xlane.xlu1 %2169  ;;  %9493 = vst [vmem:[#allocation214_spill] sm:$0xff] %v6855_v29 }
 0x2ae   :  { %v2551_v30 = vadd.f32 1e-05, %v2335_v7  ;;  %v2819_v7 = vld [vmem:[%s8931_s4] sm:$0xff] }
 0x2b0   :  { %v6864_v1 = vpop.xlane.xlu0 %2172  ;;  %4906 = vrsqrt.f32 %v2551_v30 }
 0x2b1   :  { %2079 = vadd.xlane.f32.xlu1 %v2078_v10  ;;  %v6857_v22 = vpop.xlane.xlu1 %2013  ;;  %9494 = vst [vmem:[#allocation215_spill] sm:$0xff] %v6864_v1  ;;  %v9498_v1 = vld [vmem:[#allocation74_spill] sm:$0xff]  ;;  %4908 = vrsqrt.f32 %v2498_v54 }
 0x2b2   :  { %v2927_v63 = vmul.f32 %v6784_v38, %v9498_v1  ;;  %v2389_v38 = vld [vmem:[%s8930_s3 + $0x10] sm:$0xff]  ;;  %v2443_v54 = vld [vmem:[%s8930_s3 + $0x1c0] sm:$0xff] }
 0x2b3   :  { %v6895_v52 = vmul.f32 %v4905_v46, %v2389_v38 }
 0x2b4   :  { %v6869_v42 = vpop.xlane.xlu0 %2016 }
 0x2b5   :  { %2241 = vadd.xlane.f32.xlu1 %v2240_v12  ;;  %v6861_v16 = vpop.xlane.xlu1 %2175  ;;  %9495 = vst [vmem:[#allocation216_spill] sm:$0xff] %v6869_v42  ;;  %v2928_v12 = vmul.f32 %v2712_v15, %v9497_v21  ;;  %v3035_v15 = vsub.f32 %v2819_v7, %v2927_v63 }
 0x2b7   :  { %v3036_v30 = vsub.f32 %v2820_v41, %v2928_v12  ;;  %v2390_v41 = vld [vmem:[%s8930_s3 + $0x18] sm:$0xff] }
 0x2b8   :  { %v6888_v9 = vpop.xlane.xlu0 %2178 }
 0x2b9   :  { %v6867_v10 = vpop.xlane.xlu1 %2019  ;;  %9499 = vst [vmem:[#allocation81_spill] sm:$0xff] %v6888_v9 }
 0x2ba   :  { %v4907_v21 = vpop.eup %4906 }
 0x2bb   :  { %v6903_v12 = vmul.f32 %v4907_v21, %v2443_v54  ;;  %v4909_v63 = vpop.eup %4908  ;;  %v6918_v21 = vmul.f32 0.020408163, %v6615_v34 }
 0x2bc   :  { %v6897_v29 = vpop.xlane.xlu0 %2022 }
 0x2bd   :  { %v6885_v42 = vpop.xlane.xlu1 %2181  ;;  %9500 = vst [vmem:[#allocation74_spill] sm:$0xff] %v6897_v29  ;;  %9501 = vst [vmem:[#allocation218_spill] sm:$0xff] %v6903_v12  ;;  %v9509_v29 = vld [vmem:[#allocation94_spill] sm:$0xff] }
 0x2be   :  { %9506 = vst [vmem:[#allocation223_spill] sm:$0xff] %v6918_v21  ;;  %v1781_v9 = vsub.f32 %v9509_v29, %v6918_v21  ;;  %v2336_v29 = vmul.f32 0.020408163, %v6553_v28  ;;  %v6943_v21 = vmul.f32 0.020408163, %v6633_v2  ;;  %v9518_v28 = vld [vmem:[#allocation97_spill] sm:$0xff] }
 0x2c0   :  { %9514 = vst [vmem:[#allocation229_spill] sm:$0xff] %v6943_v21 }
 0x2c1   :  { %v6893_v1 = vpop.xlane.xlu1 %2025 }
 0x2c2   :  { %3420 = vperm.xlu0 %4732, %v6874_v25  }
 0x2c5   :  { %v6908_v7 = vpop.xlane.xlu1 %2187 }
 0x2c6   :  { %3798 = vperm.xlu0 %4732, %v3036_v30   ;;  %3793 = vperm.xlu1 %4733, %v3035_v15   ;;  %9502 = vst [vmem:[#allocation219_spill] sm:$0xff] %v6908_v7  ;;  %v6911_v30 = vpop.xlane.xlu0 %2184  ;;  %v2714_v15 = vmul.f32 %v4909_v63, %v2390_v41  ;;  %v9511_v63 = vld [vmem:[#allocation95_spill] sm:$0xff] }
 0x2c7   :  { %9503 = vst [vmem:[#allocation220_spill] sm:$0xff] %v6911_v30 }
 0x2c9   :  { %v6913_v46 = vpop.xlane.xlu1 %2031 }
 0x2ca   :  { %3155 = vperm.xlu1 %4733, %v6895_v52   ;;  %9504 = vst [vmem:[#allocation221_spill] sm:$0xff] %v6913_v46  ;;  %v6915_v38 = vpop.xlane.xlu0 %2028  ;;  %v1889_v46 = vmul.f32 %v1781_v9, %v1781_v9 }
 0x2cb   :  { %9505 = vst [vmem:[#allocation222_spill] sm:$0xff] %v6915_v38 }
 0x2cc   :  { %v2081_v34 = vsel %vm1306_vm1, %v1889_v46, 0.0 }
 0x2cd   :  { %v6920_v54 = vpop.xlane.xlu1 %2193 }
 0x2ce   :  { %3425 = vperm.xlu1 %4733, %v6903_v12   ;;  %9507 = vst [vmem:[#allocation224_spill] sm:$0xff] %v6920_v54  ;;  %v6922_v25 = vpop.xlane.xlu0 %2190  ;;  %v6927_v12 = vmul.f32 0.020408163, %v6631_v24 }
 0x2cf   :  { %9508 = vst [vmem:[#allocation225_spill] sm:$0xff] %v6922_v25 }
 0x2d0   :  { %9510 = vst [vmem:[#allocation226_spill] sm:$0xff] %v6927_v12  ;;  %v1835_v41 = vsub.f32 %v9511_v63, %v6927_v12  ;;  %v2552_v12 = vadd.f32 1e-05, %v2336_v29  ;;  %v9515_v63 = vld [vmem:[#allocation96_spill] sm:$0xff] }
 0x2d1   :  { %v6931_v30 = vpop.xlane.xlu1 %2037  ;;  %v1782_v46 = vsub.f32 %v9515_v63, %v6943_v21  ;;  %v2283_v63 = vmul.f32 0.020408163, %v6583_v17 }
 0x2d2   :  { %3160 = vperm.xlu1 %4733, %v2714_v15   ;;  %v6933_v38 = vpop.xlane.xlu0 %2034  ;;  %v1943_v7 = vmul.f32 %v1835_v41, %v1835_v41  ;;  %v6950_v41 = vmul.f32 0.020408163, %v6649_v55  ;;  %4910 = vrsqrt.f32 %v2552_v12 }
 0x2d3   :  { %9512 = vst [vmem:[#allocation227_spill] sm:$0xff] %v6933_v38 }
 0x2d4   :  { %v2243_v24 = vsel %vm1306_vm1, %v1943_v7, 0.0  ;;  %9516 = vst [vmem:[#allocation230_spill] sm:$0xff] %v6950_v41  ;;  %v1890_v7 = vmul.f32 %v1782_v46, %v1782_v46  ;;  %v2444_v46 = vld [vmem:[%s8930_s3 + $0x1c8] sm:$0xff] }
 0x2d5   :  { %v6936_v54 = vpop.xlane.xlu1 %2199 }
 0x2d6   :  { %v6938_v25 = vpop.xlane.xlu0 %2196  ;;  %v2084_v29 = vsel %vm1306_vm1, %v1890_v7, 0.0 }
 0x2d7   :  { %9513 = vst [vmem:[#allocation228_spill] sm:$0xff] %v6938_v25  ;;  %v1836_v25 = vsub.f32 %v9518_v28, %v6950_v41  ;;  %v2499_v41 = vadd.f32 1e-05, %v2283_v63  ;;  %v2337_v28 = vmul.f32 0.020408163, %v6599_v49 }
 0x2d8   :  { %v2284_v63 = vmul.f32 0.020408163, %v6601_v59  ;;  %v2391_v59 = vld [vmem:[%s8930_s3 + $0x20] sm:$0xff] }
 0x2d9   :  { %v6945_v9 = vpop.xlane.xlu1 %2043  ;;  %4912 = vrsqrt.f32 %v2499_v41 }
 0x2da   :  { %v2500_v49 = vadd.f32 1e-05, %v2284_v63 }
 0x2dd   :  { %v6956_v38 = vpop.xlane.xlu1 %2205 }
 0x2e1   :  { %v6962_v21 = vpop.xlane.xlu1 %2049 }
 0x2e5   :  { %2082 = vadd.xlane.f32.xlu0 %v2081_v34  ;;  %v6952_v34 = vpop.xlane.xlu0 %2040  ;;  %v6974_v17 = vpop.xlane.xlu1 %2211 }
 0x2e6   :  { %9517 = vst [vmem:[#allocation231_spill] sm:$0xff] %v6952_v34  ;;  %v4911_v34 = vpop.eup %4910 }
 0x2e7   :  { %v6971_v7 = vmul.f32 %v4911_v34, %v2444_v46  ;;  %v9525_v46 = vld [vmem:[#allocation86_spill] sm:$0xff] }
 0x2e9   :  { %2244 = vadd.xlane.f32.xlu0 %v2243_v24  ;;  %v6958_v2 = vpop.xlane.xlu0 %2202  ;;  %v1944_v24 = vmul.f32 %v1836_v25, %v1836_v25  ;;  %9521 = vst [vmem:[#allocation234_spill] sm:$0xff] %v6971_v7  ;;  %v9522_v25 = vld [vmem:[#allocation90_spill] sm:$0xff]  ;;  %v6983_v34 = vpop.xlane.xlu1 %2055 }
 0x2ea   :  { %9519 = vst [vmem:[#allocation232_spill] sm:$0xff] %v6958_v2 }
 0x2eb   :  { %v2246_v12 = vsel %vm1306_vm1, %v1944_v24, 0.0 }
 0x2ed   :  { %v6964_v55 = vpop.xlane.xlu0 %2046 }
 0x2ee   :  { %9520 = vst [vmem:[#allocation233_spill] sm:$0xff] %v6964_v55  ;;  %v2822_v55 = vld [vmem:[%s8931_s4 + $0x18] sm:$0xff] }
 0x2f1   :  { %v6979_v24 = vpop.xlane.xlu0 %2208 }
 0x2f2   :  { %9523 = vst [vmem:[#allocation90_spill] sm:$0xff] %v6979_v24  ;;  %v2821_v24 = vld [vmem:[%s8931_s4 + $0x10] sm:$0xff] }
 0x2f6   :  { %2085 = vadd.xlane.f32.xlu1 %v2084_v29  ;;  %v2930_v29 = vmul.f32 %v2714_v15, %v9522_v25  ;;  %v6985_v15 = vpop.xlane.xlu0 %2052  ;;  %v2929_v25 = vmul.f32 %v6895_v52, %v9525_v46  ;;  %v2445_v52 = vld [vmem:[%s8930_s3 + $0x1d0] sm:$0xff]  ;;  %v2392_v46 = vld [vmem:[%s8930_s3 + $0x28] sm:$0xff] }
 0x2f7   :  { %9524 = vst [vmem:[#allocation235_spill] sm:$0xff] %v6985_v15 }
 0x2f8   :  { %v3038_v2 = vsub.f32 %v2822_v55, %v2930_v29  ;;  %v3037_v41 = vsub.f32 %v2821_v24, %v2929_v25  ;;  %v7016_v25 = vmul.f32 0.020408163, %v6679_v48 }
 0x2fa   :  { %2247 = vadd.xlane.f32.xlu1 %v2246_v12  ;;  %v2553_v12 = vadd.f32 1e-05, %v2337_v28  ;;  %v4913_v28 = vpop.eup %4912  ;;  %9529 = vst [vmem:[#allocation238_spill] sm:$0xff] %v7016_v25 }
 0x2fb   :  { %v6999_v55 = vmul.f32 %v4913_v28, %v2391_v59 }
 0x2fc   :  { %4914 = vrsqrt.f32 %v2553_v12 }
 0x2fd   :  { %4916 = vrsqrt.f32 %v2500_v49 }
 0x2ff   :  { %3430 = vperm.xlu0 %4732, %v6971_v7   ;;  %v6992_v7 = vpop.xlane.xlu1 %2217 }
 0x303   :  { %3808 = vperm.xlu0 %4732, %v3038_v2   ;;  %v6997_v2 = vpop.xlane.xlu0 %2214  ;;  %v7005_v24 = vpop.xlane.xlu1 %2061 }
 0x304   :  { %9526 = vst [vmem:[#allocation86_spill] sm:$0xff] %v6997_v2 }
 0x306   :  { %v4915_v29 = vpop.eup %4914 }
 0x307   :  { %v7007_v12 = vpop.xlane.xlu0 %2058  ;;  %v7009_v63 = vmul.f32 %v4915_v29, %v2445_v52  ;;  %v4917_v49 = vpop.eup %4916  ;;  %v7025_v52 = vmul.f32 0.020408163, %v6695_v50 }
 0x308   :  { %9527 = vst [vmem:[#allocation236_spill] sm:$0xff] %v7007_v12  ;;  %v7018_v28 = vpop.xlane.xlu1 %2223  ;;  %v9532_v12 = vld [vmem:[#allocation99_spill] sm:$0xff] }
 0x309   :  { %9528 = vst [vmem:[#allocation237_spill] sm:$0xff] %v7009_v63  ;;  %9530 = vst [vmem:[#allocation239_spill] sm:$0xff] %v7018_v28  ;;  %v1783_v29 = vsub.f32 %v9532_v12, %v7016_v25  ;;  %v2338_v12 = vmul.f32 0.020408163, %v6617_v58  ;;  %v7054_v58 = vmul.f32 0.020408163, %v6713_v26 }
 0x30a   :  { %9533 = vst [vmem:[#allocation241_spill] sm:$0xff] %v7025_v52 }
 0x30b   :  { %3803 = vperm.xlu1 %4733, %v3037_v41   ;;  %v2716_v41 = vmul.f32 %v4917_v49, %v2392_v46  ;;  %v7020_v59 = vpop.xlane.xlu0 %2220  ;;  %v1891_v48 = vmul.f32 %v1783_v29, %v1783_v29  ;;  %v7045_v29 = vmul.f32 0.020408163, %v6697_v8  ;;  %9541 = vst [vmem:[#allocation249_spill] sm:$0xff] %v7054_v58 }
 0x30c   :  { %9531 = vst [vmem:[#allocation240_spill] sm:$0xff] %v7020_v59  ;;  %v7027_v2 = vpop.xlane.xlu1 %2067 }
 0x30d   :  { %9534 = vst [vmem:[#allocation242_spill] sm:$0xff] %v7027_v2  ;;  %v2087_v49 = vsel %vm1306_vm1, %v1891_v48, 0.0  ;;  %v2554_v2 = vadd.f32 1e-05, %v2338_v12  ;;  %9538 = vst [vmem:[#allocation246_spill] sm:$0xff] %v7045_v29  ;;  %v1838_v12 = vsub.f32 %v6051_v32, %v7054_v58 }
 0x30f   :  { %3165 = vperm.xlu1 %4733, %v6999_v55   ;;  %v7031_v15 = vpop.xlane.xlu0 %2064  ;;  %4918 = vrsqrt.f32 %v2554_v2  ;;  %v1946_v26 = vmul.f32 %v1838_v12, %v1838_v12  ;;  %v9549_v12 = vld [vmem:[#allocation5_spill] sm:$0xff] }
 0x310   :  { %9535 = vst [vmem:[#allocation243_spill] sm:$0xff] %v7031_v15  ;;  %v7034_v28 = vpop.xlane.xlu1 %2229 }
 0x313   :  { %3435 = vperm.xlu1 %4733, %v7009_v63   ;;  %v1837_v63 = vsub.f32 %v6040_v0, %v7025_v52  ;;  %v7036_v59 = vpop.xlane.xlu0 %2226 }
 0x314   :  { %9536 = vst [vmem:[#allocation244_spill] sm:$0xff] %v7036_v59  ;;  %v7040_v25 = vpop.xlane.xlu1 %2073  ;;  %v9545_v59 = vld [vmem:[#allocation102_spill] sm:$0xff] }
 0x315   :  { %v1945_v46 = vmul.f32 %v1837_v63, %v1837_v63  ;;  %v2932_v15 = vmul.f32 %v2716_v41, %v9545_v59 }
 0x317   :  { %3170 = vperm.xlu1 %4733, %v2716_v41   ;;  %v2249_v50 = vsel %vm1306_vm1, %v1945_v46, 0.0  ;;  %v7042_v52 = vpop.xlane.xlu0 %2070 }
 0x318   :  { %9537 = vst [vmem:[#allocation245_spill] sm:$0xff] %v7042_v52  ;;  %v7047_v63 = vpop.xlane.xlu1 %2235 }
 0x319   :  { %9539 = vst [vmem:[#allocation247_spill] sm:$0xff] %v7047_v63  ;;  %v4919_v0 = vpop.eup %4918 }
 0x31b   :  { %v7049_v48 = vpop.xlane.xlu0 %2232 }
 0x31c   :  { %9540 = vst [vmem:[#allocation248_spill] sm:$0xff] %v7049_v48  ;;  %v2446_v48 = vld [vmem:[%s8930_s3 + $0x1d8] sm:$0xff] }
 0x31f   :  { %v3146_v46 = vpop.permute.xlu0 %3145 }
 0x322   :  { %2088 = vadd.xlane.f32.xlu0 %v2087_v49  ;;  %v1784_v49 = vsub.f32 %v6049_v43, %v7045_v29  ;;  %v7066_v29 = vmul.f32 %v4919_v0, %v2446_v48 }
 0x324   :  { %v1892_v2 = vmul.f32 %v1784_v49, %v1784_v49  ;;  %9544 = vst [vmem:[#allocation252_spill] sm:$0xff] %v7066_v29  ;;  %v2824_v49 = vld [vmem:[%s8931_s4 + $0x28] sm:$0xff] }
 0x325   :  { %v3040_v0 = vsub.f32 %v2824_v49, %v2932_v15 }
 0x326   :  { %2250 = vadd.xlane.f32.xlu0 %v2249_v50  ;;  %v7056_v50 = vpop.permute.xlu1 %3415  ;;  %v2090_v43 = vsel %vm1306_vm1, %v1892_v2, 0.0  ;;  %v2252_v2 = vsel %vm1306_vm1, %v1946_v26, 0.0 }
 0x327   :  { %9542 = vst [vmem:[#allocation250_spill] sm:$0xff] %v7056_v50  ;;  %v2285_v50 = vmul.f32 0.020408163, %v6647_v27 }
 0x329   :  { %v2501_v48 = vadd.f32 1e-05, %v2285_v50 }
 0x32a   :  { %v3151_v52 = vpop.permute.xlu1 %3150 }
 0x32b   :  { %4920 = vrsqrt.f32 %v2501_v48 }
 0x335   :  { %v7060_v8 = vpop.xlane.xlu0 %2076 }
 0x336   :  { %9543 = vst [vmem:[#allocation251_spill] sm:$0xff] %v7060_v8  ;;  %v9550_v8 = vld [vmem:[#allocation2_spill] sm:$0xff] }
 0x339   :  { %v7074_v58 = vpop.xlane.xlu0 %2238 }
 0x33a   :  { %9546 = vst [vmem:[#allocation102_spill] sm:$0xff] %v7074_v58  ;;  %v2286_v58 = vmul.f32 0.020408163, %v6665_v62 }
 0x33b   :  { %2091 = vadd.xlane.f32.xlu1 %v2090_v43  ;;  %v2339_v43 = vmul.f32 0.020408163, %v6663_v23 }
 0x33c   :  { %3440 = vperm.xlu0 %4732, %v7066_v29   ;;  %v3684_v29 = vmul.f32 %v3151_v52, %v9549_v12  ;;  %v2502_v23 = vadd.f32 1e-05, %v2286_v58  ;;  %v9551_v52 = vld [vmem:[#allocation98_spill] sm:$0xff]  ;;  %v7104_v58 = vmul.f32 0.020408163, %v6740_v31  ;;  %v2394_v31 = vld [vmem:[%s8930_s3 + $0x38] sm:$0xff] }
 0x33d   :  { %v2555_v27 = vadd.f32 1e-05, %v2339_v43  ;;  %v2931_v62 = vmul.f32 %v6999_v55, %v9551_v52  ;;  %v2447_v55 = vld [vmem:[%s8930_s3 + $0x1e0] sm:$0xff] }
 0x33e   :  { %v7076_v32 = vpop.xlane.xlu1 %2079 }
 0x33f   :  { %9547 = vst [vmem:[#allocation253_spill] sm:$0xff] %v7076_v32  ;;  %2253 = vadd.xlane.f32.xlu1 %v2252_v2  ;;  %v3683_v32 = vmul.f32 %v3146_v46, %v9550_v8  ;;  %4922 = vrsqrt.f32 %v2555_v27  ;;  %v2393_v46 = vld [vmem:[%s8930_s3 + $0x30] sm:$0xff]  ;;  %v1785_v2 = vsub.f32 %v6071_v5, %v7104_v58 }
 0x340   :  { %3818 = vperm.xlu0 %4732, %v3040_v0   ;;  %4924 = vrsqrt.f32 %v2502_v23  ;;  %v7115_v0 = vmul.f32 0.020408163, %v6748_v40  ;;  %v2340_v40 = vmul.f32 0.020408163, %v6681_v11  ;;  %v7139_v11 = vmul.f32 0.020408163, %v6758_v3 }
 0x341   :  { %v7080_v41 = vpop.permute.xlu0 %3420 }
 0x342   :  { %9548 = vst [vmem:[#allocation254_spill] sm:$0xff] %v7080_v41  ;;  %v7082_v59 = vpop.xlane.xlu1 %2241  ;;  %9552 = vst [vmem:[#allocation5_spill] sm:$0xff] %v7115_v0  ;;  %v1839_v12 = vsub.f32 %v6073_v44, %v7115_v0  ;;  %v2556_v52 = vadd.f32 1e-05, %v2340_v40 }
 0x343   :  { %9554 = vst [vmem:[#allocation98_spill] sm:$0xff] %v7139_v11 }
 0x344   :  { %4926 = vrsqrt.f32 %v2556_v52  ;;  %v9558_v52 = vld [vmem:[#allocation8_spill] sm:$0xff] }
 0x345   :  { %v3799_v63 = vpop.permute.xlu0 %3798 }
 0x346   :  { %v4332_v26 = vadd.f32 %v3799_v63, %v3684_v29  ;;  %v3794_v15 = vpop.permute.xlu1 %3793  ;;  %v2823_v29 = vld [vmem:[%s8931_s4 + $0x20] sm:$0xff]  ;;  %v4921_v63 = vpop.eup %4920 }
 0x347   :  { %v4331_v49 = vadd.f32 %v3794_v15, %v3683_v32  ;;  %v3039_v32 = vsub.f32 %v2823_v29, %v2931_v62  ;;  %v7106_v50 = vmul.f32 %v4921_v63, %v2393_v46  ;;  %v7129_v29 = vmul.f32 0.020408163, %v6751_v53  ;;  %v2448_v46 = vld [vmem:[%s8930_s3 + $0x1e8] sm:$0xff]  ;;  %v2826_v53 = vld [vmem:[%s8931_s4 + $0x38] sm:$0xff] }
 0x348   :  { %4440 = vst.msk [vmem:[%s8932_s5 + $0x8] sm:$0xff] %vm1306_vm1, %v4332_v26  ;;  %v1893_v26 = vmul.f32 %v1785_v2, %v1785_v2  ;;  %v9555_v2 = vld [vmem:[#allocation114_spill] sm:$0xff] }
 0x349   :  { %4439 = vst.msk [vmem:[%s8932_s5] sm:$0xff] %vm1306_vm1, %v4331_v49  ;;  %v4923_v8 = vpop.eup %4922  ;;  %v1947_v49 = vmul.f32 %v1839_v12, %v1839_v12 }
 0x34a   :  { %v7117_v48 = vmul.f32 %v4923_v8, %v2447_v55  ;;  %v4925_v43 = vpop.eup %4924  ;;  %v2093_v15 = vsel %vm1306_vm1, %v1893_v26, 0.0  ;;  %v3156_v62 = vpop.permute.xlu1 %3155  ;;  %v1786_v8 = vsub.f32 %v6080_v61, %v7129_v29  ;;  %v1840_v26 = vsub.f32 %v6082_v36, %v7139_v11 }
 0x34b   :  { %v2718_v27 = vmul.f32 %v4925_v43, %v2394_v31  ;;  %v2255_v23 = vsel %vm1306_vm1, %v1947_v49, 0.0 }
 0x34c   :  { %9553 = vst [vmem:[#allocation2_spill] sm:$0xff] %v7117_v48  ;;  %v1894_v3 = vmul.f32 %v1786_v8, %v1786_v8 }
 0x34d   :  { %v2934_v43 = vmul.f32 %v2718_v27, %v9555_v2 }
 0x34e   :  { %v7144_v31 = vpop.permute.xlu1 %3425 }
 0x34f   :  { %9556 = vst [vmem:[#allocation114_spill] sm:$0xff] %v7144_v31 }
 0x350   :  { %3813 = vperm.xlu1 %4733, %v3039_v32   ;;  %v4927_v32 = vpop.eup %4926 }
 0x351   :  { %v7141_v55 = vmul.f32 %v4927_v32, %v2448_v46  ;;  %v2287_v46 = vmul.f32 0.020408163, %v6711_v18  ;;  %v9559_v18 = vld [vmem:[#allocation6_spill] sm:$0xff] }
 0x352   :  { %v3161_v49 = vpop.permute.xlu1 %3160 }
 0x353   :  { %v3686_v32 = vmul.f32 %v3161_v49, %v9558_v52  ;;  %v2503_v8 = vadd.f32 1e-05, %v2287_v46 }
 0x354   :  { %3175 = vperm.xlu1 %4733, %v7106_v50  }
 0x355   :  { %4928 = vrsqrt.f32 %v2503_v8 }
 0x358   :  { %3445 = vperm.xlu1 %4733, %v7117_v48  }
 0x35c   :  { %3180 = vperm.xlu1 %4733, %v2718_v27   ;;  %v2096_v27 = vsel %vm1306_vm1, %v1894_v3, 0.0 }
 0x35f   :  { %2094 = vadd.xlane.f32.xlu0 %v2093_v15  ;;  %v3042_v15 = vsub.f32 %v2826_v53, %v2934_v43  ;;  %v2341_v43 = vmul.f32 0.020408163, %v6727_v39 }
 0x363   :  { %2256 = vadd.xlane.f32.xlu0 %v2255_v23  ;;  %v1948_v23 = vmul.f32 %v1840_v26, %v1840_v26  ;;  %v2557_v26 = vadd.f32 1e-05, %v2341_v43  ;;  %v2449_v43 = vld [vmem:[%s8930_s3 + $0x1f0] sm:$0xff] }
 0x365   :  { %v2258_v5 = vsel %vm1306_vm1, %v1948_v23, 0.0  ;;  %4930 = vrsqrt.f32 %v2557_v26  ;;  %v7185_v23 = vmul.f32 0.020408163, %v6770_v19 }
 0x367   :  { %9561 = vst [vmem:[#allocation8_spill] sm:$0xff] %v7185_v23 }
 0x372   :  { %v7131_v63 = vpop.xlane.xlu0 %2082 }
 0x376   :  { %v7150_v12 = vpop.xlane.xlu0 %2244 }
 0x379   :  { %3450 = vperm.xlu0 %4732, %v7141_v55  }
 0x37d   :  { %3828 = vperm.xlu0 %4732, %v3042_v15   ;;  %v3685_v15 = vmul.f32 %v3156_v62, %v9559_v18 }
 0x37e   :  { %v7154_v40 = vpop.permute.xlu0 %3430 }
 0x37f   :  { %9557 = vst [vmem:[#allocation255_spill] sm:$0xff] %v7154_v40 }
 0x380   :  { %2097 = vadd.xlane.f32.xlu1 %v2096_v27  ;;  %v2825_v27 = vld [vmem:[%s8931_s4 + $0x30] sm:$0xff] }
 0x382   :  { %v3809_v2 = vpop.permute.xlu0 %3808 }
 0x383   :  { %v4334_v31 = vadd.f32 %v3809_v2, %v3686_v32  ;;  %v7159_v41 = vpop.xlane.xlu1 %2085  ;;  %v4929_v32 = vpop.eup %4928 }
 0x384   :  { %2259 = vadd.xlane.f32.xlu1 %v2258_v5  ;;  %v7175_v5 = vmul.f32 0.020408163, %v6766_v4  ;;  %v2395_v4 = vld [vmem:[%s8930_s3 + $0x40] sm:$0xff]  ;;  %v4931_v8 = vpop.eup %4930 }
 0x385   :  { %4442 = vst.msk [vmem:[%s8932_s5 + $0x18] sm:$0xff] %vm1306_vm1, %v4334_v31  ;;  %v9560_v31 = vld [vmem:[#allocation110_spill] sm:$0xff]  ;;  %v2719_v46 = vmul.f32 %v4929_v32, %v2395_v4  ;;  %v7196_v26 = vmul.f32 %v4931_v8, %v2449_v43  ;;  %v2396_v32 = vld [vmem:[%s8930_s3 + $0x48] sm:$0xff]  ;;  %v7208_v4 = vmul.f32 0.020408163, %v6772_v6 }
 0x386   :  { %v2933_v39 = vmul.f32 %v7106_v50, %v9560_v31  ;;  %v1787_v62 = vsub.f32 %v6099_v57, %v7175_v5  ;;  %v1841_v50 = vsub.f32 %v6101_v35, %v7185_v23  ;;  %v2342_v31 = vmul.f32 0.020408163, %v6742_v20  ;;  %v2450_v20 = vld [vmem:[%s8930_s3 + $0x1f8] sm:$0xff]  ;;  %v9565_v6 = vld [vmem:[#allocation126_spill] sm:$0xff] }
 0x387   :  { %v7167_v53 = vpop.xlane.xlu1 %2247  ;;  %9562 = vst [vmem:[#allocation6_spill] sm:$0xff] %v7196_v26  ;;  %v1788_v43 = vsub.f32 %v6112_v56, %v7208_v4 }
 0x388   :  { %v3041_v52 = vsub.f32 %v2825_v27, %v2933_v39  ;;  %v1895_v2 = vmul.f32 %v1787_v62, %v1787_v62  ;;  %v1949_v18 = vmul.f32 %v1841_v50, %v1841_v50  ;;  %v2558_v39 = vadd.f32 1e-05, %v2342_v31 }
 0x38a   :  { %v2099_v19 = vsel %vm1306_vm1, %v1895_v2, 0.0 }
 0x38b   :  { %v3804_v3 = vpop.permute.xlu1 %3803 }
 0x38c   :  { %v4333_v49 = vadd.f32 %v3804_v3, %v3685_v15  ;;  %v2288_v15 = vmul.f32 0.020408163, %v6729_v45  ;;  %v2261_v3 = vsel %vm1306_vm1, %v1949_v18, 0.0 }
 0x38e   :  { %4441 = vst.msk [vmem:[%s8932_s5 + $0x10] sm:$0xff] %vm1306_vm1, %v4333_v49  ;;  %v2504_v49 = vadd.f32 1e-05, %v2288_v15 }
 0x38f   :  { %v3166_v27 = vpop.permute.xlu1 %3165 }
 0x390   :  { %4932 = vrsqrt.f32 %v2504_v49 }
 0x391   :  { %4934 = vrsqrt.f32 %v2558_v39 }
 0x393   :  { %v7210_v2 = vpop.permute.xlu1 %3435 }
 0x394   :  { %9563 = vst [vmem:[#allocation110_spill] sm:$0xff] %v7210_v2 }
 0x395   :  { %3823 = vperm.xlu1 %4733, %v3041_v52  }
 0x397   :  { %v3171_v49 = vpop.permute.xlu1 %3170 }
 0x399   :  { %3185 = vperm.xlu1 %4733, %v2719_v46  }
 0x39a   :  { %v4933_v62 = vpop.eup %4932 }
 0x39b   :  { %v2720_v45 = vmul.f32 %v4933_v62, %v2396_v32  ;;  %v4935_v50 = vpop.eup %4934  ;;  %v1896_v32 = vmul.f32 %v1788_v43, %v1788_v43 }
 0x39c   :  { %2100 = vadd.xlane.f32.xlu0 %v2099_v19  ;;  %v7220_v19 = vmul.f32 0.020408163, %v6782_v14  ;;  %v7222_v18 = vmul.f32 %v4935_v50, %v2450_v20  ;;  %v9567_v14 = vld [vmem:[#allocation12_spill] sm:$0xff] }
 0x39d   :  { %3455 = vperm.xlu1 %4733, %v7196_v26   ;;  %v2936_v15 = vmul.f32 %v2720_v45, %v9565_v6  ;;  %v3688_v2 = vmul.f32 %v3171_v49, %v9567_v14 }
 0x39e   :  { %9564 = vst [vmem:[#allocation256_spill] sm:$0xff] %v7220_v19  ;;  %v1842_v39 = vsub.f32 %v6114_v51, %v7220_v19 }
 0x3a0   :  { %2262 = vadd.xlane.f32.xlu0 %v2261_v3  ;;  %v2828_v3 = vld [vmem:[%s8931_s4 + $0x48] sm:$0xff]  ;;  %v1950_v6 = vmul.f32 %v1842_v39, %v1842_v39  ;;  %v9568_v39 = vld [vmem:[#allocation10_spill] sm:$0xff] }
 0x3a1   :  { %v3044_v62 = vsub.f32 %v2828_v3, %v2936_v15  ;;  %v2343_v15 = vmul.f32 0.020408163, %v6762_v33  ;;  %v2827_v33 = vld [vmem:[%s8931_s4 + $0x40] sm:$0xff] }
 0x3a2   :  { %v2264_v40 = vsel %vm1306_vm1, %v1950_v6, 0.0 }
 0x3af   :  { %v7202_v52 = vpop.xlane.xlu0 %2088 }
 0x3b3   :  { %v7215_v8 = vpop.xlane.xlu0 %2250 }
 0x3b6   :  { %3190 = vperm.xlu0 %4732, %v2720_v45   ;;  %v2102_v45 = vsel %vm1306_vm1, %v1896_v32, 0.0  ;;  %v9569_v32 = vld [vmem:[#allocation196_spill] sm:$0xff] }
 0x3b7   :  { %v7248_v14 = vmul.f32 0.020408163, %v9569_v32 }
 0x3ba   :  { %3460 = vperm.xlu0 %4732, %v7222_v18  }
 0x3bb   :  { %v7229_v31 = vpop.permute.xlu0 %3440 }
 0x3bc   :  { %9566 = vst [vmem:[#allocation126_spill] sm:$0xff] %v7229_v31  ;;  %v2289_v31 = vmul.f32 0.020408163, %v6756_v37  ;;  %v9570_v37 = vld [vmem:[#allocation122_spill] sm:$0xff] }
 0x3be   :  { %3838 = vperm.xlu0 %4732, %v3044_v62   ;;  %v2505_v43 = vadd.f32 1e-05, %v2289_v31  ;;  %v3687_v62 = vmul.f32 %v3166_v27, %v9568_v39  ;;  %v9572_v27 = vld [vmem:[#allocation198_spill] sm:$0xff] }
 0x3bf   :  { %v3819_v50 = vpop.permute.xlu0 %3818  ;;  %v7261_v6 = vmul.f32 0.020408163, %v9572_v27  ;;  %v9576_v27 = vld [vmem:[#allocation190_spill] sm:$0xff] }
 0x3c0   :  { %v4336_v20 = vadd.f32 %v3819_v50, %v3688_v2  ;;  %4936 = vrsqrt.f32 %v2505_v43  ;;  %v2559_v2 = vadd.f32 1e-05, %v2343_v15 }
 0x3c1   :  { %2103 = vadd.xlane.f32.xlu1 %v2102_v45  ;;  %9573 = vst [vmem:[#allocation12_spill] sm:$0xff] %v7261_v6 }
 0x3c2   :  { %4444 = vst.msk [vmem:[%s8932_s5 + $0x28] sm:$0xff] %vm1306_vm1, %v4336_v20  ;;  %4938 = vrsqrt.f32 %v2559_v2  ;;  %v2935_v20 = vmul.f32 %v2719_v46, %v9570_v37  ;;  %v2397_v46 = vld [vmem:[%s8930_s3 + $0x50] sm:$0xff]  ;;  %v9574_v2 = vld [vmem:[#allocation119_spill] sm:$0xff]  ;;  %v2451_v37 = vld [vmem:[%s8930_s3 + $0x200] sm:$0xff] }
 0x3c3   :  { %v1843_v39 = vsub.f32 %v9574_v2, %v7261_v6 }
 0x3c4   :  { %v3043_v43 = vsub.f32 %v2827_v33, %v2935_v20 }
 0x3c5   :  { %2265 = vadd.xlane.f32.xlu1 %v2264_v40  ;;  %v9571_v40 = vld [vmem:[#allocation118_spill] sm:$0xff]  ;;  %v1951_v33 = vmul.f32 %v1843_v39, %v1843_v39  ;;  %v2398_v39 = vld [vmem:[%s8930_s3 + $0x58] sm:$0xff] }
 0x3c6   :  { %v1789_v31 = vsub.f32 %v9571_v40, %v7248_v14 }
 0x3c7   :  { %v2267_v40 = vsel %vm1306_vm1, %v1951_v33, 0.0 }
 0x3c8   :  { %v7242_v3 = vpop.xlane.xlu1 %2091  ;;  %v1897_v32 = vmul.f32 %v1789_v31, %v1789_v31 }
 0x3ca   :  { %v4937_v15 = vpop.eup %4936 }
 0x3cc   :  { %v7244_v49 = vpop.xlane.xlu1 %2253 }
 0x3d0   :  { %v3814_v50 = vpop.permute.xlu1 %3813 }
 0x3d1   :  { %v4335_v45 = vadd.f32 %v3814_v50, %v3687_v62  ;;  %v2721_v62 = vmul.f32 %v4937_v15, %v2397_v46  ;;  %v4939_v50 = vpop.eup %4938  ;;  %v9577_v15 = vld [vmem:[#allocation191_spill] sm:$0xff] }
 0x3d2   :  { %v7272_v20 = vmul.f32 %v4939_v50, %v2451_v37  ;;  %v2344_v46 = vmul.f32 0.020408163, %v9577_v15  ;;  %v9581_v15 = vld [vmem:[#allocation120_spill] sm:$0xff] }
 0x3d3   :  { %4443 = vst.msk [vmem:[%s8932_s5 + $0x20] sm:$0xff] %vm1306_vm1, %v4335_v45  ;;  %v2105_v45 = vsel %vm1306_vm1, %v1897_v32, 0.0 }
 0x3d4   :  { %9575 = vst [vmem:[#allocation10_spill] sm:$0xff] %v7272_v20  ;;  %v2560_v2 = vadd.f32 1e-05, %v2344_v46  ;;  %v3176_v57 = vpop.permute.xlu1 %3175 }
 0x3d6   :  { %3833 = vperm.xlu1 %4733, %v3043_v43   ;;  %v2290_v43 = vmul.f32 0.020408163, %v9576_v27 }
 0x3d8   :  { %v2506_v31 = vadd.f32 1e-05, %v2290_v43  ;;  %v7280_v50 = vpop.permute.xlu1 %3445 }
 0x3d9   :  { %9578 = vst [vmem:[#allocation196_spill] sm:$0xff] %v7280_v50  ;;  %v9582_v50 = vld [vmem:[#allocation201_spill] sm:$0xff] }
 0x3da   :  { %3195 = vperm.xlu1 %4733, %v2721_v62   ;;  %4940 = vrsqrt.f32 %v2506_v31  ;;  %v7298_v6 = vmul.f32 0.020408163, %v9582_v50 }
 0x3db   :  { %4942 = vrsqrt.f32 %v2560_v2  ;;  %v2452_v2 = vld [vmem:[%s8930_s3 + $0x208] sm:$0xff] }
 0x3dc   :  { %v3181_v43 = vpop.permute.xlu1 %3180  ;;  %9583 = vst [vmem:[#allocation198_spill] sm:$0xff] %v7298_v6 }
 0x3dd   :  { %2106 = vadd.xlane.f32.xlu0 %v2105_v45  ;;  %v9579_v45 = vld [vmem:[#allocation199_spill] sm:$0xff] }
 0x3de   :  { %3465 = vperm.xlu1 %4733, %v7272_v20   ;;  %v9608_v20 = vld [vmem:[#allocation20_spill] sm:$0xff] }
 0x3e1   :  { %2268 = vadd.xlane.f32.xlu0 %v2267_v40  ;;  %v7288_v40 = vmul.f32 0.020408163, %v9579_v45  ;;  %v9584_v45 = vld [vmem:[#allocation132_spill] sm:$0xff] }
 0x3e3   :  { %v1790_v46 = vsub.f32 %v9581_v15, %v7288_v40 }
 0x3e4   :  { %v4941_v32 = vpop.eup %4940 }
 0x3e5   :  { %v2722_v33 = vmul.f32 %v4941_v32, %v2398_v39  ;;  %v4943_v27 = vpop.eup %4942  ;;  %v2830_v32 = vld [vmem:[%s8931_s4 + $0x58] sm:$0xff]  ;;  %v9585_v39 = vld [vmem:[#allocation16_spill] sm:$0xff]  ;;  %v1898_v50 = vmul.f32 %v1790_v46, %v1790_v46 }
 0x3e6   :  { %v7300_v23 = vmul.f32 %v4943_v27, %v2452_v2  ;;  %v3690_v44 = vmul.f32 %v3181_v43, %v9585_v39  ;;  %v9587_v2 = vld [vmem:[#allocation192_spill] sm:$0xff]  ;;  %v9589_v46 = vld [vmem:[#allocation205_spill] sm:$0xff] }
 0x3e7   :  { %v2938_v0 = vmul.f32 %v2722_v33, %v9584_v45  ;;  %v2291_v43 = vmul.f32 0.020408163, %v9587_v2 }
 0x3e9   :  { %v3046_v19 = vsub.f32 %v2830_v32, %v2938_v0  ;;  %v2507_v39 = vadd.f32 1e-05, %v2291_v43  ;;  %v9594_v43 = vld [vmem:[#allocation208_spill] sm:$0xff] }
 0x3eb   :  { %4944 = vrsqrt.f32 %v2507_v39 }
 0x3ec   :  { %v7278_v35 = vpop.xlane.xlu0 %2094 }
 0x3f0   :  { %v7285_v37 = vpop.xlane.xlu0 %2256 }
 0x3f7   :  { %3200 = vperm.xlu0 %4732, %v2722_v33   ;;  %v2108_v33 = vsel %vm1306_vm1, %v1898_v50, 0.0  ;;  %v2829_v50 = vld [vmem:[%s8931_s4 + $0x50] sm:$0xff] }
 0x3f8   :  { %v7293_v31 = vpop.permute.xlu0 %3450 }
 0x3f9   :  { %9580 = vst [vmem:[#allocation122_spill] sm:$0xff] %v7293_v31  ;;  %v9586_v31 = vld [vmem:[#allocation121_spill] sm:$0xff] }
 0x3fa   :  { %v1844_v51 = vsub.f32 %v9586_v31, %v7298_v6  ;;  %v9588_v31 = vld [vmem:[#allocation194_spill] sm:$0xff] }
 0x3fb   :  { %3470 = vperm.xlu0 %4732, %v7300_v23  }
 0x3fc   :  { %v3829_v56 = vpop.permute.xlu0 %3828  ;;  %v1952_v27 = vmul.f32 %v1844_v51, %v1844_v51  ;;  %v9591_v51 = vld [vmem:[#allocation130_spill] sm:$0xff] }
 0x3fd   :  { %v4338_v15 = vadd.f32 %v3829_v56, %v3690_v44  ;;  %v2345_v44 = vmul.f32 0.020408163, %v9588_v31  ;;  %v2937_v32 = vmul.f32 %v2721_v62, %v9591_v51  ;;  %v9593_v31 = vld [vmem:[#allocation123_spill] sm:$0xff]  ;;  %v2399_v62 = vld [vmem:[%s8930_s3 + $0x60] sm:$0xff] }
 0x3fe   :  { %v2270_v45 = vsel %vm1306_vm1, %v1952_v27, 0.0 }
 0x3ff   :  { %4446 = vst.msk [vmem:[%s8932_s5 + $0x38] sm:$0xff] %vm1306_vm1, %v4338_v15  ;;  %3848 = vperm.xlu0 %4732, %v3046_v19   ;;  %v2561_v56 = vadd.f32 1e-05, %v2345_v44  ;;  %v7321_v15 = vmul.f32 0.020408163, %v9589_v46  ;;  %v3045_v44 = vsub.f32 %v2829_v50, %v2937_v32  ;;  %v2453_v32 = vld [vmem:[%s8930_s3 + $0x210] sm:$0xff] }
 0x401   :  { %4946 = vrsqrt.f32 %v2561_v56  ;;  %9590 = vst [vmem:[#allocation190_spill] sm:$0xff] %v7321_v15  ;;  %v1791_v2 = vsub.f32 %v9593_v31, %v7321_v15  ;;  %v4945_v56 = vpop.eup %4944 }
 0x402   :  { %2109 = vadd.xlane.f32.xlu1 %v2108_v33  ;;  %v9592_v33 = vld [vmem:[#allocation14_spill] sm:$0xff] }
 0x403   :  { %v3689_v27 = vmul.f32 %v3176_v57, %v9592_v33  ;;  %v9596_v57 = vld [vmem:[#allocation124_spill] sm:$0xff]  ;;  %v7344_v33 = vmul.f32 %v4945_v56, %v2399_v62  ;;  %v9599_v62 = vld [vmem:[#allocation197_spill] sm:$0xff] }
 0x406   :  { %2271 = vadd.xlane.f32.xlu1 %v2270_v45  ;;  %v7333_v45 = vmul.f32 0.020408163, %v9594_v43  ;;  %v1899_v43 = vmul.f32 %v1791_v2, %v1791_v2 }
 0x408   :  { %9595 = vst [vmem:[#allocation191_spill] sm:$0xff] %v7333_v45  ;;  %v1845_v51 = vsub.f32 %v9596_v57, %v7333_v45  ;;  %v2111_v50 = vsel %vm1306_vm1, %v1899_v43, 0.0  ;;  %v2346_v57 = vmul.f32 0.020408163, %v9599_v62  ;;  %v9600_v43 = vld [vmem:[#allocation203_spill] sm:$0xff]  ;;  %v2454_v62 = vld [vmem:[%s8930_s3 + $0x218] sm:$0xff] }
 0x40a   :  { %v2562_v45 = vadd.f32 1e-05, %v2346_v57 }
 0x40b   :  { %v4947_v31 = vpop.eup %4946 }
 0x40d   :  { %v7318_v0 = vpop.xlane.xlu1 %2097 }
 0x411   :  { %v7323_v19 = vpop.xlane.xlu1 %2259 }
 0x415   :  { %v3824_v39 = vpop.permute.xlu1 %3823 }
 0x416   :  { %v4337_v46 = vadd.f32 %v3824_v39, %v3689_v27  ;;  %v7351_v27 = vmul.f32 %v4947_v31, %v2453_v32  ;;  %v1953_v39 = vmul.f32 %v1845_v51, %v1845_v51  ;;  %v2294_v31 = vmul.f32 0.020408163, %v9600_v43  ;;  %v9601_v51 = vld [vmem:[#allocation206_spill] sm:$0xff] }
 0x417   :  { %3843 = vperm.xlu1 %4733, %v3045_v44   ;;  %v9598_v44 = vld [vmem:[#allocation195_spill] sm:$0xff]  ;;  %v2296_v43 = vmul.f32 0.020408163, %v6844_v13 }
 0x418   :  { %4445 = vst.msk [vmem:[%s8932_s5 + $0x30] sm:$0xff] %vm1306_vm1, %v4337_v46  ;;  %9597 = vst [vmem:[#allocation199_spill] sm:$0xff] %v7351_v27  ;;  %v2292_v46 = vmul.f32 0.020408163, %v9598_v44  ;;  %v2273_v56 = vsel %vm1306_vm1, %v1953_v39, 0.0  ;;  %v2400_v39 = vld [vmem:[%s8930_s3 + $0x68] sm:$0xff] }
 0x419   :  { %v2510_v32 = vadd.f32 1e-05, %v2294_v31  ;;  %v2512_v13 = vadd.f32 1e-05, %v2296_v43 }
 0x41a   :  { %v2508_v2 = vadd.f32 1e-05, %v2292_v46 }
 0x41b   :  { %3205 = vperm.xlu1 %4733, %v7344_v33  }
 0x41c   :  { %4948 = vrsqrt.f32 %v2508_v2 }
 0x41d   :  { %4950 = vrsqrt.f32 %v2562_v45 }
 0x41e   :  { %2112 = vadd.xlane.f32.xlu0 %v2111_v50  ;;  %v2348_v50 = vmul.f32 0.020408163, %v9601_v51  ;;  %4952 = vrsqrt.f32 %v2510_v32  ;;  %v9604_v51 = vld [vmem:[#allocation127_spill] sm:$0xff] }
 0x41f   :  { %3475 = vperm.xlu1 %4733, %v7351_v27   ;;  %v2832_v27 = vld [vmem:[%s8931_s4 + $0x68] sm:$0xff] }
 0x420   :  { %v2564_v44 = vadd.f32 1e-05, %v2348_v50  ;;  %v9605_v50 = vld [vmem:[#allocation212_spill] sm:$0xff] }
 0x421   :  { %v7378_v36 = vmul.f32 0.020408163, %v9605_v50 }
 0x422   :  { %2274 = vadd.xlane.f32.xlu0 %v2273_v56  ;;  %v9602_v56 = vld [vmem:[#allocation209_spill] sm:$0xff]  ;;  %4954 = vrsqrt.f32 %v2564_v44 }
 0x423   :  { %v7367_v57 = vmul.f32 0.020408163, %v9602_v56  ;;  %9606 = vst [vmem:[#allocation132_spill] sm:$0xff] %v7378_v36  ;;  %4956 = vrsqrt.f32 %v2512_v13  ;;  %v9611_v13 = vld [vmem:[#allocation140_spill] sm:$0xff] }
 0x425   :  { %v1792_v32 = vsub.f32 %v9604_v51, %v7367_v57  ;;  %v9609_v51 = vld [vmem:[#allocation128_spill] sm:$0xff] }
 0x426   :  { %v4949_v61 = vpop.eup %4948  ;;  %v1846_v50 = vsub.f32 %v9609_v51, %v7378_v36  ;;  %v2406_v36 = vld [vmem:[%s8930_s3 + $0x98] sm:$0xff] }
 0x427   :  { %v2724_v2 = vmul.f32 %v4949_v61, %v2400_v39  ;;  %v4951_v45 = vpop.eup %4950  ;;  %v9607_v61 = vld [vmem:[#allocation136_spill] sm:$0xff] }
 0x428   :  { %v7380_v56 = vmul.f32 %v4951_v45, %v2454_v62  ;;  %v1900_v62 = vmul.f32 %v1792_v32, %v1792_v32  ;;  %v4953_v15 = vpop.eup %4952  ;;  %v1954_v43 = vmul.f32 %v1846_v50, %v1846_v50  ;;  %v9610_v32 = vld [vmem:[#allocation200_spill] sm:$0xff]  ;;  %v2834_v50 = vld [vmem:[%s8931_s4 + $0x78] sm:$0xff] }
 0x429   :  { %v7357_v6 = vpop.xlane.xlu0 %2100  ;;  %v2940_v39 = vmul.f32 %v2724_v2, %v9607_v61  ;;  %v2293_v61 = vmul.f32 0.020408163, %v9610_v32 }
 0x42b   :  { %v3048_v45 = vsub.f32 %v2832_v27, %v2940_v39  ;;  %v2456_v27 = vld [vmem:[%s8930_s3 + $0x228] sm:$0xff]  ;;  %v3186_v39 = vpop.permute.xlu1 %3185 }
 0x42d   :  { %v7361_v11 = vpop.xlane.xlu0 %2262 }
 0x435   :  { %v3191_v46 = vpop.permute.xlu0 %3190 }
 0x436   :  { %v3692_v44 = vmul.f32 %v3191_v46, %v9608_v20  ;;  %v2114_v20 = vsel %vm1306_vm1, %v1900_v62, 0.0  ;;  %v9612_v62 = vld [vmem:[#allocation202_spill] sm:$0xff] }
 0x438   :  { %3210 = vperm.xlu0 %4732, %v2724_v2   ;;  %v2402_v2 = vld [vmem:[%s8930_s3 + $0x78] sm:$0xff] }
 0x439   :  { %v7373_v31 = vpop.permute.xlu0 %3460  ;;  %v2726_v46 = vmul.f32 %v4953_v15, %v2402_v2  ;;  %v2347_v2 = vmul.f32 0.020408163, %v9612_v62 }
 0x43a   :  { %9603 = vst [vmem:[#allocation201_spill] sm:$0xff] %v7373_v31  ;;  %v2350_v31 = vmul.f32 0.020408163, %v6852_v60 }
 0x43b   :  { %v2942_v15 = vmul.f32 %v2726_v46, %v9611_v13 }
 0x43c   :  { %3480 = vperm.xlu0 %4732, %v7380_v56   ;;  %v2566_v60 = vadd.f32 1e-05, %v2350_v31 }
 0x43d   :  { %v3839_v26 = vpop.permute.xlu0 %3838 }
 0x43e   :  { %v4340_v48 = vadd.f32 %v3839_v26, %v3692_v44  ;;  %v4955_v26 = vpop.eup %4954  ;;  %4958 = vrsqrt.f32 %v2566_v60  ;;  %v2276_v44 = vsel %vm1306_vm1, %v1954_v43, 0.0  ;;  %v2352_v60 = vmul.f32 0.020408163, %v6861_v16  ;;  %v2458_v16 = vld [vmem:[%s8930_s3 + $0x238] sm:$0xff] }
 0x43f   :  { %v7405_v31 = vmul.f32 %v4955_v26, %v2456_v27  ;;  %v3050_v43 = vsub.f32 %v2834_v50, %v2942_v15  ;;  %v4957_v26 = vpop.eup %4956  ;;  %v2563_v27 = vadd.f32 1e-05, %v2347_v2  ;;  %v2300_v50 = vmul.f32 0.020408163, %v6867_v10  ;;  %v9615_v2 = vld [vmem:[#allocation144_spill] sm:$0xff] }
 0x440   :  { %4448 = vst.msk [vmem:[%s8932_s5 + $0x48] sm:$0xff] %vm1306_vm1, %v4340_v48  ;;  %3858 = vperm.xlu0 %4732, %v3048_v45   ;;  %v2298_v48 = vmul.f32 0.020408163, %v6857_v22  ;;  %v2509_v45 = vadd.f32 1e-05, %v2293_v61  ;;  %v7414_v22 = vpop.permute.xlu1 %3455 }
 0x441   :  { %9613 = vst [vmem:[#allocation16_spill] sm:$0xff] %v7414_v22  ;;  %v2568_v32 = vadd.f32 1e-05, %v2352_v60  ;;  %v9616_v60 = vld [vmem:[#allocation134_spill] sm:$0xff]  ;;  %v2349_v10 = vmul.f32 0.020408163, %v6847_v47 }
 0x442   :  { %4960 = vrsqrt.f32 %v2509_v45  ;;  %v2401_v47 = vld [vmem:[%s8930_s3 + $0x70] sm:$0xff] }
 0x443   :  { %2115 = vadd.xlane.f32.xlu1 %v2114_v20  ;;  %v2514_v20 = vadd.f32 1e-05, %v2298_v48  ;;  %v9614_v48 = vld [vmem:[#allocation211_spill] sm:$0xff] }
 0x444   :  { %3220 = vperm.xlu0 %4732, %v2726_v46   ;;  %v2404_v46 = vld [vmem:[%s8930_s3 + $0x88] sm:$0xff]  ;;  %v2295_v15 = vmul.f32 0.020408163, %v9614_v48 }
 0x445   :  { %4962 = vrsqrt.f32 %v2514_v20 }
 0x446   :  { %4964 = vrsqrt.f32 %v2563_v27  ;;  %v2511_v27 = vadd.f32 1e-05, %v2295_v15  ;;  %v2565_v15 = vadd.f32 1e-05, %v2349_v10 }
 0x447   :  { %2277 = vadd.xlane.f32.xlu1 %v2276_v44  ;;  %v2728_v44 = vmul.f32 %v4957_v26, %v2404_v46  ;;  %4966 = vrsqrt.f32 %v2568_v32  ;;  %v2836_v26 = vld [vmem:[%s8931_s4 + $0x88] sm:$0xff]  ;;  %v2831_v46 = vld [vmem:[%s8931_s4 + $0x60] sm:$0xff]  ;;  %v2516_v32 = vadd.f32 1e-05, %v2300_v50 }
 0x448   :  { %3490 = vperm.xlu0 %4732, %v7405_v31   ;;  %v4959_v13 = vpop.eup %4958  ;;  %4968 = vrsqrt.f32 %v2511_v27  ;;  %v9618_v27 = vld [vmem:[#allocation214_spill] sm:$0xff] }
 0x449   :  { %v7428_v62 = vmul.f32 %v4959_v13, %v2458_v16  ;;  %v2944_v20 = vmul.f32 %v2728_v44, %v9615_v2  ;;  %v2354_v13 = vmul.f32 0.020408163, %v6885_v42  ;;  %4970 = vrsqrt.f32 %v2516_v32 }
 0x44a   :  { %4972 = vrsqrt.f32 %v2565_v15  ;;  %v2297_v10 = vmul.f32 0.020408163, %v9618_v27  ;;  %v9623_v15 = vld [vmem:[#allocation219_spill] sm:$0xff] }
 0x44b   :  { %v3052_v2 = vsub.f32 %v2836_v26, %v2944_v20  ;;  %v2570_v42 = vadd.f32 1e-05, %v2354_v13  ;;  %v2460_v26 = vld [vmem:[%s8930_s3 + $0x248] sm:$0xff] }
 0x44c   :  { %3868 = vperm.xlu0 %4732, %v3050_v43   ;;  %v2939_v43 = vmul.f32 %v7344_v33, %v9616_v60  ;;  %v4961_v48 = vpop.eup %4960 }
 0x44d   :  { %v2725_v20 = vmul.f32 %v4961_v48, %v2401_v47  ;;  %4974 = vrsqrt.f32 %v2570_v42  ;;  %v2838_v48 = vld [vmem:[%s8931_s4 + $0x98] sm:$0xff]  ;;  %v2356_v42 = vmul.f32 0.020408163, %v9623_v15 }
 0x44e   :  { %v7419_v61 = vpop.xlane.xlu1 %2103  ;;  %v3047_v60 = vsub.f32 %v2831_v46, %v2939_v43  ;;  %v2455_v46 = vld [vmem:[%s8930_s3 + $0x220] sm:$0xff] }
 0x44f   :  { %v4963_v22 = vpop.eup %4962 }
 0x450   :  { %3230 = vperm.xlu0 %4732, %v2728_v44   ;;  %v9617_v44 = vld [vmem:[#allocation18_spill] sm:$0xff]  ;;  %v2730_v50 = vmul.f32 %v4963_v22, %v2406_v36  ;;  %v9620_v22 = vld [vmem:[#allocation148_spill] sm:$0xff] }
 0x451   :  { %v3691_v16 = vmul.f32 %v3186_v39, %v9617_v44  ;;  %v4965_v39 = vpop.eup %4964  ;;  %v9621_v44 = vld [vmem:[#allocation138_spill] sm:$0xff] }
 0x452   :  { %v7426_v45 = vpop.xlane.xlu1 %2265  ;;  %v4967_v43 = vpop.eup %4966  ;;  %v7463_v36 = vmul.f32 %v4965_v39, %v2455_v46  ;;  %v2946_v13 = vmul.f32 %v2730_v50, %v9620_v22  ;;  %v2403_v46 = vld [vmem:[%s8930_s3 + $0x80] sm:$0xff] }
 0x453   :  { %v7461_v32 = vmul.f32 %v4967_v43, %v2460_v26  ;;  %v4969_v39 = vpop.eup %4968  ;;  %v2408_v26 = vld [vmem:[%s8930_s3 + $0xa8] sm:$0xff] }
 0x454   :  { %3500 = vperm.xlu0 %4732, %v7428_v62   ;;  %9619 = vst [vmem:[#allocation192_spill] sm:$0xff] %v7463_v36  ;;  %v4971_v43 = vpop.eup %4970 }
 0x455   :  { %v2732_v22 = vmul.f32 %v4971_v43, %v2408_v26  ;;  %v2840_v43 = vld [vmem:[%s8931_s4 + $0xa8] sm:$0xff]  ;;  %v2835_v26 = vld [vmem:[%s8931_s4 + $0x80] sm:$0xff] }
 0x456   :  { %v3834_v33 = vpop.permute.xlu1 %3833 }
 0x457   :  { %v4339_v51 = vadd.f32 %v3834_v33, %v3691_v16  ;;  %v2941_v16 = vmul.f32 %v2725_v20, %v9621_v44  ;;  %v2833_v33 = vld [vmem:[%s8931_s4 + $0x70] sm:$0xff]  ;;  %v2727_v44 = vmul.f32 %v4969_v39, %v2403_v46 }
 0x458   :  { %3878 = vperm.xlu0 %4732, %v3052_v2   ;;  %3853 = vperm.xlu1 %4733, %v3047_v60   ;;  %v2513_v2 = vadd.f32 1e-05, %v2297_v10  ;;  %v9622_v60 = vld [vmem:[#allocation215_spill] sm:$0xff]  ;;  %v2572_v10 = vadd.f32 1e-05, %v2356_v42  ;;  %v9628_v42 = vld [vmem:[#allocation152_spill] sm:$0xff] }
 0x459   :  { %4447 = vst.msk [vmem:[%s8932_s5 + $0x40] sm:$0xff] %vm1306_vm1, %v4339_v51  ;;  %v2302_v51 = vmul.f32 0.020408163, %v6893_v1  ;;  %v2351_v47 = vmul.f32 0.020408163, %v9622_v60  ;;  %v9625_v60 = vld [vmem:[#allocation221_spill] sm:$0xff]  ;;  %v2948_v39 = vmul.f32 %v2732_v22, %v9628_v42 }
 0x45a   :  { %4976 = vrsqrt.f32 %v2513_v2  ;;  %v2410_v42 = vld [vmem:[%s8930_s3 + $0xb8] sm:$0xff] }
 0x45b   :  { %v2518_v1 = vadd.f32 1e-05, %v2302_v51  ;;  %v2567_v27 = vadd.f32 1e-05, %v2351_v47  ;;  %v4973_v51 = vpop.eup %4972  ;;  %v2304_v47 = vmul.f32 0.020408163, %v9625_v60 }
 0x45c   :  { %3240 = vperm.xlu0 %4732, %v2730_v50   ;;  %3215 = vperm.xlu1 %4733, %v2725_v20   ;;  %v3054_v50 = vsub.f32 %v2838_v48, %v2946_v13  ;;  %v3049_v20 = vsub.f32 %v2833_v33, %v2941_v16  ;;  %v4975_v13 = vpop.eup %4974  ;;  %v2462_v16 = vld [vmem:[%s8930_s3 + $0x258] sm:$0xff]  ;;  %v2457_v48 = vld [vmem:[%s8930_s3 + $0x230] sm:$0xff] }
 0x45d   :  { %4978 = vrsqrt.f32 %v2518_v1  ;;  %v9624_v33 = vld [vmem:[#allocation216_spill] sm:$0xff]  ;;  %v7491_v1 = vmul.f32 %v4975_v13, %v2462_v16  ;;  %v7493_v15 = vmul.f32 %v4973_v51, %v2457_v48  ;;  %v2520_v51 = vadd.f32 1e-05, %v2304_v47 }
 0x45e   :  { %4980 = vrsqrt.f32 %v2567_v27  ;;  %v2299_v2 = vmul.f32 0.020408163, %v9624_v33  ;;  %v9630_v27 = vld [vmem:[#allocation81_spill] sm:$0xff]  ;;  %v3056_v16 = vsub.f32 %v2840_v43, %v2948_v39 }
 0x45f   :  { %4982 = vrsqrt.f32 %v2572_v10  ;;  %9626 = vst [vmem:[#allocation194_spill] sm:$0xff] %v7491_v1  ;;  %9627 = vst [vmem:[#allocation205_spill] sm:$0xff] %v7493_v15  ;;  %v2353_v10 = vmul.f32 0.020408163, %v9630_v27 }
 0x460   :  { %3510 = vperm.xlu0 %4732, %v7461_v32   ;;  %3485 = vperm.xlu1 %4733, %v7463_v36   ;;  %v2515_v46 = vadd.f32 1e-05, %v2299_v2  ;;  %v2405_v2 = vld [vmem:[%s8930_s3 + $0x90] sm:$0xff] }
 0x461   :  { %v9637_v36 = vld [vmem:[#allocation220_spill] sm:$0xff] }
 0x462   :  { %4984 = vrsqrt.f32 %v2515_v46  ;;  %v9632_v46 = vld [vmem:[#allocation74_spill] sm:$0xff] }
 0x463   :  { %4986 = vrsqrt.f32 %v2520_v51  ;;  %v2306_v51 = vmul.f32 0.020408163, %v6931_v30  ;;  %v2355_v30 = vmul.f32 0.020408163, %v9637_v36  ;;  %v2407_v36 = vld [vmem:[%s8930_s3 + $0xa0] sm:$0xff] }
 0x464   :  { %3888 = vperm.xlu0 %4732, %v3054_v50   ;;  %3863 = vperm.xlu1 %4733, %v3049_v20   ;;  %v9629_v50 = vld [vmem:[#allocation142_spill] sm:$0xff]  ;;  %v4977_v13 = vpop.eup %4976 }
 0x465   :  { %v2943_v20 = vmul.f32 %v2727_v44, %v9629_v50  ;;  %v2569_v50 = vadd.f32 1e-05, %v2353_v10  ;;  %v2301_v10 = vmul.f32 0.020408163, %v9632_v46  ;;  %v2837_v46 = vld [vmem:[%s8931_s4 + $0x90] sm:$0xff] }
 0x467   :  { %v3051_v48 = vsub.f32 %v2835_v26, %v2943_v20  ;;  %v4979_v60 = vpop.eup %4978  ;;  %v2729_v20 = vmul.f32 %v4977_v13, %v2405_v2  ;;  %v2464_v26 = vld [vmem:[%s8930_s3 + $0x268] sm:$0xff]  ;;  %4988 = vrsqrt.f32 %v2569_v50  ;;  %v2842_v50 = vld [vmem:[%s8931_s4 + $0xb8] sm:$0xff] }
 0x468   :  { %3250 = vperm.xlu0 %4732, %v2732_v22   ;;  %3225 = vperm.xlu1 %4733, %v2727_v44   ;;  %v9631_v22 = vld [vmem:[#allocation224_spill] sm:$0xff]  ;;  %v4981_v27 = vpop.eup %4980  ;;  %v2734_v39 = vmul.f32 %v4979_v60, %v2410_v42  ;;  %v9636_v42 = vld [vmem:[#allocation145_spill] sm:$0xff] }
 0x469   :  { %v2358_v44 = vmul.f32 0.020408163, %v9631_v22  ;;  %v4983_v43 = vpop.eup %4982  ;;  %v2945_v2 = vmul.f32 %v2729_v20, %v9636_v42  ;;  %v2412_v42 = vld [vmem:[%s8930_s3 + $0xc8] sm:$0xff] }
 0x46a   :  { %v7504_v33 = vpop.xlane.xlu0 %2106 }
 0x46b   :  { %v2574_v47 = vadd.f32 1e-05, %v2358_v44 }
 0x46c   :  { %3520 = vperm.xlu0 %4732, %v7491_v1   ;;  %3495 = vperm.xlu1 %4733, %v7493_v15   ;;  %v2459_v15 = vld [vmem:[%s8930_s3 + $0x240] sm:$0xff]  ;;  %v2466_v1 = vld [vmem:[%s8930_s3 + $0x278] sm:$0xff] }
 0x46d   :  { %4990 = vrsqrt.f32 %v2574_v47  ;;  %v7527_v13 = vmul.f32 %v4981_v27, %v2459_v15  ;;  %v2517_v47 = vadd.f32 1e-05, %v2301_v10  ;;  %v2522_v15 = vadd.f32 1e-05, %v2306_v51  ;;  %v9639_v51 = vld [vmem:[#allocation24_spill] sm:$0xff] }
 0x46e   :  { %v7515_v22 = vpop.xlane.xlu0 %2268  ;;  %v2360_v27 = vmul.f32 0.020408163, %v6936_v54  ;;  %v2571_v10 = vadd.f32 1e-05, %v2355_v30  ;;  %v9640_v30 = vld [vmem:[#allocation222_spill] sm:$0xff] }
 0x46f   :  { %9634 = vst [vmem:[#allocation14_spill] sm:$0xff] %v7527_v13  ;;  %4992 = vrsqrt.f32 %v2517_v47  ;;  %v2461_v47 = vld [vmem:[%s8930_s3 + $0x250] sm:$0xff] }
 0x470   :  { %3898 = vperm.xlu0 %4732, %v3056_v16   ;;  %3873 = vperm.xlu1 %4733, %v3051_v48   ;;  %v7525_v16 = vmul.f32 %v4983_v43, %v2464_v26  ;;  %v9635_v48 = vld [vmem:[#allocation156_spill] sm:$0xff]  ;;  %v3053_v26 = vsub.f32 %v2837_v46, %v2945_v2  ;;  %4994 = vrsqrt.f32 %v2522_v15  ;;  %v2576_v54 = vadd.f32 1e-05, %v2360_v27 }
 0x471   :  { %v2950_v60 = vmul.f32 %v2734_v39, %v9635_v48  ;;  %4996 = vrsqrt.f32 %v2571_v10  ;;  %v2303_v15 = vmul.f32 0.020408163, %v9640_v30  ;;  %v9644_v10 = vld [vmem:[#allocation225_spill] sm:$0xff] }
 0x472   :  { %9633 = vst [vmem:[#allocation130_spill] sm:$0xff] %v7525_v16  ;;  %4998 = vrsqrt.f32 %v2576_v54  ;;  %v2357_v54 = vmul.f32 0.020408163, %v9644_v10  ;;  %v2310_v10 = vmul.f32 0.020408163, %v6962_v21  ;;  %v9650_v21 = vld [vmem:[#allocation228_spill] sm:$0xff] }
 0x473   :  { %v3058_v43 = vsub.f32 %v2842_v50, %v2950_v60 }
 0x474   :  { %3260 = vperm.xlu0 %4732, %v2734_v39   ;;  %3235 = vperm.xlu1 %4733, %v2729_v20   ;;  %v4985_v39 = vpop.eup %4984  ;;  %v2573_v30 = vadd.f32 1e-05, %v2357_v54 }
 0x475   :  { %v4987_v48 = vpop.eup %4986  ;;  %v2731_v50 = vmul.f32 %v4985_v39, %v2407_v36  ;;  %v9642_v39 = vld [vmem:[#allocation160_spill] sm:$0xff]  ;;  %v2519_v36 = vadd.f32 1e-05, %v2303_v15 }
 0x476   :  { %v3201_v44 = vpop.permute.xlu0 %3200  ;;  %v2736_v2 = vmul.f32 %v4987_v48, %v2412_v42  ;;  %v2844_v42 = vld [vmem:[%s8931_s4 + $0xc8] sm:$0xff] }
 0x477   :  { %5000 = vrsqrt.f32 %v2519_v36 }
 0x478   :  { %3530 = vperm.xlu0 %4732, %v7525_v16   ;;  %3505 = vperm.xlu1 %4733, %v7527_v13   ;;  %v3694_v13 = vmul.f32 %v3201_v44, %v9639_v51  ;;  %v2308_v44 = vmul.f32 0.020408163, %v6945_v9  ;;  %v2839_v9 = vld [vmem:[%s8931_s4 + $0xa0] sm:$0xff] }
 0x47a   :  { %v7541_v20 = vpop.permute.xlu0 %3470 }
 0x47b   :  { %9638 = vst [vmem:[#allocation208_spill] sm:$0xff] %v7541_v20  ;;  %v4989_v20 = vpop.eup %4988 }
 0x47c   :  { %3908 = vperm.xlu0 %4732, %v3058_v43   ;;  %3883 = vperm.xlu1 %4733, %v3053_v26   ;;  %v4991_v46 = vpop.eup %4990  ;;  %v7564_v27 = vmul.f32 %v4989_v20, %v2461_v47  ;;  %v2952_v43 = vmul.f32 %v2736_v2, %v9642_v39  ;;  %v9643_v26 = vld [vmem:[#allocation149_spill] sm:$0xff]  ;;  %v3196_v20 = vpop.permute.xlu1 %3195  ;;  %v2409_v47 = vld [vmem:[%s8930_s3 + $0xb0] sm:$0xff] }
 0x47d   :  { %v2947_v48 = vmul.f32 %v2731_v50, %v9643_v26  ;;  %v4993_v51 = vpop.eup %4992 }
 0x47e   :  { %v3849_v60 = vpop.permute.xlu0 %3848  ;;  %9641 = vst [vmem:[#allocation195_spill] sm:$0xff] %v7564_v27  ;;  %v2733_v39 = vmul.f32 %v4993_v51, %v2409_v47  ;;  %v2841_v47 = vld [vmem:[%s8931_s4 + $0xb0] sm:$0xff] }
 0x47f   :  { %v4342_v16 = vadd.f32 %v3849_v60, %v3694_v13  ;;  %v7562_v13 = vmul.f32 %v4991_v46, %v2466_v1  ;;  %v2524_v1 = vadd.f32 1e-05, %v2308_v44  ;;  %v3060_v60 = vsub.f32 %v2844_v42, %v2952_v43  ;;  %v2414_v46 = vld [vmem:[%s8930_s3 + $0xd8] sm:$0xff]  ;;  %v2463_v42 = vld [vmem:[%s8930_s3 + $0x260] sm:$0xff] }
 0x480   :  { %3270 = vperm.xlu0 %4732, %v2736_v2   ;;  %3245 = vperm.xlu1 %4733, %v2731_v50   ;;  %v3055_v2 = vsub.f32 %v2839_v9, %v2947_v48  ;;  %v4995_v50 = vpop.eup %4994  ;;  %v7584_v26 = vpop.permute.xlu1 %3465  ;;  %v2468_v48 = vld [vmem:[%s8930_s3 + $0x288] sm:$0xff] }
 0x481   :  { %4450 = vst.msk [vmem:[%s8932_s5 + $0x58] sm:$0xff] %vm1306_vm1, %v4342_v16  ;;  %v2362_v16 = vmul.f32 0.020408163, %v6956_v38  ;;  %5002 = vrsqrt.f32 %v2524_v1  ;;  %v4997_v38 = vpop.eup %4996  ;;  %v2738_v44 = vmul.f32 %v4995_v50, %v2414_v46  ;;  %9645 = vst [vmem:[#allocation197_spill] sm:$0xff] %v7584_v26  ;;  %v9646_v9 = vld [vmem:[#allocation227_spill] sm:$0xff]  ;;  %v2846_v46 = vld [vmem:[%s8931_s4 + $0xd8] sm:$0xff] }
 0x482   :  { %v4999_v43 = vpop.eup %4998  ;;  %5004 = vrsqrt.f32 %v2573_v30  ;;  %v2305_v36 = vmul.f32 0.020408163, %v9646_v9  ;;  %v7596_v1 = vmul.f32 %v4997_v38, %v2463_v42  ;;  %v2526_v38 = vadd.f32 1e-05, %v2310_v10 }
 0x483   :  { %v2578_v15 = vadd.f32 1e-05, %v2362_v16  ;;  %v7594_v54 = vmul.f32 %v4999_v43, %v2468_v48  ;;  %v9648_v16 = vld [vmem:[#allocation164_spill] sm:$0xff] }
 0x484   :  { %3540 = vperm.xlu0 %4732, %v7562_v13   ;;  %3515 = vperm.xlu1 %4733, %v7564_v27   ;;  %9647 = vst [vmem:[#allocation203_spill] sm:$0xff] %v7596_v1  ;;  %v2954_v51 = vmul.f32 %v2738_v44, %v9648_v16  ;;  %v2521_v30 = vadd.f32 1e-05, %v2305_v36  ;;  %v2416_v16 = vld [vmem:[%s8930_s3 + $0xe8] sm:$0xff]  ;;  %v2411_v36 = vld [vmem:[%s8930_s3 + $0xc0] sm:$0xff] }
 0x485   :  { %5006 = vrsqrt.f32 %v2578_v15  ;;  %v2359_v15 = vmul.f32 0.020408163, %v9650_v21 }
 0x486   :  { %v3062_v43 = vsub.f32 %v2846_v46, %v2954_v51  ;;  %5008 = vrsqrt.f32 %v2521_v30  ;;  %v9651_v51 = vld [vmem:[#allocation22_spill] sm:$0xff]  ;;  %v2465_v30 = vld [vmem:[%s8930_s3 + $0x270] sm:$0xff] }
 0x487   :  { %5010 = vrsqrt.f32 %v2526_v38 }
 0x488   :  { %3918 = vperm.xlu0 %4732, %v3060_v60   ;;  %3893 = vperm.xlu1 %4733, %v3055_v2   ;;  %v9649_v60 = vld [vmem:[#allocation153_spill] sm:$0xff] }
 0x489   :  { %v2949_v2 = vmul.f32 %v2733_v39, %v9649_v60  ;;  %v2575_v60 = vadd.f32 1e-05, %v2359_v15  ;;  %v9652_v15 = vld [vmem:[#allocation231_spill] sm:$0xff] }
 0x48b   :  { %v3057_v48 = vsub.f32 %v2841_v47, %v2949_v2  ;;  %v3693_v2 = vmul.f32 %v3196_v20, %v9651_v51  ;;  %5012 = vrsqrt.f32 %v2575_v60  ;;  %v2312_v20 = vmul.f32 0.020408163, %v6983_v34  ;;  %v2843_v34 = vld [vmem:[%s8931_s4 + $0xc0] sm:$0xff] }
 0x48c   :  { %3280 = vperm.xlu0 %4732, %v2738_v44   ;;  %3255 = vperm.xlu1 %4733, %v2733_v39   ;;  %v2364_v44 = vmul.f32 0.020408163, %v6974_v17  ;;  %v5001_v39 = vpop.eup %5000 }
 0x48d   :  { %v5003_v42 = vpop.eup %5002  ;;  %v2735_v47 = vmul.f32 %v5001_v39, %v2411_v36 }
 0x48e   :  { %v2580_v17 = vadd.f32 1e-05, %v2364_v44  ;;  %v5005_v10 = vpop.eup %5004  ;;  %v2740_v46 = vmul.f32 %v5003_v42, %v2416_v16  ;;  %v9655_v16 = vld [vmem:[#allocation157_spill] sm:$0xff] }
 0x48f   :  { %v7600_v50 = vpop.xlane.xlu1 %2109  ;;  %v5007_v21 = vpop.eup %5006  ;;  %v7635_v39 = vmul.f32 %v5005_v10, %v2465_v30  ;;  %v2951_v36 = vmul.f32 %v2735_v47, %v9655_v16  ;;  %v2366_v10 = vmul.f32 0.020408163, %v6992_v7  ;;  %v2418_v30 = vld [vmem:[%s8930_s3 + $0xf8] sm:$0xff]  ;;  %v2472_v16 = vld [vmem:[%s8930_s3 + $0x2a8] sm:$0xff] }
 0x490   :  { %3550 = vperm.xlu0 %4732, %v7594_v54   ;;  %3525 = vperm.xlu1 %4733, %v7596_v1   ;;  %v2470_v1 = vld [vmem:[%s8930_s3 + $0x298] sm:$0xff]  ;;  %5014 = vrsqrt.f32 %v2580_v17  ;;  %v9656_v17 = vld [vmem:[#allocation232_spill] sm:$0xff] }
 0x491   :  { %v7633_v44 = vmul.f32 %v5007_v21, %v2470_v1  ;;  %9653 = vst [vmem:[#allocation206_spill] sm:$0xff] %v7635_v39  ;;  %v2361_v51 = vmul.f32 0.020408163, %v9656_v17  ;;  %v2528_v1 = vadd.f32 1e-05, %v2312_v20 }
 0x493   :  { %v7612_v9 = vpop.xlane.xlu1 %2271 }
 0x494   :  { %3928 = vperm.xlu0 %4732, %v3062_v43   ;;  %3903 = vperm.xlu1 %4733, %v3057_v48   ;;  %v2307_v43 = vmul.f32 0.020408163, %v9652_v15  ;;  %v9654_v48 = vld [vmem:[#allocation168_spill] sm:$0xff] }
 0x495   :  { %v2956_v42 = vmul.f32 %v2740_v46, %v9654_v48  ;;  %v2413_v15 = vld [vmem:[%s8930_s3 + $0xd0] sm:$0xff] }
 0x496   :  { %v2523_v60 = vadd.f32 1e-05, %v2307_v43  ;;  %v2577_v43 = vadd.f32 1e-05, %v2361_v51 }
 0x497   :  { %v3844_v26 = vpop.permute.xlu1 %3843 }
 0x498   :  { %v4341_v38 = vadd.f32 %v3844_v26, %v3693_v2  ;;  %3290 = vperm.xlu0 %4732, %v2740_v46   ;;  %3265 = vperm.xlu1 %4733, %v2735_v47   ;;  %v2848_v26 = vld [vmem:[%s8931_s4 + $0xe8] sm:$0xff]  ;;  %v5009_v2 = vpop.eup %5008  ;;  %v3059_v47 = vsub.f32 %v2843_v34, %v2951_v36  ;;  %5016 = vrsqrt.f32 %v2523_v60  ;;  %v2467_v36 = vld [vmem:[%s8930_s3 + $0x280] sm:$0xff]  ;;  %v2314_v60 = vmul.f32 0.020408163, %v7005_v24 }
 0x499   :  { %v3064_v46 = vsub.f32 %v2848_v26, %v2956_v42  ;;  %v5011_v21 = vpop.eup %5010  ;;  %5018 = vrsqrt.f32 %v2528_v1  ;;  %v2737_v48 = vmul.f32 %v5009_v2, %v2413_v15  ;;  %v9657_v26 = vld [vmem:[#allocation233_spill] sm:$0xff]  ;;  %v9660_v1 = vld [vmem:[#allocation172_spill] sm:$0xff]  ;;  %v9662_v15 = vld [vmem:[#allocation90_spill] sm:$0xff] }
 0x49a   :  { %4449 = vst.msk [vmem:[%s8932_s5 + $0x50] sm:$0xff] %vm1306_vm1, %v4341_v38  ;;  %v2582_v38 = vadd.f32 1e-05, %v2366_v10  ;;  %v5013_v20 = vpop.eup %5012  ;;  %v2742_v7 = vmul.f32 %v5011_v21, %v2418_v30  ;;  %5020 = vrsqrt.f32 %v2577_v43  ;;  %v2309_v34 = vmul.f32 0.020408163, %v9657_v26  ;;  %v9661_v2 = vld [vmem:[#allocation161_spill] sm:$0xff] }
 0x49b   :  { %v5015_v42 = vpop.eup %5014  ;;  %v7665_v51 = vmul.f32 %v5013_v20, %v2467_v36  ;;  %v2845_v21 = vld [vmem:[%s8931_s4 + $0xd0] sm:$0xff]  ;;  %v2363_v43 = vmul.f32 0.020408163, %v9662_v15  ;;  %v2530_v24 = vadd.f32 1e-05, %v2314_v60  ;;  %v2420_v36 = vld [vmem:[%s8930_s3 + $0x108] sm:$0xff] }
 0x49c   :  { %3560 = vperm.xlu0 %4732, %v7633_v44   ;;  %3535 = vperm.xlu1 %4733, %v7635_v39   ;;  %5022 = vrsqrt.f32 %v2582_v38  ;;  %v7663_v17 = vmul.f32 %v5015_v42, %v2472_v16  ;;  %v2958_v10 = vmul.f32 %v2742_v7, %v9660_v1  ;;  %v2525_v30 = vadd.f32 1e-05, %v2309_v34  ;;  %v9663_v38 = vld [vmem:[#allocation239_spill] sm:$0xff]  ;;  %v2415_v26 = vld [vmem:[%s8930_s3 + $0xe0] sm:$0xff]  ;;  %v2469_v15 = vld [vmem:[%s8930_s3 + $0x290] sm:$0xff] }
 0x49d   :  { %9659 = vst [vmem:[#allocation212_spill] sm:$0xff] %v7665_v51  ;;  %v2368_v20 = vmul.f32 0.020408163, %v9663_v38  ;;  %v2579_v34 = vadd.f32 1e-05, %v2363_v43  ;;  %v2471_v39 = vld [vmem:[%s8930_s3 + $0x2a0] sm:$0xff] }
 0x49e   :  { %9658 = vst [vmem:[#allocation209_spill] sm:$0xff] %v7663_v17  ;;  %5024 = vrsqrt.f32 %v2525_v30  ;;  %v9664_v30 = vld [vmem:[#allocation235_spill] sm:$0xff] }
 0x49f   :  { %5026 = vrsqrt.f32 %v2530_v24  ;;  %v2584_v60 = vadd.f32 1e-05, %v2368_v20  ;;  %v2311_v43 = vmul.f32 0.020408163, %v9664_v30  ;;  %v9665_v24 = vld [vmem:[#allocation242_spill] sm:$0xff] }
 0x4a0   :  { %3938 = vperm.xlu0 %4732, %v3064_v46   ;;  %3913 = vperm.xlu1 %4733, %v3059_v47   ;;  %v2953_v46 = vmul.f32 %v2737_v48, %v9661_v2  ;;  %v2850_v47 = vld [vmem:[%s8931_s4 + $0xf8] sm:$0xff]  ;;  %5028 = vrsqrt.f32 %v2579_v34  ;;  %v2316_v38 = vmul.f32 0.020408163, %v9665_v24  ;;  %v2852_v34 = vld [vmem:[%s8931_s4 + $0x108] sm:$0xff]  ;;  %v9670_v24 = vld [vmem:[#allocation86_spill] sm:$0xff] }
 0x4a1   :  { %5030 = vrsqrt.f32 %v2584_v60  ;;  %v2847_v60 = vld [vmem:[%s8931_s4 + $0xe0] sm:$0xff]  ;;  %v2527_v30 = vadd.f32 1e-05, %v2311_v43  ;;  %v2422_v43 = vld [vmem:[%s8930_s3 + $0x118] sm:$0xff] }
 0x4a2   :  { %v3061_v42 = vsub.f32 %v2845_v21, %v2953_v46  ;;  %v2474_v21 = vld [vmem:[%s8930_s3 + $0x2b8] sm:$0xff] }
 0x4a3   :  { %5032 = vrsqrt.f32 %v2527_v30  ;;  %v9672_v30 = vld [vmem:[#allocation236_spill] sm:$0xff] }
 0x4a4   :  { %3300 = vperm.xlu0 %4732, %v2742_v7   ;;  %3275 = vperm.xlu1 %4733, %v2737_v48   ;;  %v5017_v7 = vpop.eup %5016  ;;  %v3066_v48 = vsub.f32 %v2850_v47, %v2958_v10 }
 0x4a5   :  { %v5019_v16 = vpop.eup %5018  ;;  %v2739_v46 = vmul.f32 %v5017_v7, %v2415_v26 }
 0x4a6   :  { %v5021_v2 = vpop.eup %5020  ;;  %v2744_v10 = vmul.f32 %v5019_v16, %v2420_v36  ;;  %v9669_v16 = vld [vmem:[#allocation165_spill] sm:$0xff] }
 0x4a7   :  { %v5023_v47 = vpop.eup %5022  ;;  %v7697_v7 = vmul.f32 %v5021_v2, %v2469_v15  ;;  %v2955_v36 = vmul.f32 %v2739_v46, %v9669_v16  ;;  %v2532_v2 = vadd.f32 1e-05, %v2316_v38 }
 0x4a8   :  { %3570 = vperm.xlu0 %4732, %v7663_v17   ;;  %3545 = vperm.xlu1 %4733, %v7665_v51   ;;  %v7695_v20 = vmul.f32 %v5023_v47, %v2474_v21  ;;  %v2365_v47 = vmul.f32 0.020408163, %v9670_v24  ;;  %v2858_v17 = vld [vmem:[%s8931_s4 + $0x138] sm:$0xff] }
 0x4a9   :  { %9667 = vst [vmem:[#allocation20_spill] sm:$0xff] %v7697_v7  ;;  %v3063_v15 = vsub.f32 %v2847_v60, %v2955_v36  ;;  %5034 = vrsqrt.f32 %v2532_v2  ;;  %v2476_v60 = vld [vmem:[%s8930_s3 + $0x2c8] sm:$0xff]  ;;  %v2318_v2 = vmul.f32 0.020408163, %v7040_v25 }
 0x4aa   :  { %9666 = vst [vmem:[#allocation136_spill] sm:$0xff] %v7695_v20  ;;  %v2581_v24 = vadd.f32 1e-05, %v2365_v47  ;;  %v2313_v47 = vmul.f32 0.020408163, %v9672_v30  ;;  %v9678_v30 = vld [vmem:[#allocation240_spill] sm:$0xff] }
 0x4ab   :  { %v7685_v1 = vpop.xlane.xlu0 %2112 }
 0x4ac   :  { %3948 = vperm.xlu0 %4732, %v3066_v48   ;;  %3923 = vperm.xlu1 %4733, %v3061_v42   ;;  %v9668_v48 = vld [vmem:[#allocation176_spill] sm:$0xff]  ;;  %5036 = vrsqrt.f32 %v2581_v24  ;;  %v2854_v24 = vld [vmem:[%s8931_s4 + $0x118] sm:$0xff]  ;;  %v2529_v25 = vadd.f32 1e-05, %v2313_v47  ;;  %v2419_v47 = vld [vmem:[%s8930_s3 + $0x100] sm:$0xff] }
 0x4ad   :  { %v2960_v42 = vmul.f32 %v2744_v10, %v9668_v48  ;;  %v2417_v48 = vld [vmem:[%s8930_s3 + $0xf0] sm:$0xff] }
 0x4af   :  { %v7701_v26 = vpop.xlane.xlu0 %2274  ;;  %v3068_v21 = vsub.f32 %v2852_v34, %v2960_v42 }
 0x4b0   :  { %3310 = vperm.xlu0 %4732, %v2744_v10   ;;  %3285 = vperm.xlu1 %4733, %v2739_v46   ;;  %v2370_v10 = vmul.f32 0.020408163, %v7034_v28  ;;  %v5025_v46 = vpop.eup %5024 }
 0x4b1   :  { %v5027_v16 = vpop.eup %5026  ;;  %v2741_v28 = vmul.f32 %v5025_v46, %v2417_v48 }
 0x4b2   :  { %v2586_v38 = vadd.f32 1e-05, %v2370_v10  ;;  %v2746_v42 = vmul.f32 %v5027_v16, %v2422_v43  ;;  %v9673_v10 = vld [vmem:[#allocation169_spill] sm:$0xff]  ;;  %v9677_v43 = vld [vmem:[#allocation180_spill] sm:$0xff] }
 0x4b3   :  { %v2957_v46 = vmul.f32 %v2741_v28, %v9673_v10 }
 0x4b4   :  { %3580 = vperm.xlu0 %4732, %v7695_v20   ;;  %3555 = vperm.xlu1 %4733, %v7697_v7   ;;  %v5029_v7 = vpop.eup %5028  ;;  %5038 = vrsqrt.f32 %v2586_v38  ;;  %v2849_v38 = vld [vmem:[%s8931_s4 + $0xf0] sm:$0xff] }
 0x4b5   :  { %v5031_v36 = vpop.eup %5030  ;;  %v7733_v16 = vmul.f32 %v5029_v7, %v2471_v39  ;;  %v2534_v39 = vadd.f32 1e-05, %v2318_v2  ;;  %v2424_v2 = vld [vmem:[%s8930_s3 + $0x128] sm:$0xff]  ;;  %5040 = vrsqrt.f32 %v2529_v25  ;;  %v2473_v25 = vld [vmem:[%s8930_s3 + $0x2b0] sm:$0xff] }
 0x4b6   :  { %v7731_v48 = vmul.f32 %v5031_v36, %v2476_v60  ;;  %v3065_v60 = vsub.f32 %v2849_v38, %v2957_v46 }
 0x4b7   :  { %v3211_v51 = vpop.permute.xlu0 %3210  ;;  %9676 = vst [vmem:[#allocation202_spill] sm:$0xff] %v7733_v16  ;;  %5042 = vrsqrt.f32 %v2534_v39  ;;  %v9682_v39 = vld [vmem:[#allocation253_spill] sm:$0xff] }
 0x4b8   :  { %3958 = vperm.xlu0 %4732, %v3068_v21   ;;  %3933 = vperm.xlu1 %4733, %v3063_v15   ;;  %v9674_v21 = vld [vmem:[#allocation28_spill] sm:$0xff]  ;;  %9675 = vst [vmem:[#allocation140_spill] sm:$0xff] %v7731_v48 }
 0x4b9   :  { %v3696_v15 = vmul.f32 %v3211_v51, %v9674_v21  ;;  %v9679_v51 = vld [vmem:[#allocation247_spill] sm:$0xff] }
 0x4ba   :  { %v2372_v7 = vmul.f32 0.020408163, %v9679_v51  ;;  %v2478_v51 = vld [vmem:[%s8930_s3 + $0x2d8] sm:$0xff] }
 0x4bb   :  { %v7719_v34 = vpop.permute.xlu0 %3480 }
 0x4bc   :  { %9671 = vst [vmem:[#allocation200_spill] sm:$0xff] %v7719_v34  ;;  %3320 = vperm.xlu0 %4732, %v2746_v42   ;;  %3295 = vperm.xlu1 %4733, %v2741_v28   ;;  %v2962_v34 = vmul.f32 %v2746_v42, %v9677_v43  ;;  %v2367_v28 = vmul.f32 0.020408163, %v9678_v30  ;;  %v5033_v42 = vpop.eup %5032  ;;  %v2588_v43 = vadd.f32 1e-05, %v2372_v7 }
 0x4bd   :  { %v2743_v30 = vmul.f32 %v5033_v42, %v2419_v47  ;;  %v2320_v7 = vmul.f32 0.020408163, %v9682_v39  ;;  %v9683_v42 = vld [vmem:[#allocation173_spill] sm:$0xff]  ;;  %v9684_v47 = vld [vmem:[#allocation32_spill] sm:$0xff] }
 0x4be   :  { %v3070_v36 = vsub.f32 %v2854_v24, %v2962_v34  ;;  %v3206_v34 = vpop.permute.xlu1 %3205  ;;  %v9688_v39 = vld [vmem:[#allocation244_spill] sm:$0xff] }
 0x4bf   :  { %v3859_v20 = vpop.permute.xlu0 %3858 }
 0x4c0   :  { %v4344_v10 = vadd.f32 %v3859_v20, %v3696_v15  ;;  %3590 = vperm.xlu0 %4732, %v7731_v48   ;;  %3565 = vperm.xlu1 %4733, %v7733_v16   ;;  %v5035_v20 = vpop.eup %5034  ;;  %v2583_v15 = vadd.f32 1e-05, %v2367_v28  ;;  %v9681_v28 = vld [vmem:[#allocation243_spill] sm:$0xff]  ;;  %v9687_v16 = vld [vmem:[#allocation184_spill] sm:$0xff] }
 0x4c1   :  { %v2748_v46 = vmul.f32 %v5035_v20, %v2424_v2 }
 0x4c2   :  { %4452 = vst.msk [vmem:[%s8932_s5 + $0x68] sm:$0xff] %vm1306_vm1, %v4344_v10  ;;  %v5037_v10 = vpop.eup %5036  ;;  %5044 = vrsqrt.f32 %v2583_v15  ;;  %v2856_v15 = vld [vmem:[%s8931_s4 + $0x128] sm:$0xff] }
 0x4c3   :  { %v3221_v21 = vpop.permute.xlu0 %3220  ;;  %v5039_v24 = vpop.eup %5038  ;;  %5046 = vrsqrt.f32 %v2588_v43  ;;  %v2964_v48 = vmul.f32 %v2748_v46, %v9687_v16  ;;  %v2851_v43 = vld [vmem:[%s8931_s4 + $0x100] sm:$0xff]  ;;  %v2536_v16 = vadd.f32 1e-05, %v2320_v7  ;;  %v2426_v7 = vld [vmem:[%s8930_s3 + $0x138] sm:$0xff] }
 0x4c4   :  { %3968 = vperm.xlu0 %4732, %v3070_v36   ;;  %3943 = vperm.xlu1 %4733, %v3065_v60   ;;  %v2315_v36 = vmul.f32 0.020408163, %v9681_v28  ;;  %v2959_v60 = vmul.f32 %v2743_v30, %v9683_v42  ;;  %v3698_v20 = vmul.f32 %v3221_v21, %v9684_v47  ;;  %v7768_v2 = vmul.f32 %v5039_v24, %v2478_v51  ;;  %v7780_v42 = vpop.permute.xlu1 %3475 }
 0x4c5   :  { %9689 = vst [vmem:[#allocation18_spill] sm:$0xff] %v7780_v42  ;;  %v3072_v24 = vsub.f32 %v2856_v15, %v2964_v48 }
 0x4c6   :  { %9685 = vst [vmem:[#allocation144_spill] sm:$0xff] %v7768_v2  ;;  %v2531_v28 = vadd.f32 1e-05, %v2315_v36  ;;  %v3067_v51 = vsub.f32 %v2851_v43, %v2959_v60 }
 0x4c7   :  { %v7756_v38 = vpop.permute.xlu0 %3490 }
 0x4c8   :  { %9680 = vst [vmem:[#allocation211_spill] sm:$0xff] %v7756_v38  ;;  %3330 = vperm.xlu0 %4732, %v2748_v46   ;;  %3305 = vperm.xlu1 %4733, %v2743_v30   ;;  %v7770_v38 = vmul.f32 %v5037_v10, %v2473_v25  ;;  %v2369_v30 = vmul.f32 0.020408163, %v9688_v39  ;;  %v2374_v10 = vmul.f32 0.020408163, %v7082_v59  ;;  %v5041_v46 = vpop.eup %5040  ;;  %v2421_v25 = vld [vmem:[%s8930_s3 + $0x110] sm:$0xff]  ;;  %5048 = vrsqrt.f32 %v2531_v28 }
 0x4c9   :  { %5050 = vrsqrt.f32 %v2536_v16  ;;  %v2745_v48 = vmul.f32 %v5041_v46, %v2421_v25  ;;  %v2475_v28 = vld [vmem:[%s8930_s3 + $0x2c0] sm:$0xff]  ;;  %v9692_v46 = vld [vmem:[#allocation177_spill] sm:$0xff]  ;;  %v9693_v25 = vld [vmem:[#allocation36_spill] sm:$0xff] }
 0x4ca   :  { %9686 = vst [vmem:[#allocation134_spill] sm:$0xff] %v7770_v38  ;;  %v2585_v59 = vadd.f32 1e-05, %v2369_v30  ;;  %v9691_v30 = vld [vmem:[#allocation245_spill] sm:$0xff] }
 0x4cb   :  { %v3869_v27 = vpop.permute.xlu0 %3868 }
 0x4cc   :  { %v4346_v21 = vadd.f32 %v3869_v27, %v3698_v20  ;;  %3600 = vperm.xlu0 %4732, %v7768_v2   ;;  %3575 = vperm.xlu1 %4733, %v7770_v38   ;;  %v5043_v27 = vpop.eup %5042  ;;  %v2590_v20 = vadd.f32 1e-05, %v2374_v10  ;;  %5052 = vrsqrt.f32 %v2585_v59  ;;  %v2322_v10 = vmul.f32 0.020408163, %v7159_v41  ;;  %v9695_v59 = vld [vmem:[#allocation26_spill] sm:$0xff]  ;;  %v2853_v41 = vld [vmem:[%s8931_s4 + $0x110] sm:$0xff] }
 0x4cd   :  { %v5045_v60 = vpop.eup %5044  ;;  %v2750_v15 = vmul.f32 %v5043_v27, %v2426_v7  ;;  %v3695_v2 = vmul.f32 %v3206_v34, %v9695_v59  ;;  %v2376_v34 = vmul.f32 0.020408163, %v7167_v53 }
 0x4ce   :  { %4454 = vst.msk [vmem:[%s8932_s5 + $0x78] sm:$0xff] %vm1306_vm1, %v4346_v21  ;;  %v5047_v43 = vpop.eup %5046  ;;  %v2480_v21 = vld [vmem:[%s8930_s3 + $0x2e8] sm:$0xff]  ;;  %5054 = vrsqrt.f32 %v2590_v20  ;;  %v7813_v42 = vmul.f32 %v5045_v60, %v2475_v28 }
 0x4cf   :  { %v3231_v36 = vpop.permute.xlu0 %3230  ;;  %v7811_v7 = vmul.f32 %v5047_v43, %v2480_v21 }
 0x4d0   :  { %3978 = vperm.xlu0 %4732, %v3072_v24   ;;  %3953 = vperm.xlu1 %4733, %v3067_v51   ;;  %v7795_v47 = vpop.xlane.xlu1 %2115  ;;  %v2317_v24 = vmul.f32 0.020408163, %v9691_v30  ;;  %v2961_v51 = vmul.f32 %v2745_v48, %v9692_v46  ;;  %v3700_v27 = vmul.f32 %v3231_v36, %v9693_v25  ;;  %v2423_v46 = vld [vmem:[%s8930_s3 + $0x120] sm:$0xff] }
 0x4d2   :  { %v2533_v20 = vadd.f32 1e-05, %v2317_v24  ;;  %v5049_v21 = vpop.eup %5048  ;;  %v3069_v24 = vsub.f32 %v2853_v41, %v2961_v51 }
 0x4d3   :  { %v7797_v39 = vpop.permute.xlu0 %3500  ;;  %v5051_v25 = vpop.eup %5050  ;;  %v2747_v51 = vmul.f32 %v5049_v21, %v2423_v46  ;;  %v9701_v21 = vld [vmem:[#allocation40_spill] sm:$0xff] }
 0x4d4   :  { %9690 = vst [vmem:[#allocation214_spill] sm:$0xff] %v7797_v39  ;;  %3340 = vperm.xlu0 %4732, %v2750_v15   ;;  %3315 = vperm.xlu1 %4733, %v2745_v48   ;;  %v7806_v16 = vpop.xlane.xlu1 %2277  ;;  %v9694_v39 = vld [vmem:[#allocation188_spill] sm:$0xff]  ;;  %5056 = vrsqrt.f32 %v2533_v20 }
 0x4d5   :  { %v2966_v38 = vmul.f32 %v2750_v15, %v9694_v39  ;;  %v9696_v48 = vld [vmem:[#allocation248_spill] sm:$0xff]  ;;  %v2538_v15 = vadd.f32 1e-05, %v2322_v10 }
 0x4d6   :  { %v2371_v36 = vmul.f32 0.020408163, %v9696_v48  ;;  %v2482_v48 = vld [vmem:[%s8930_s3 + $0x2f8] sm:$0xff]  ;;  %v2477_v20 = vld [vmem:[%s8930_s3 + $0x2d0] sm:$0xff] }
 0x4d7   :  { %v3879_v30 = vpop.permute.xlu0 %3878  ;;  %v3074_v28 = vsub.f32 %v2858_v17, %v2966_v38  ;;  %5058 = vrsqrt.f32 %v2538_v15  ;;  %v2592_v38 = vadd.f32 1e-05, %v2376_v34  ;;  %v2324_v15 = vmul.f32 0.020408163, %v7242_v3  ;;  %v9700_v34 = vld [vmem:[#allocation181_spill] sm:$0xff]  ;;  %v2855_v3 = vld [vmem:[%s8931_s4 + $0x120] sm:$0xff] }
 0x4d8   :  { %v4348_v43 = vadd.f32 %v3879_v30, %v3700_v27  ;;  %3610 = vperm.xlu0 %4732, %v7811_v7   ;;  %3585 = vperm.xlu1 %4733, %v7813_v42   ;;  %v3854_v60 = vpop.permute.xlu1 %3853  ;;  %v2587_v10 = vadd.f32 1e-05, %v2371_v36  ;;  %v5053_v27 = vpop.eup %5052  ;;  %v9698_v36 = vld [vmem:[#allocation251_spill] sm:$0xff] }
 0x4d9   :  { %v4343_v39 = vadd.f32 %v3854_v60, %v3695_v2  ;;  %v2428_v2 = vld [vmem:[%s8930_s3 + $0x148] sm:$0xff]  ;;  %v5055_v30 = vpop.eup %5054  ;;  %v7857_v46 = vmul.f32 %v5053_v27, %v2477_v20 }
 0x4da   :  { %4456 = vst.msk [vmem:[%s8932_s5 + $0x88] sm:$0xff] %vm1306_vm1, %v4348_v43  ;;  %v2752_v59 = vmul.f32 %v5051_v25, %v2428_v2  ;;  %5060 = vrsqrt.f32 %v2587_v10  ;;  %v2319_v43 = vmul.f32 0.020408163, %v9698_v36  ;;  %v9702_v25 = vld [vmem:[#allocation210_spill] sm:$0xff] }
 0x4db   :  { %4451 = vst.msk [vmem:[%s8932_s5 + $0x60] sm:$0xff] %vm1306_vm1, %v4343_v39  ;;  %v3241_v53 = vpop.permute.xlu0 %3240  ;;  %5062 = vrsqrt.f32 %v2592_v38  ;;  %v2963_v39 = vmul.f32 %v2747_v51, %v9700_v34  ;;  %v9703_v10 = vld [vmem:[#allocation30_spill] sm:$0xff] }
 0x4dc   :  { %3988 = vperm.xlu0 %4732, %v3074_v28   ;;  %3963 = vperm.xlu1 %4733, %v3069_v24   ;;  %v3216_v17 = vpop.permute.xlu1 %3215  ;;  %v3702_v28 = vmul.f32 %v3241_v53, %v9701_v21  ;;  %v7855_v24 = vmul.f32 %v5055_v30, %v2482_v48  ;;  %v2968_v2 = vmul.f32 %v2752_v59, %v9702_v25  ;;  %v2535_v38 = vadd.f32 1e-05, %v2319_v43  ;;  %v2425_v21 = vld [vmem:[%s8930_s3 + $0x130] sm:$0xff] }
 0x4dd   :  { %v3071_v43 = vsub.f32 %v2855_v3, %v2963_v39 }
 0x4de   :  { %v5057_v20 = vpop.eup %5056  ;;  %5064 = vrsqrt.f32 %v2535_v38  ;;  %v2479_v38 = vld [vmem:[%s8930_s3 + $0x2e0] sm:$0xff] }
 0x4df   :  { %v7841_v41 = vpop.permute.xlu0 %3510  ;;  %v2749_v25 = vmul.f32 %v5057_v20, %v2425_v21  ;;  %v9708_v21 = vld [vmem:[#allocation229_spill] sm:$0xff] }
 0x4e0   :  { %9697 = vst [vmem:[#allocation148_spill] sm:$0xff] %v7841_v41  ;;  %3350 = vperm.xlu0 %4732, %v2752_v59   ;;  %3325 = vperm.xlu1 %4733, %v2747_v51   ;;  %v7850_v60 = vpop.permute.xlu1 %3485  ;;  %v3697_v41 = vmul.f32 %v3216_v17, %v9703_v10  ;;  %v9704_v51 = vld [vmem:[#allocation102_spill] sm:$0xff]  ;;  %v2540_v59 = vadd.f32 1e-05, %v2324_v15  ;;  %v2378_v17 = vmul.f32 0.020408163, %v7244_v49 }
 0x4e1   :  { %9699 = vst [vmem:[#allocation138_spill] sm:$0xff] %v7850_v60  ;;  %v2860_v60 = vld [vmem:[%s8931_s4 + $0x148] sm:$0xff]  ;;  %v2373_v53 = vmul.f32 0.020408163, %v9704_v51 }
 0x4e2   :  { %v3076_v34 = vsub.f32 %v2860_v60, %v2968_v2  ;;  %5066 = vrsqrt.f32 %v2540_v59  ;;  %v2594_v39 = vadd.f32 1e-05, %v2378_v17  ;;  %v2484_v51 = vld [vmem:[%s8930_s3 + $0x308] sm:$0xff]  ;;  %v9706_v59 = vld [vmem:[#allocation185_spill] sm:$0xff] }
 0x4e3   :  { %v3889_v36 = vpop.permute.xlu0 %3888  ;;  %v2589_v15 = vadd.f32 1e-05, %v2373_v53  ;;  %v2321_v53 = vmul.f32 0.020408163, %v7131_v63  ;;  %v2965_v17 = vmul.f32 %v2749_v25, %v9706_v59 }
 0x4e4   :  { %v4350_v30 = vadd.f32 %v3889_v36, %v3702_v28  ;;  %3620 = vperm.xlu0 %4732, %v7855_v24   ;;  %3595 = vperm.xlu1 %4733, %v7857_v46   ;;  %v3864_v27 = vpop.permute.xlu1 %3863  ;;  %v5059_v28 = vpop.eup %5058 }
 0x4e5   :  { %v4345_v48 = vadd.f32 %v3864_v27, %v3697_v41  ;;  %v2430_v41 = vld [vmem:[%s8930_s3 + $0x158] sm:$0xff]  ;;  %v5061_v2 = vpop.eup %5060  ;;  %5068 = vrsqrt.f32 %v2589_v15  ;;  %v2326_v27 = vmul.f32 0.020408163, %v7318_v0  ;;  %v2857_v0 = vld [vmem:[%s8931_s4 + $0x130] sm:$0xff] }
 0x4e6   :  { %4458 = vst.msk [vmem:[%s8932_s5 + $0x98] sm:$0xff] %vm1306_vm1, %v4350_v30  ;;  %v2754_v10 = vmul.f32 %v5059_v28, %v2430_v41  ;;  %v5063_v36 = vpop.eup %5062  ;;  %5070 = vrsqrt.f32 %v2594_v39  ;;  %v9709_v41 = vld [vmem:[#allocation34_spill] sm:$0xff]  ;;  %v2537_v39 = vadd.f32 1e-05, %v2321_v53  ;;  %v3073_v53 = vsub.f32 %v2857_v0, %v2965_v17  ;;  %v2481_v0 = vld [vmem:[%s8930_s3 + $0x2f0] sm:$0xff] }
 0x4e7   :  { %4453 = vst.msk [vmem:[%s8932_s5 + $0x70] sm:$0xff] %vm1306_vm1, %v4345_v48  ;;  %v3251_v49 = vpop.permute.xlu0 %3250  ;;  %v9707_v48 = vld [vmem:[#allocation44_spill] sm:$0xff] }
 0x4e8   :  { %3998 = vperm.xlu0 %4732, %v3076_v34   ;;  %3973 = vperm.xlu1 %4733, %v3071_v43   ;;  %v3226_v60 = vpop.permute.xlu1 %3225  ;;  %v3704_v20 = vmul.f32 %v3251_v49, %v9707_v48  ;;  %v7899_v34 = vmul.f32 %v5063_v36, %v2484_v51  ;;  %v7901_v43 = vmul.f32 %v5061_v2, %v2479_v38  ;;  %v2375_v49 = vmul.f32 0.020408163, %v7150_v12  ;;  %v5065_v51 = vpop.eup %5064  ;;  %v2427_v12 = vld [vmem:[%s8930_s3 + $0x140] sm:$0xff] }
 0x4e9   :  { %v2970_v28 = vmul.f32 %v2754_v10, %v9708_v21  ;;  %v3699_v15 = vmul.f32 %v3226_v60, %v9709_v41  ;;  %v2380_v60 = vmul.f32 0.020408163, %v7323_v19  ;;  %5072 = vrsqrt.f32 %v2537_v39 }
 0x4ea   :  { %v2591_v48 = vadd.f32 1e-05, %v2375_v49  ;;  %v2323_v39 = vmul.f32 0.020408163, %v7202_v52 }
 0x4eb   :  { %v7885_v3 = vpop.permute.xlu0 %3520  ;;  %v2596_v17 = vadd.f32 1e-05, %v2380_v60  ;;  %v9711_v60 = vld [vmem:[#allocation48_spill] sm:$0xff] }
 0x4ec   :  { %3360 = vperm.xlu0 %4732, %v2754_v10   ;;  %3335 = vperm.xlu1 %4733, %v2749_v25   ;;  %v7894_v30 = vpop.permute.xlu1 %3495  ;;  %v2542_v10 = vadd.f32 1e-05, %v2326_v27  ;;  %v5067_v59 = vpop.eup %5066  ;;  %v2432_v27 = vld [vmem:[%s8930_s3 + $0x168] sm:$0xff] }
 0x4ed   :  { %9705 = vst [vmem:[#allocation215_spill] sm:$0xff] %v7894_v30  ;;  %v2862_v30 = vld [vmem:[%s8931_s4 + $0x158] sm:$0xff] }
 0x4ee   :  { %v3078_v38 = vsub.f32 %v2862_v30, %v2970_v28  ;;  %5074 = vrsqrt.f32 %v2542_v10  ;;  %v2756_v28 = vmul.f32 %v5067_v59, %v2432_v27  ;;  %v9713_v59 = vld [vmem:[#allocation38_spill] sm:$0xff] }
 0x4ef   :  { %v3899_v63 = vpop.permute.xlu0 %3898  ;;  %v5069_v21 = vpop.eup %5068  ;;  %5076 = vrsqrt.f32 %v2591_v48  ;;  %v2864_v48 = vld [vmem:[%s8931_s4 + $0x168] sm:$0xff] }
 0x4f0   :  { %v4352_v25 = vadd.f32 %v3899_v63, %v3704_v20  ;;  %3630 = vperm.xlu0 %4732, %v7899_v34   ;;  %3605 = vperm.xlu1 %4733, %v7901_v43   ;;  %v3874_v2 = vpop.permute.xlu1 %3873  ;;  %v2751_v20 = vmul.f32 %v5065_v51, %v2427_v12  ;;  %v5071_v41 = vpop.eup %5070  ;;  %v2486_v63 = vld [vmem:[%s8930_s3 + $0x318] sm:$0xff]  ;;  %5078 = vrsqrt.f32 %v2596_v17  ;;  %v2539_v17 = vadd.f32 1e-05, %v2323_v39 }
 0x4f1   :  { %v4347_v36 = vadd.f32 %v3874_v2, %v3699_v15  ;;  %v9710_v2 = vld [vmem:[#allocation204_spill] sm:$0xff]  ;;  %v7943_v51 = vmul.f32 %v5071_v41, %v2486_v63 }
 0x4f2   :  { %4460 = vst.msk [vmem:[%s8932_s5 + $0xa8] sm:$0xff] %vm1306_vm1, %v4352_v25  ;;  %v2328_v25 = vmul.f32 0.020408163, %v7419_v61  ;;  %v2967_v10 = vmul.f32 %v2751_v20, %v9710_v2  ;;  %v2859_v61 = vld [vmem:[%s8931_s4 + $0x140] sm:$0xff]  ;;  %5080 = vrsqrt.f32 %v2539_v17  ;;  %v2325_v17 = vmul.f32 0.020408163, %v7278_v35 }
 0x4f3   :  { %4455 = vst.msk [vmem:[%s8932_s5 + $0x80] sm:$0xff] %vm1306_vm1, %v4347_v36  ;;  %v3261_v19 = vpop.permute.xlu0 %3260  ;;  %v5073_v63 = vpop.eup %5072 }
 0x4f4   :  { %4008 = vperm.xlu0 %4732, %v3078_v38   ;;  %3983 = vperm.xlu1 %4733, %v3073_v53   ;;  %v3236_v30 = vpop.permute.xlu1 %3235  ;;  %v3706_v36 = vmul.f32 %v3261_v19, %v9711_v60  ;;  %v7945_v38 = vmul.f32 %v5069_v21, %v2481_v0  ;;  %v9712_v53 = vld [vmem:[#allocation246_spill] sm:$0xff]  ;;  %v2377_v19 = vmul.f32 0.020408163, %v7215_v8  ;;  %v3075_v39 = vsub.f32 %v2859_v61, %v2967_v10  ;;  %v2429_v8 = vld [vmem:[%s8930_s3 + $0x150] sm:$0xff] }
 0x4f5   :  { %v2972_v12 = vmul.f32 %v2756_v28, %v9712_v53  ;;  %v3701_v27 = vmul.f32 %v3236_v30, %v9713_v59  ;;  %v2382_v30 = vmul.f32 0.020408163, %v7426_v45  ;;  %v2753_v53 = vmul.f32 %v5073_v63, %v2429_v8  ;;  %v2483_v61 = vld [vmem:[%s8930_s3 + $0x300] sm:$0xff] }
 0x4f6   :  { %v2593_v60 = vadd.f32 1e-05, %v2377_v19  ;;  %v9716_v8 = vld [vmem:[#allocation42_spill] sm:$0xff] }
 0x4f7   :  { %v7929_v15 = vpop.permute.xlu0 %3530  ;;  %v3080_v0 = vsub.f32 %v2864_v48, %v2972_v12  ;;  %v2488_v48 = vld [vmem:[%s8930_s3 + $0x328] sm:$0xff] }
 0x4f8   :  { %3370 = vperm.xlu0 %4732, %v2756_v28   ;;  %3345 = vperm.xlu1 %4733, %v2751_v20   ;;  %v7938_v49 = vpop.permute.xlu1 %3505  ;;  %v2544_v28 = vadd.f32 1e-05, %v2328_v25  ;;  %v5075_v2 = vpop.eup %5074  ;;  %v2434_v25 = vld [vmem:[%s8930_s3 + $0x178] sm:$0xff] }
 0x4f9   :  { %v5077_v12 = vpop.eup %5076  ;;  %v2758_v59 = vmul.f32 %v5075_v2, %v2434_v25  ;;  %v2866_v25 = vld [vmem:[%s8931_s4 + $0x178] sm:$0xff] }
 0x4fa   :  { %5082 = vrsqrt.f32 %v2544_v28 }
 0x4fb   :  { %v3909_v52 = vpop.permute.xlu0 %3908  ;;  %5084 = vrsqrt.f32 %v2593_v60  ;;  %v2541_v60 = vadd.f32 1e-05, %v2325_v17  ;;  %v2436_v17 = vld [vmem:[%s8930_s3 + $0x188] sm:$0xff] }
 0x4fc   :  { %v4354_v20 = vadd.f32 %v3909_v52, %v3706_v36  ;;  %3640 = vperm.xlu0 %4732, %v7943_v51   ;;  %3615 = vperm.xlu1 %4733, %v7945_v38   ;;  %v3884_v21 = vpop.permute.xlu1 %3883  ;;  %v2598_v36 = vadd.f32 1e-05, %v2382_v30  ;;  %v9715_v30 = vld [vmem:[#allocation52_spill] sm:$0xff] }
 0x4fd   :  { %v4349_v41 = vadd.f32 %v3884_v21, %v3701_v27  ;;  %v5079_v27 = vpop.eup %5078  ;;  %v9714_v21 = vld [vmem:[#allocation223_spill] sm:$0xff] }
 0x4fe   :  { %4462 = vst.msk [vmem:[%s8932_s5 + $0xb8] sm:$0xff] %vm1306_vm1, %v4354_v20  ;;  %5086 = vrsqrt.f32 %v2598_v36  ;;  %v2330_v20 = vmul.f32 0.020408163, %v7600_v50  ;;  %v2969_v28 = vmul.f32 %v2753_v53, %v9714_v21  ;;  %v7987_v63 = vmul.f32 %v5079_v27, %v2488_v48  ;;  %v2861_v50 = vld [vmem:[%s8931_s4 + $0x150] sm:$0xff] }
 0x4ff   :  { %4457 = vst.msk [vmem:[%s8932_s5 + $0x90] sm:$0xff] %vm1306_vm1, %v4349_v41  ;;  %v3271_v45 = vpop.permute.xlu0 %3270  ;;  %5088 = vrsqrt.f32 %v2541_v60  ;;  %v2327_v60 = vmul.f32 0.020408163, %v7357_v6 }
 0x500   :  { %4018 = vperm.xlu0 %4732, %v3080_v0   ;;  %3993 = vperm.xlu1 %4733, %v3075_v39   ;;  %v3246_v10 = vpop.permute.xlu1 %3245  ;;  %v3708_v41 = vmul.f32 %v3271_v45, %v9715_v30  ;;  %v7989_v0 = vmul.f32 %v5077_v12, %v2483_v61  ;;  %v2974_v39 = vmul.f32 %v2758_v59, %v7129_v29  ;;  %v2379_v45 = vmul.f32 0.020408163, %v7285_v37  ;;  %v2431_v37 = vld [vmem:[%s8930_s3 + $0x160] sm:$0xff] }
 0x501   :  { %v3703_v2 = vmul.f32 %v3246_v10, %v9716_v8  ;;  %v2384_v10 = vmul.f32 0.020408163, %v7612_v9  ;;  %v3077_v48 = vsub.f32 %v2861_v50, %v2969_v28  ;;  %v2332_v30 = vmul.f32 0.020408163, %v7795_v47  ;;  %v2485_v50 = vld [vmem:[%s8930_s3 + $0x310] sm:$0xff] }
 0x502   :  { %v3082_v27 = vsub.f32 %v2866_v25, %v2974_v39  ;;  %v2490_v25 = vld [vmem:[%s8930_s3 + $0x338] sm:$0xff] }
 0x503   :  { %v7973_v52 = vpop.permute.xlu0 %3540  ;;  %v2600_v28 = vadd.f32 1e-05, %v2384_v10  ;;  %v9718_v10 = vld [vmem:[#allocation56_spill] sm:$0xff] }
 0x504   :  { %3380 = vperm.xlu0 %4732, %v2758_v59   ;;  %3355 = vperm.xlu1 %4733, %v2753_v53   ;;  %v7982_v19 = vpop.permute.xlu1 %3515  ;;  %v2546_v53 = vadd.f32 1e-05, %v2330_v20  ;;  %v5081_v59 = vpop.eup %5080  ;;  %v2595_v20 = vadd.f32 1e-05, %v2379_v45  ;;  %v2548_v45 = vadd.f32 1e-05, %v2332_v30 }
 0x505   :  { %v5083_v61 = vpop.eup %5082 }
 0x506   :  { %5090 = vrsqrt.f32 %v2546_v53  ;;  %v5085_v39 = vpop.eup %5084  ;;  %v2760_v8 = vmul.f32 %v5083_v61, %v2436_v17  ;;  %v2868_v17 = vld [vmem:[%s8931_s4 + $0x188] sm:$0xff] }
 0x507   :  { %v3919_v35 = vpop.permute.xlu0 %3918  ;;  %5092 = vrsqrt.f32 %v2595_v20  ;;  %v2543_v20 = vadd.f32 1e-05, %v2327_v60 }
 0x508   :  { %v4356_v36 = vadd.f32 %v3919_v35, %v3708_v41  ;;  %3650 = vperm.xlu0 %4732, %v7987_v63   ;;  %3625 = vperm.xlu1 %4733, %v7989_v0   ;;  %v3894_v29 = vpop.permute.xlu1 %3893  ;;  %v2755_v41 = vmul.f32 %v5081_v59, %v2431_v37  ;;  %5094 = vrsqrt.f32 %v2600_v28  ;;  %v9719_v37 = vld [vmem:[#allocation46_spill] sm:$0xff] }
 0x509   :  { %v4351_v12 = vadd.f32 %v3894_v29, %v3703_v2  ;;  %v5087_v2 = vpop.eup %5086  ;;  %v9717_v29 = vld [vmem:[#allocation238_spill] sm:$0xff]  ;;  %5096 = vrsqrt.f32 %v2548_v45 }
 0x50a   :  { %4464 = vst.msk [vmem:[%s8932_s5 + $0xc8] sm:$0xff] %vm1306_vm1, %v4356_v36  ;;  %v2386_v36 = vmul.f32 0.020408163, %v7806_v16  ;;  %v2971_v53 = vmul.f32 %v2755_v41, %v9717_v29  ;;  %v8032_v59 = vmul.f32 %v5087_v2, %v2490_v25  ;;  %v2863_v16 = vld [vmem:[%s8931_s4 + $0x160] sm:$0xff]  ;;  %5098 = vrsqrt.f32 %v2543_v20 }
 0x50b   :  { %4459 = vst.msk [vmem:[%s8932_s5 + $0xa0] sm:$0xff] %vm1306_vm1, %v4351_v12  ;;  %v3281_v9 = vpop.permute.xlu0 %3280 }
 0x50c   :  { %4028 = vperm.xlu0 %4732, %v3082_v27   ;;  %4003 = vperm.xlu1 %4733, %v3077_v48   ;;  %v3256_v21 = vpop.permute.xlu1 %3255  ;;  %v3710_v12 = vmul.f32 %v3281_v9, %v9718_v10  ;;  %v8034_v27 = vmul.f32 %v5085_v39, %v2485_v50  ;;  %v2976_v48 = vmul.f32 %v2760_v8, %v7208_v4  ;;  %v2381_v4 = vmul.f32 0.020408163, %v7361_v11  ;;  %v2438_v11 = vld [vmem:[%s8930_s3 + $0x198] sm:$0xff]  ;;  %v2433_v50 = vld [vmem:[%s8930_s3 + $0x170] sm:$0xff] }
 0x50d   :  { %v3705_v6 = vmul.f32 %v3256_v21, %v9719_v37  ;;  %v2602_v21 = vadd.f32 1e-05, %v2386_v36  ;;  %v2487_v37 = vld [vmem:[%s8930_s3 + $0x320] sm:$0xff] }
 0x50e   :  { %v3084_v39 = vsub.f32 %v2868_v17, %v2976_v48  ;;  %v2597_v45 = vadd.f32 1e-05, %v2381_v4  ;;  %v2492_v48 = vld [vmem:[%s8930_s3 + $0x348] sm:$0xff]  ;;  %v9720_v17 = vld [vmem:[#allocation60_spill] sm:$0xff] }
 0x50f   :  { %v8018_v35 = vpop.permute.xlu0 %3550  ;;  %5100 = vrsqrt.f32 %v2602_v21  ;;  %v9721_v21 = vld [vmem:[#allocation50_spill] sm:$0xff] }
 0x510   :  { %3390 = vperm.xlu0 %4732, %v2760_v8   ;;  %3365 = vperm.xlu1 %4733, %v2755_v41   ;;  %v8027_v47 = vpop.permute.xlu1 %3525  ;;  %v5089_v41 = vpop.eup %5088  ;;  %v3079_v8 = vsub.f32 %v2863_v16, %v2971_v53  ;;  %5102 = vrsqrt.f32 %v2597_v45 }
 0x511   :  { %v5091_v2 = vpop.eup %5090  ;;  %v2757_v53 = vmul.f32 %v5089_v41, %v2433_v50 }
 0x512   :  { %v5093_v36 = vpop.eup %5092  ;;  %v2762_v29 = vmul.f32 %v5091_v2, %v2438_v11 }
 0x513   :  { %v3929_v61 = vpop.permute.xlu0 %3928  ;;  %v5095_v10 = vpop.eup %5094 }
 0x514   :  { %v4358_v28 = vadd.f32 %v3929_v61, %v3710_v12  ;;  %3660 = vperm.xlu0 %4732, %v8032_v59   ;;  %3635 = vperm.xlu1 %4733, %v8034_v27   ;;  %v3904_v9 = vpop.permute.xlu1 %3903  ;;  %v2329_v61 = vmul.f32 0.020408163, %v7504_v33  ;;  %v8073_v20 = vmul.f32 %v5095_v10, %v2492_v48  ;;  %v5097_v4 = vpop.eup %5096  ;;  %v2865_v33 = vld [vmem:[%s8931_s4 + $0x170] sm:$0xff]  ;;  %v2494_v10 = vld [vmem:[%s8930_s3 + $0x358] sm:$0xff] }
 0x515   :  { %v4353_v30 = vadd.f32 %v3904_v9, %v3705_v6  ;;  %v2973_v9 = vmul.f32 %v2757_v53, %v7104_v58  ;;  %v2383_v58 = vmul.f32 0.020408163, %v7515_v22  ;;  %v5099_v50 = vpop.eup %5098 }
 0x516   :  { %4466 = vst.msk [vmem:[%s8932_s5 + $0xd8] sm:$0xff] %vm1306_vm1, %v4358_v28  ;;  %v8075_v28 = vmul.f32 %v5093_v36, %v2487_v37  ;;  %v2435_v36 = vld [vmem:[%s8930_s3 + $0x180] sm:$0xff] }
 0x517   :  { %4461 = vst.msk [vmem:[%s8932_s5 + $0xb0] sm:$0xff] %vm1306_vm1, %v4353_v30  ;;  %v3291_v25 = vpop.permute.xlu0 %3290  ;;  %v3081_v45 = vsub.f32 %v2865_v33, %v2973_v9  ;;  %v2599_v37 = vadd.f32 1e-05, %v2383_v58  ;;  %v2978_v9 = vmul.f32 %v2762_v29, %v7288_v40  ;;  %v2385_v40 = vmul.f32 0.020408163, %v7701_v26  ;;  %v9722_v33 = vld [vmem:[#allocation64_spill] sm:$0xff] }
 0x518   :  { %4038 = vperm.xlu0 %4732, %v3084_v39   ;;  %4013 = vperm.xlu1 %4733, %v3079_v8   ;;  %v3266_v60 = vpop.permute.xlu1 %3265  ;;  %v3712_v16 = vmul.f32 %v3291_v25, %v9720_v17  ;;  %v2440_v39 = vld [vmem:[%s8930_s3 + $0x1a8] sm:$0xff]  ;;  %v2545_v25 = vadd.f32 1e-05, %v2329_v61  ;;  %v2331_v61 = vmul.f32 0.020408163, %v7685_v1  ;;  %v2759_v17 = vmul.f32 %v5099_v50, %v2435_v36  ;;  %v2867_v26 = vld [vmem:[%s8931_s4 + $0x180] sm:$0xff] }
 0x519   :  { %v3707_v30 = vmul.f32 %v3266_v60, %v9721_v21  ;;  %v2764_v60 = vmul.f32 %v5097_v4, %v2440_v39  ;;  %v2872_v36 = vld [vmem:[%s8931_s4 + $0x1a8] sm:$0xff] }
 0x51a   :  { %5104 = vrsqrt.f32 %v2545_v25  ;;  %v2547_v39 = vadd.f32 1e-05, %v2331_v61 }
 0x51b   :  { %v8061_v12 = vpop.permute.xlu0 %3560  ;;  %5106 = vrsqrt.f32 %v2599_v37  ;;  %v2980_v58 = vmul.f32 %v2764_v60, %v7367_v57  ;;  %v9725_v37 = vld [vmem:[#allocation217_spill] sm:$0xff] }
 0x51c   :  { %3400 = vperm.xlu0 %4732, %v2762_v29   ;;  %3375 = vperm.xlu1 %4733, %v2757_v53   ;;  %v8069_v6 = vpop.permute.xlu1 %3535  ;;  %v5101_v53 = vpop.eup %5100  ;;  %v2975_v29 = vmul.f32 %v2759_v17, %v7175_v5  ;;  %5108 = vrsqrt.f32 %v2547_v39 }
 0x51d   :  { %v5103_v4 = vpop.eup %5102  ;;  %v3088_v57 = vsub.f32 %v2872_v36, %v2980_v58  ;;  %v9728_v36 = vld [vmem:[#allocation68_spill] sm:$0xff] }
 0x51f   :  { %v3939_v41 = vpop.permute.xlu0 %3938 }
 0x520   :  { %v4360_v8 = vadd.f32 %v3939_v41, %v3712_v16  ;;  %3670 = vperm.xlu0 %4732, %v8073_v20   ;;  %3645 = vperm.xlu1 %4733, %v8075_v28   ;;  %v3914_v2 = vpop.permute.xlu1 %3913  ;;  %v8103_v16 = vmul.f32 %v5101_v53, %v2494_v10  ;;  %v2489_v41 = vld [vmem:[%s8930_s3 + $0x330] sm:$0xff] }
 0x521   :  { %v4355_v11 = vadd.f32 %v3914_v2, %v3707_v30  ;;  %v2870_v30 = vld [vmem:[%s8931_s4 + $0x198] sm:$0xff]  ;;  %v8120_v25 = vmul.f32 %v5103_v4, %v2489_v41 }
 0x522   :  { %4468 = vst.msk [vmem:[%s8932_s5 + $0xe8] sm:$0xff] %vm1306_vm1, %v4360_v8  ;;  %v3086_v2 = vsub.f32 %v2870_v30, %v2978_v9  ;;  %v2874_v4 = vld [vmem:[%s8931_s4 + $0x1b8] sm:$0xff]  ;;  %v2437_v30 = vld [vmem:[%s8930_s3 + $0x190] sm:$0xff] }
 0x523   :  { %4463 = vst.msk [vmem:[%s8932_s5 + $0xc0] sm:$0xff] %vm1306_vm1, %v4355_v11  ;;  %v3301_v22 = vpop.permute.xlu0 %3300  ;;  %v9723_v11 = vld [vmem:[#allocation54_spill] sm:$0xff] }
 0x524   :  { %3410 = vperm.xlu0 %4732, %v2764_v60   ;;  %4023 = vperm.xlu1 %4733, %v3081_v45   ;;  %v3276_v48 = vpop.permute.xlu1 %3275  ;;  %v3714_v8 = vmul.f32 %v3301_v22, %v9722_v33  ;;  %v2601_v22 = vadd.f32 1e-05, %v2385_v40  ;;  %v3083_v60 = vsub.f32 %v2867_v26, %v2975_v29  ;;  %v9726_v29 = vld [vmem:[#allocation93_spill] sm:$0xff]  ;;  %v9727_v33 = vld [vmem:[#allocation234_spill] sm:$0xff] }
 0x525   :  { %v3709_v50 = vmul.f32 %v3276_v48, %v9723_v11  ;;  %v9724_v48 = vld [vmem:[#allocation80_spill] sm:$0xff]  ;;  %v2876_v11 = vld [vmem:[%s8931_s4 + $0x1c8] sm:$0xff] }
 0x526   :  { %v2982_v61 = vmul.f32 %v9725_v37, %v9724_v48  ;;  %5110 = vrsqrt.f32 %v2601_v22  ;;  %v9729_v22 = vld [vmem:[#allocation105_spill] sm:$0xff]  ;;  %v9731_v48 = vld [vmem:[#allocation58_spill] sm:$0xff] }
 0x527   :  { %v8106_v21 = vpop.permute.xlu0 %3570 }
 0x528   :  { %3680 = vperm.xlu0 %4732, %v8103_v16   ;;  %3385 = vperm.xlu1 %4733, %v2759_v17   ;;  %v8115_v1 = vpop.permute.xlu1 %3545  ;;  %v5105_v17 = vpop.eup %5104  ;;  %v3090_v39 = vsub.f32 %v2874_v4, %v2982_v61  ;;  %v2439_v4 = vld [vmem:[%s8930_s3 + $0x1a0] sm:$0xff] }
 0x529   :  { %v2761_v40 = vmul.f32 %v5105_v17, %v2437_v30  ;;  %v2878_v17 = vld [vmem:[%s8931_s4 + $0x1d8] sm:$0xff] }
 0x52b   :  { %v3949_v45 = vpop.permute.xlu0 %3948 }
 0x52c   :  { %v4362_v53 = vadd.f32 %v3949_v45, %v3714_v8  ;;  %4048 = vperm.xlu0 %4732, %v3086_v2   ;;  %3655 = vperm.xlu1 %4733, %v8120_v25   ;;  %v3924_v5 = vpop.permute.xlu1 %3923  ;;  %v2984_v8 = vmul.f32 %v9727_v33, %v9726_v29  ;;  %v5107_v2 = vpop.eup %5106  ;;  %v9732_v33 = vld [vmem:[#allocation117_spill] sm:$0xff] }
 0x52d   :  { %v4357_v10 = vadd.f32 %v3924_v5, %v3709_v50  ;;  %v2491_v50 = vld [vmem:[%s8930_s3 + $0x340] sm:$0xff] }
 0x52e   :  { %4470 = vst.msk [vmem:[%s8932_s5 + $0xf8] sm:$0xff] %vm1306_vm1, %v4362_v53  ;;  %v3092_v53 = vsub.f32 %v2876_v11, %v2984_v8  ;;  %v8160_v5 = vmul.f32 %v5107_v2, %v2491_v50  ;;  %v2988_v8 = vmul.f32 %v7141_v55, %v9732_v33  ;;  %v2880_v50 = vld [vmem:[%s8931_s4 + $0x1e8] sm:$0xff] }
 0x52f   :  { %4465 = vst.msk [vmem:[%s8932_s5 + $0xd0] sm:$0xff] %vm1306_vm1, %v4357_v10  ;;  %v3311_v9 = vpop.permute.xlu0 %3310  ;;  %v9730_v10 = vld [vmem:[#allocation252_spill] sm:$0xff] }
 0x530   :  { %4058 = vperm.xlu0 %4732, %v3088_v57   ;;  %4033 = vperm.xlu1 %4733, %v3083_v60   ;;  %v3286_v41 = vpop.permute.xlu1 %3285  ;;  %v3716_v26 = vmul.f32 %v3311_v9, %v9728_v36  ;;  %v2986_v57 = vmul.f32 %v9730_v10, %v9729_v22  ;;  %v5109_v60 = vpop.eup %5108  ;;  %v2493_v36 = vld [vmem:[%s8930_s3 + $0x350] sm:$0xff]  ;;  %v3096_v22 = vsub.f32 %v2880_v50, %v2988_v8  ;;  %v2871_v50 = vld [vmem:[%s8931_s4 + $0x1a0] sm:$0xff] }
 0x531   :  { %v3711_v37 = vmul.f32 %v3286_v41, %v9731_v48  ;;  %v2763_v29 = vmul.f32 %v5109_v60, %v2439_v4  ;;  %v5111_v2 = vpop.eup %5110  ;;  %v2977_v60 = vmul.f32 %v2761_v40, %v7248_v14 }
 0x532   :  { %v3094_v41 = vsub.f32 %v2878_v17, %v2986_v57  ;;  %v8190_v10 = vmul.f32 %v5111_v2, %v2493_v36  ;;  %v2882_v57 = vld [vmem:[%s8931_s4 + $0x1f8] sm:$0xff]  ;;  %v9734_v17 = vld [vmem:[#allocation72_spill] sm:$0xff]  ;;  %v2884_v2 = vld [vmem:[%s8931_s4 + $0x208] sm:$0xff] }
 0x533   :  { %v8149_v58 = vpop.permute.xlu0 %3580 }
 0x534   :  { %4068 = vperm.xlu0 %4732, %v3090_v39   ;;  %3395 = vperm.xlu1 %4733, %v2761_v40   ;;  %v8157_v45 = vpop.permute.xlu1 %3555  ;;  %v9737_v40 = vld [vmem:[#allocation62_spill] sm:$0xff] }
 0x537   :  { %v3959_v61 = vpop.permute.xlu0 %3958 }
 0x538   :  { %v4364_v30 = vadd.f32 %v3959_v61, %v3716_v26  ;;  %4078 = vperm.xlu0 %4732, %v3092_v53   ;;  %3665 = vperm.xlu1 %4733, %v8160_v5   ;;  %v3934_v9 = vpop.permute.xlu1 %3933  ;;  %v9733_v53 = vld [vmem:[#allocation129_spill] sm:$0xff] }
 0x539   :  { %v4359_v39 = vadd.f32 %v3934_v9, %v3711_v37  ;;  %v2990_v55 = vmul.f32 %v7222_v18, %v9733_v53  ;;  %v2869_v37 = vld [vmem:[%s8931_s4 + $0x190] sm:$0xff]  ;;  %v9735_v9 = vld [vmem:[#allocation133_spill] sm:$0xff] }
 0x53a   :  { %4472 = vst.msk [vmem:[%s8932_s5 + $0x108] sm:$0xff] %vm1306_vm1, %v4364_v30  ;;  %v3085_v30 = vsub.f32 %v2869_v37, %v2977_v60 }
 0x53b   :  { %4467 = vst.msk [vmem:[%s8932_s5 + $0xe0] sm:$0xff] %vm1306_vm1, %v4359_v39  ;;  %v3321_v11 = vpop.permute.xlu0 %3320  ;;  %v3098_v18 = vsub.f32 %v2882_v57, %v2990_v55  ;;  %v2992_v39 = vmul.f32 %v7300_v23, %v9735_v9  ;;  %v9740_v57 = vld [vmem:[#allocation193_spill] sm:$0xff] }
 0x53c   :  { %4088 = vperm.xlu0 %4732, %v3094_v41   ;;  %3405 = vperm.xlu1 %4733, %v2763_v29   ;;  %v3296_v26 = vpop.permute.xlu1 %3295  ;;  %v3718_v4 = vmul.f32 %v3321_v11, %v9734_v17  ;;  %v9736_v41 = vld [vmem:[#allocation190_spill] sm:$0xff]  ;;  %v2873_v17 = vld [vmem:[%s8931_s4 + $0x1b0] sm:$0xff] }
 0x53d   :  { %v2979_v14 = vmul.f32 %v2763_v29, %v9736_v41  ;;  %v3713_v33 = vmul.f32 %v3296_v26, %v9737_v40  ;;  %v3100_v23 = vsub.f32 %v2884_v2, %v2992_v39  ;;  %v9738_v26 = vld [vmem:[#allocation137_spill] sm:$0xff]  ;;  %v2888_v2 = vld [vmem:[%s8931_s4 + $0x228] sm:$0xff] }
 0x53e   :  { %v2994_v55 = vmul.f32 %v7380_v56, %v9738_v26  ;;  %v9746_v26 = vld [vmem:[#allocation101_spill] sm:$0xff] }
 0x53f   :  { %v8196_v48 = vpop.permute.xlu0 %3590  ;;  %v3087_v29 = vsub.f32 %v2871_v50, %v2979_v14  ;;  %v9743_v14 = vld [vmem:[#allocation141_spill] sm:$0xff] }
 0x540   :  { %4098 = vperm.xlu0 %4732, %v3096_v22   ;;  %3675 = vperm.xlu1 %4733, %v8190_v10   ;;  %v8202_v61 = vpop.permute.xlu1 %3565  ;;  %v9739_v22 = vld [vmem:[#allocation78_spill] sm:$0xff]  ;;  %v2996_v40 = vmul.f32 %v7405_v31, %v9743_v14  ;;  %v9750_v14 = vld [vmem:[#allocation113_spill] sm:$0xff] }
 0x541   :  { %v2981_v60 = vmul.f32 %v9740_v57, %v9739_v22  ;;  %v9748_v57 = vld [vmem:[#allocation66_spill] sm:$0xff] }
 0x543   :  { %v3969_v8 = vpop.permute.xlu0 %3968  ;;  %v3089_v41 = vsub.f32 %v2873_v17, %v2981_v60  ;;  %v2890_v17 = vld [vmem:[%s8931_s4 + $0x238] sm:$0xff] }
 0x544   :  { %v4366_v36 = vadd.f32 %v3969_v8, %v3718_v4  ;;  %4108 = vperm.xlu0 %4732, %v3098_v18   ;;  %4043 = vperm.xlu1 %4733, %v3085_v30   ;;  %v3944_v11 = vpop.permute.xlu1 %3943  ;;  %v2886_v18 = vld [vmem:[%s8931_s4 + $0x218] sm:$0xff]  ;;  %v9742_v30 = vld [vmem:[#allocation218_spill] sm:$0xff] }
 0x545   :  { %v4361_v53 = vadd.f32 %v3944_v11, %v3713_v33  ;;  %v9741_v4 = vld [vmem:[#allocation89_spill] sm:$0xff]  ;;  %v3102_v39 = vsub.f32 %v2886_v18, %v2994_v55  ;;  %v2875_v33 = vld [vmem:[%s8931_s4 + $0x1c0] sm:$0xff] }
 0x546   :  { %4474 = vst.msk [vmem:[%s8932_s5 + $0x118] sm:$0xff] %vm1306_vm1, %v4366_v36  ;;  %v2983_v9 = vmul.f32 %v9742_v30, %v9741_v4  ;;  %v9744_v11 = vld [vmem:[#allocation77_spill] sm:$0xff]  ;;  %v2877_v4 = vld [vmem:[%s8931_s4 + $0x1d0] sm:$0xff] }
 0x547   :  { %4469 = vst.msk [vmem:[%s8932_s5 + $0xf0] sm:$0xff] %vm1306_vm1, %v4361_v53  ;;  %v3331_v37 = vpop.permute.xlu0 %3330  ;;  %v9747_v55 = vld [vmem:[#allocation237_spill] sm:$0xff] }
 0x548   :  { %4118 = vperm.xlu0 %4732, %v3100_v23   ;;  %4053 = vperm.xlu1 %4733, %v3087_v29   ;;  %v3306_v56 = vpop.permute.xlu1 %3305  ;;  %v3091_v36 = vsub.f32 %v2875_v33, %v2983_v9  ;;  %v3720_v53 = vmul.f32 %v3331_v37, %v9744_v11  ;;  %v3104_v23 = vsub.f32 %v2888_v2, %v2996_v40  ;;  %v9745_v29 = vld [vmem:[#allocation146_spill] sm:$0xff] }
 0x549   :  { %v2998_v31 = vmul.f32 %v7428_v62, %v9745_v29  ;;  %v2985_v22 = vmul.f32 %v9747_v55, %v9746_v26  ;;  %v3715_v60 = vmul.f32 %v3306_v56, %v9748_v57  ;;  %v9751_v40 = vld [vmem:[#allocation2_spill] sm:$0xff] }
 0x54a   :  { %v2987_v33 = vmul.f32 %v9751_v40, %v9750_v14  ;;  %v2879_v11 = vld [vmem:[%s8931_s4 + $0x1e0] sm:$0xff]  ;;  %v9759_v14 = vld [vmem:[#allocation131_spill] sm:$0xff] }
 0x54b   :  { %v8240_v8 = vpop.permute.xlu0 %3600  ;;  %v3106_v62 = vsub.f32 %v2890_v17, %v2998_v31  ;;  %v3093_v56 = vsub.f32 %v2877_v4, %v2985_v22  ;;  %v9754_v55 = vld [vmem:[#allocation154_spill] sm:$0xff]  ;;  %v2894_v17 = vld [vmem:[%s8931_s4 + $0x258] sm:$0xff] }
 0x54c   :  { %4128 = vperm.xlu0 %4732, %v3102_v39   ;;  %4063 = vperm.xlu1 %4733, %v3089_v41   ;;  %v8245_v50 = vpop.permute.xlu1 %3575  ;;  %v9749_v39 = vld [vmem:[#allocation150_spill] sm:$0xff]  ;;  %v3095_v26 = vsub.f32 %v2879_v11, %v2987_v33 }
 0x54d   :  { %v3000_v41 = vmul.f32 %v7461_v32, %v9749_v39  ;;  %v9755_v22 = vld [vmem:[#allocation194_spill] sm:$0xff] }
 0x54e   :  { %v3002_v57 = vmul.f32 %v9755_v22, %v9754_v55  ;;  %v9758_v39 = vld [vmem:[#allocation130_spill] sm:$0xff] }
 0x54f   :  { %v3979_v18 = vpop.permute.xlu0 %3978  ;;  %v9760_v40 = vld [vmem:[#allocation10_spill] sm:$0xff] }
 0x550   :  { %v4368_v30 = vadd.f32 %v3979_v18, %v3720_v53  ;;  %4138 = vperm.xlu0 %4732, %v3104_v23   ;;  %4073 = vperm.xlu1 %4733, %v3091_v36   ;;  %v3954_v37 = vpop.permute.xlu1 %3953  ;;  %v2892_v36 = vld [vmem:[%s8931_s4 + $0x248] sm:$0xff]  ;;  %v9752_v53 = vld [vmem:[#allocation125_spill] sm:$0xff]  ;;  %v9753_v23 = vld [vmem:[#allocation6_spill] sm:$0xff]  ;;  %v2991_v33 = vmul.f32 %v9760_v40, %v9759_v14 }
 0x551   :  { %v4363_v9 = vadd.f32 %v3954_v37, %v3715_v60  ;;  %v2989_v29 = vmul.f32 %v9753_v23, %v9752_v53  ;;  %v3108_v31 = vsub.f32 %v2892_v36, %v3000_v41  ;;  %v2881_v60 = vld [vmem:[%s8931_s4 + $0x1f0] sm:$0xff]  ;;  %v9761_v36 = vld [vmem:[#allocation70_spill] sm:$0xff]  ;;  %v2896_v23 = vld [vmem:[%s8931_s4 + $0x268] sm:$0xff] }
 0x552   :  { %4476 = vst.msk [vmem:[%s8932_s5 + $0x128] sm:$0xff] %vm1306_vm1, %v4368_v30  ;;  %v9756_v37 = vld [vmem:[#allocation84_spill] sm:$0xff]  ;;  %v9762_v22 = vld [vmem:[#allocation162_spill] sm:$0xff] }
 0x553   :  { %4471 = vst.msk [vmem:[%s8932_s5 + $0x100] sm:$0xff] %vm1306_vm1, %v4363_v9  ;;  %v3341_v2 = vpop.permute.xlu0 %3340  ;;  %v3097_v30 = vsub.f32 %v2881_v60, %v2989_v29  ;;  %v2883_v29 = vld [vmem:[%s8931_s4 + $0x200] sm:$0xff]  ;;  %v9763_v60 = vld [vmem:[#allocation135_spill] sm:$0xff] }
 0x554   :  { %4148 = vperm.xlu0 %4732, %v3106_v62   ;;  %4083 = vperm.xlu1 %4733, %v3093_v56   ;;  %v3316_v32 = vpop.permute.xlu1 %3315  ;;  %v3722_v9 = vmul.f32 %v3341_v2, %v9756_v37  ;;  %v3110_v62 = vsub.f32 %v2894_v17, %v3002_v57  ;;  %v9757_v56 = vld [vmem:[#allocation158_spill] sm:$0xff]  ;;  %v3099_v55 = vsub.f32 %v2883_v29, %v2991_v33  ;;  %v9764_v17 = vld [vmem:[#allocation199_spill] sm:$0xff]  ;;  %v9768_v29 = vld [vmem:[#allocation92_spill] sm:$0xff] }
 0x555   :  { %v3004_v41 = vmul.f32 %v9758_v39, %v9757_v56  ;;  %v3717_v11 = vmul.f32 %v3316_v32, %v9761_v36  ;;  %v3006_v57 = vmul.f32 %v7562_v13, %v9762_v22  ;;  %v2993_v37 = vmul.f32 %v9764_v17, %v9763_v60  ;;  %v9765_v56 = vld [vmem:[#allocation139_spill] sm:$0xff]  ;;  %v9766_v39 = vld [vmem:[#allocation192_spill] sm:$0xff]  ;;  %v9767_v33 = vld [vmem:[#allocation166_spill] sm:$0xff] }
 0x556   :  { %v3008_v36 = vmul.f32 %v7594_v54, %v9767_v33  ;;  %v9770_v22 = vld [vmem:[#allocation170_spill] sm:$0xff]  ;;  %v9771_v60 = vld [vmem:[#allocation143_spill] sm:$0xff]  ;;  %v9772_v17 = vld [vmem:[#allocation205_spill] sm:$0xff] }
 0x557   :  { %v8284_v18 = vpop.permute.xlu0 %3610  ;;  %v3112_v32 = vsub.f32 %v2896_v23, %v3004_v41  ;;  %v2995_v41 = vmul.f32 %v9766_v39, %v9765_v56  ;;  %v2900_v23 = vld [vmem:[%s8931_s4 + $0x288] sm:$0xff]  ;;  %v2902_v39 = vld [vmem:[%s8931_s4 + $0x298] sm:$0xff]  ;;  %v9774_v33 = vld [vmem:[#allocation174_spill] sm:$0xff] }
 0x558   :  { %4158 = vperm.xlu0 %4732, %v3108_v31   ;;  %4093 = vperm.xlu1 %4733, %v3095_v26   ;;  %v8289_v4 = vpop.permute.xlu1 %3585  ;;  %v3116_v54 = vsub.f32 %v2900_v23, %v3008_v36  ;;  %v9775_v36 = vld [vmem:[#allocation209_spill] sm:$0xff]  ;;  %v9777_v23 = vld [vmem:[#allocation14_spill] sm:$0xff] }
 0x55b   :  { %v3989_v53 = vpop.permute.xlu0 %3988 }
 0x55c   :  { %v4370_v31 = vadd.f32 %v3989_v53, %v3722_v9  ;;  %4168 = vperm.xlu0 %4732, %v3110_v62   ;;  %4103 = vperm.xlu1 %4733, %v3097_v30   ;;  %v3964_v2 = vpop.permute.xlu1 %3963  ;;  %v2898_v9 = vld [vmem:[%s8931_s4 + $0x278] sm:$0xff]  ;;  %v2885_v62 = vld [vmem:[%s8931_s4 + $0x210] sm:$0xff] }
 0x55d   :  { %v4365_v26 = vadd.f32 %v3964_v2, %v3717_v11  ;;  %v3114_v14 = vsub.f32 %v2898_v9, %v3006_v57  ;;  %v3101_v40 = vsub.f32 %v2885_v62, %v2993_v37  ;;  %v2887_v11 = vld [vmem:[%s8931_s4 + $0x220] sm:$0xff]  ;;  %v3010_v57 = vmul.f32 %v7633_v44, %v9770_v22  ;;  %v9773_v9 = vld [vmem:[#allocation75_spill] sm:$0xff] }
 0x55e   :  { %4478 = vst.msk [vmem:[%s8932_s5 + $0x138] sm:$0xff] %vm1306_vm1, %v4370_v31  ;;  %v2997_v37 = vmul.f32 %v9772_v17, %v9771_v60  ;;  %v9778_v22 = vld [vmem:[#allocation151_spill] sm:$0xff] }
 0x55f   :  { %4473 = vst.msk [vmem:[%s8932_s5 + $0x110] sm:$0xff] %vm1306_vm1, %v4365_v26  ;;  %v3351_v30 = vpop.permute.xlu0 %3350  ;;  %v3103_v26 = vsub.f32 %v2887_v11, %v2995_v41  ;;  %v2889_v41 = vld [vmem:[%s8931_s4 + $0x230] sm:$0xff]  ;;  %v3118_v44 = vsub.f32 %v2902_v39, %v3010_v57  ;;  %v3012_v11 = vmul.f32 %v9775_v36, %v9774_v33  ;;  %v9779_v57 = vld [vmem:[#allocation195_spill] sm:$0xff] }
 0x560   :  { %4178 = vperm.xlu0 %4732, %v3112_v32   ;;  %4113 = vperm.xlu1 %4733, %v3099_v55   ;;  %v3326_v13 = vpop.permute.xlu1 %3325  ;;  %v9769_v32 = vld [vmem:[#allocation91_spill] sm:$0xff]  ;;  %v3001_v60 = vmul.f32 %v9779_v57, %v9778_v22  ;;  %v2893_v39 = vld [vmem:[%s8931_s4 + $0x250] sm:$0xff]  ;;  %v9789_v57 = vld [vmem:[#allocation82_spill] sm:$0xff] }
 0x561   :  { %v3724_v55 = vmul.f32 %v3351_v30, %v9769_v32  ;;  %v3719_v62 = vmul.f32 %v3326_v13, %v9773_v9  ;;  %v3105_v13 = vsub.f32 %v2889_v41, %v2997_v37  ;;  %v2904_v32 = vld [vmem:[%s8931_s4 + $0x2a8] sm:$0xff]  ;;  %v9780_v9 = vld [vmem:[#allocation178_spill] sm:$0xff]  ;;  %v9784_v33 = vld [vmem:[#allocation96_spill] sm:$0xff] }
 0x562   :  { %v3120_v17 = vsub.f32 %v2904_v32, %v3012_v11  ;;  %v9787_v32 = vld [vmem:[#allocation155_spill] sm:$0xff] }
 0x563   :  { %v3621_v53 = vpop.permute.xlu0 %3620 }
 0x564   :  { %v8332_v31 = vmul.f32 %v3621_v53, %v9768_v29  ;;  %4188 = vperm.xlu0 %4732, %v3114_v14   ;;  %4123 = vperm.xlu1 %4733, %v3101_v40   ;;  %v8334_v2 = vpop.permute.xlu1 %3595  ;;  %v9776_v53 = vld [vmem:[#allocation147_spill] sm:$0xff] }
 0x565   :  { %v2999_v29 = vmul.f32 %v9777_v23, %v9776_v53  ;;  %v9785_v53 = vld [vmem:[#allocation182_spill] sm:$0xff]  ;;  %v9786_v23 = vld [vmem:[#allocation140_spill] sm:$0xff] }
 0x567   :  { %v3999_v56 = vpop.permute.xlu0 %3998 }
 0x568   :  { %v4372_v14 = vadd.f32 %v3999_v56, %v3724_v55  ;;  %4198 = vperm.xlu0 %4732, %v3116_v54   ;;  %4133 = vperm.xlu1 %4733, %v3103_v26   ;;  %v3974_v30 = vpop.permute.xlu1 %3973  ;;  %v2891_v55 = vld [vmem:[%s8931_s4 + $0x240] sm:$0xff] }
 0x569   :  { %v4367_v40 = vadd.f32 %v3974_v30, %v3719_v62  ;;  %v3107_v37 = vsub.f32 %v2891_v55, %v2999_v29  ;;  %v9781_v62 = vld [vmem:[#allocation136_spill] sm:$0xff]  ;;  %v9782_v30 = vld [vmem:[#allocation97_spill] sm:$0xff]  ;;  %v3016_v29 = vmul.f32 %v9786_v23, %v9785_v53  ;;  %v9788_v55 = vld [vmem:[#allocation203_spill] sm:$0xff] }
 0x56a   :  { %4480 = vst.msk [vmem:[%s8932_s5 + $0x148] sm:$0xff] %vm1306_vm1, %v4372_v14  ;;  %v3014_v56 = vmul.f32 %v9781_v62, %v9780_v9  ;;  %v2906_v14 = vld [vmem:[%s8931_s4 + $0x2b8] sm:$0xff]  ;;  %v3003_v22 = vmul.f32 %v9788_v55, %v9787_v32  ;;  %v9793_v53 = vld [vmem:[#allocation206_spill] sm:$0xff]  ;;  %v9794_v32 = vld [vmem:[#allocation163_spill] sm:$0xff] }
 0x56b   :  { %4475 = vst.msk [vmem:[%s8932_s5 + $0x120] sm:$0xff] %vm1306_vm1, %v4367_v40  ;;  %v3361_v26 = vpop.permute.xlu0 %3360  ;;  %v9795_v55 = vld [vmem:[#allocation212_spill] sm:$0xff] }
 0x56c   :  { %4208 = vperm.xlu0 %4732, %v3118_v44   ;;  %4143 = vperm.xlu1 %4733, %v3105_v13   ;;  %v3336_v54 = vpop.permute.xlu1 %3335  ;;  %v3109_v13 = vsub.f32 %v2893_v39, %v3001_v60  ;;  %v3726_v36 = vmul.f32 %v3361_v26, %v9784_v33  ;;  %v3122_v11 = vsub.f32 %v2906_v14, %v3014_v56  ;;  %v2895_v60 = vld [vmem:[%s8931_s4 + $0x260] sm:$0xff]  ;;  %v9791_v14 = vld [vmem:[#allocation144_spill] sm:$0xff]  ;;  %v9792_v33 = vld [vmem:[#allocation159_spill] sm:$0xff] }
 0x56d   :  { %v3721_v9 = vmul.f32 %v3336_v54, %v9789_v57  ;;  %v3111_v39 = vsub.f32 %v2895_v60, %v3003_v22  ;;  %v3005_v23 = vmul.f32 %v9793_v53, %v9792_v33  ;;  %v3007_v22 = vmul.f32 %v9795_v55, %v9794_v32  ;;  %v2899_v60 = vld [vmem:[%s8931_s4 + $0x280] sm:$0xff]  ;;  %v9802_v32 = vld [vmem:[#allocation20_spill] sm:$0xff] }
 0x56f   :  { %v3631_v41 = vpop.permute.xlu0 %3630 }
 0x570   :  { %v8377_v40 = vmul.f32 %v3631_v41, %v9782_v30  ;;  %4218 = vperm.xlu0 %4732, %v3120_v17   ;;  %4153 = vperm.xlu1 %4733, %v3107_v37   ;;  %v8379_v44 = vpop.permute.xlu1 %3605  ;;  %v2908_v17 = vld [vmem:[%s8931_s4 + $0x2c8] sm:$0xff]  ;;  %v9790_v41 = vld [vmem:[#allocation186_spill] sm:$0xff] }
 0x571   :  { %9783 = vst [vmem:[#allocation219_spill] sm:$0xff] %v8379_v44  ;;  %v3124_v54 = vsub.f32 %v2908_v17, %v3016_v29  ;;  %v3018_v30 = vmul.f32 %v9791_v14, %v9790_v41  ;;  %v9798_v41 = vld [vmem:[#allocation88_spill] sm:$0xff] }
 0x573   :  { %v4009_v62 = vpop.permute.xlu0 %4008 }
 0x574   :  { %v4374_v37 = vadd.f32 %v4009_v62, %v3726_v36  ;;  %4228 = vperm.xlu0 %4732, %v3122_v11   ;;  %4163 = vperm.xlu1 %4733, %v3109_v13   ;;  %v3984_v26 = vpop.permute.xlu1 %3983  ;;  %v2910_v36 = vld [vmem:[%s8931_s4 + $0x2d8] sm:$0xff]  ;;  %v2897_v11 = vld [vmem:[%s8931_s4 + $0x270] sm:$0xff] }
 0x575   :  { %v4369_v56 = vadd.f32 %v3984_v26, %v3721_v9  ;;  %v3126_v57 = vsub.f32 %v2910_v36, %v3018_v30  ;;  %v3113_v9 = vsub.f32 %v2897_v11, %v3005_v23  ;;  %v9796_v62 = vld [vmem:[#allocation189_spill] sm:$0xff]  ;;  %v2912_v26 = vld [vmem:[%s8931_s4 + $0x2e8] sm:$0xff]  ;;  %v3115_v30 = vsub.f32 %v2899_v60, %v3007_v22  ;;  %v2901_v22 = vld [vmem:[%s8931_s4 + $0x290] sm:$0xff] }
 0x576   :  { %4482 = vst.msk [vmem:[%s8932_s5 + $0x158] sm:$0xff] %vm1306_vm1, %v4374_v37  ;;  %v3020_v17 = vmul.f32 %v7811_v7, %v9796_v62  ;;  %v9799_v7 = vld [vmem:[#allocation103_spill] sm:$0xff]  ;;  %v9800_v23 = vld [vmem:[#allocation213_spill] sm:$0xff]  ;;  %v9804_v60 = vld [vmem:[#allocation230_spill] sm:$0xff] }
 0x577   :  { %4477 = vst.msk [vmem:[%s8932_s5 + $0x130] sm:$0xff] %vm1306_vm1, %v4369_v56  ;;  %v3371_v13 = vpop.permute.xlu0 %3370  ;;  %v9797_v56 = vld [vmem:[#allocation104_spill] sm:$0xff]  ;;  %v3022_v36 = vmul.f32 %v7855_v24, %v9800_v23  ;;  %v9801_v11 = vld [vmem:[#allocation167_spill] sm:$0xff] }
 0x578   :  { %4238 = vperm.xlu0 %4732, %v3124_v54   ;;  %4173 = vperm.xlu1 %4733, %v3111_v39   ;;  %v3346_v29 = vpop.permute.xlu1 %3345  ;;  %v3728_v33 = vmul.f32 %v3371_v13, %v9799_v7  ;;  %v3128_v53 = vsub.f32 %v2912_v26, %v3020_v17  ;;  %v3009_v55 = vmul.f32 %v9802_v32, %v9801_v11  ;;  %v9803_v62 = vld [vmem:[#allocation87_spill] sm:$0xff]  ;;  %v2903_v7 = vld [vmem:[%s8931_s4 + $0x2a0] sm:$0xff]  ;;  %v9809_v32 = vld [vmem:[#allocation249_spill] sm:$0xff] }
 0x579   :  { %v3723_v44 = vmul.f32 %v3346_v29, %v9803_v62  ;;  %v3024_v26 = vmul.f32 %v7899_v34, %v9804_v60  ;;  %v2905_v62 = vld [vmem:[%s8931_s4 + $0x2b0] sm:$0xff] }
 0x57a   :  { %v3117_v29 = vsub.f32 %v2901_v22, %v3009_v55  ;;  %v3026_v55 = vmul.f32 %v7943_v51, %v9809_v32  ;;  %v9810_v22 = vld [vmem:[#allocation109_spill] sm:$0xff]  ;;  %v9812_v51 = vld [vmem:[#allocation108_spill] sm:$0xff] }
 0x57b   :  { %v3641_v37 = vpop.permute.xlu0 %3640 }
 0x57c   :  { %v8422_v54 = vmul.f32 %v3641_v37, %v9797_v56  ;;  %4248 = vperm.xlu0 %4732, %v3126_v57   ;;  %4183 = vperm.xlu1 %4733, %v3113_v9   ;;  %v3616_v39 = vpop.permute.xlu1 %3615  ;;  %v2914_v57 = vld [vmem:[%s8931_s4 + $0x2f8] sm:$0xff]  ;;  %v9805_v56 = vld [vmem:[#allocation171_spill] sm:$0xff] }
 0x57d   :  { %v8425_v14 = vmul.f32 %v3616_v39, %v9798_v41  ;;  %v3130_v24 = vsub.f32 %v2914_v57, %v3022_v36  ;;  %v9806_v39 = vld [vmem:[#allocation202_spill] sm:$0xff]  ;;  %v2918_v57 = vld [vmem:[%s8931_s4 + $0x318] sm:$0xff] }
 0x57e   :  { %v3011_v41 = vmul.f32 %v9806_v39, %v9805_v56  ;;  %v9813_v56 = vld [vmem:[#allocation98_spill] sm:$0xff] }
 0x57f   :  { %v4019_v37 = vpop.permute.xlu0 %4018  ;;  %v3028_v39 = vmul.f32 %v7987_v63, %v9813_v56  ;;  %v2911_v56 = vld [vmem:[%s8931_s4 + $0x2e0] sm:$0xff] }
 0x580   :  { %v4376_v9 = vadd.f32 %v4019_v37, %v3728_v33  ;;  %4258 = vperm.xlu0 %4732, %v3128_v53   ;;  %4193 = vperm.xlu1 %4733, %v3115_v30   ;;  %v3994_v13 = vpop.permute.xlu1 %3993  ;;  %v9807_v33 = vld [vmem:[#allocation175_spill] sm:$0xff]  ;;  %v9808_v53 = vld [vmem:[#allocation134_spill] sm:$0xff]  ;;  %v3119_v11 = vsub.f32 %v2903_v7, %v3011_v41 }
 0x581   :  { %v4371_v17 = vadd.f32 %v3994_v13, %v3723_v44  ;;  %v2916_v44 = vld [vmem:[%s8931_s4 + $0x308] sm:$0xff]  ;;  %v3013_v23 = vmul.f32 %v9808_v53, %v9807_v33  ;;  %v9815_v7 = vld [vmem:[#allocation94_spill] sm:$0xff] }
 0x582   :  { %4484 = vst.msk [vmem:[%s8932_s5 + $0x168] sm:$0xff] %vm1306_vm1, %v4376_v9  ;;  %v3132_v36 = vsub.f32 %v2916_v44, %v3024_v26  ;;  %v3134_v26 = vsub.f32 %v2918_v57, %v3026_v55  ;;  %v9814_v41 = vld [vmem:[#allocation179_spill] sm:$0xff] }
 0x583   :  { %4479 = vst.msk [vmem:[%s8932_s5 + $0x140] sm:$0xff] %vm1306_vm1, %v4371_v17  ;;  %v3381_v30 = vpop.permute.xlu0 %3380  ;;  %v9811_v17 = vld [vmem:[#allocation95_spill] sm:$0xff]  ;;  %v3015_v44 = vmul.f32 %v7813_v42, %v9814_v41 }
 0x584   :  { %4268 = vperm.xlu0 %4732, %v3130_v24   ;;  %4203 = vperm.xlu1 %4733, %v3117_v29   ;;  %v3356_v34 = vpop.permute.xlu1 %3355  ;;  %v3121_v29 = vsub.f32 %v2905_v62, %v3013_v23  ;;  %v3730_v60 = vmul.f32 %v3381_v30, %v9812_v51  ;;  %v2907_v23 = vld [vmem:[%s8931_s4 + $0x2c0] sm:$0xff]  ;;  %v9817_v62 = vld [vmem:[#allocation183_spill] sm:$0xff] }
 0x585   :  { %v3725_v33 = vmul.f32 %v3356_v34, %v9815_v7  ;;  %v3123_v63 = vsub.f32 %v2907_v23, %v3015_v44  ;;  %v9816_v34 = vld [vmem:[#allocation256_spill] sm:$0xff]  ;;  %v2924_v41 = vld [vmem:[%s8931_s4 + $0x348] sm:$0xff] }
 0x586   :  { %v3030_v55 = vmul.f32 %v8032_v59, %v9816_v34  ;;  %v9820_v44 = vld [vmem:[#allocation116_spill] sm:$0xff]  ;;  %v9825_v34 = vld [vmem:[#allocation99_spill] sm:$0xff] }
 0x587   :  { %v3651_v37 = vpop.permute.xlu0 %3650 }
 0x588   :  { %v8468_v9 = vmul.f32 %v3651_v37, %v9810_v22  ;;  %4278 = vperm.xlu0 %4732, %v3132_v36   ;;  %4213 = vperm.xlu1 %4733, %v3119_v11   ;;  %v3626_v13 = vpop.permute.xlu1 %3625  ;;  %v2920_v36 = vld [vmem:[%s8931_s4 + $0x328] sm:$0xff]  ;;  %v3017_v37 = vmul.f32 %v7857_v46, %v9817_v62  ;;  %v2922_v22 = vld [vmem:[%s8931_s4 + $0x338] sm:$0xff] }
 0x589   :  { %v8471_v24 = vmul.f32 %v3626_v13, %v9811_v17  ;;  %v3136_v42 = vsub.f32 %v2920_v36, %v3028_v39  ;;  %v2909_v13 = vld [vmem:[%s8931_s4 + $0x2d0] sm:$0xff]  ;;  %v9818_v17 = vld [vmem:[#allocation187_spill] sm:$0xff] }
 0x58a   :  { %v3019_v46 = vmul.f32 %v7901_v43, %v9818_v17  ;;  %v3125_v51 = vsub.f32 %v2909_v13, %v3017_v37  ;;  %v2926_v37 = vld [vmem:[%s8931_s4 + $0x358] sm:$0xff] }
 0x58b   :  { %v4029_v53 = vpop.permute.xlu0 %4028 }
 0x58c   :  { %v4378_v11 = vadd.f32 %v4029_v53, %v3730_v60  ;;  %4288 = vperm.xlu0 %4732, %v3134_v26   ;;  %4223 = vperm.xlu1 %4733, %v3121_v29   ;;  %v4004_v30 = vpop.permute.xlu1 %4003  ;;  %v3138_v29 = vsub.f32 %v2922_v22, %v3030_v55  ;;  %v9819_v60 = vld [vmem:[#allocation198_spill] sm:$0xff]  ;;  %v3127_v36 = vsub.f32 %v2911_v56, %v3019_v46  ;;  %v2913_v22 = vld [vmem:[%s8931_s4 + $0x2f0] sm:$0xff]  ;;  %v9827_v56 = vld [vmem:[#allocation241_spill] sm:$0xff] }
 0x58d   :  { %v4373_v32 = vadd.f32 %v4004_v30, %v3725_v33  ;;  %v3032_v26 = vmul.f32 %v8073_v20, %v9819_v60  ;;  %v9821_v33 = vld [vmem:[#allocation100_spill] sm:$0xff]  ;;  %v9822_v20 = vld [vmem:[#allocation115_spill] sm:$0xff] }
 0x58e   :  { %4486 = vst.msk [vmem:[%s8932_s5 + $0x178] sm:$0xff] %vm1306_vm1, %v4378_v11  ;;  %v9823_v30 = vld [vmem:[#allocation132_spill] sm:$0xff] }
 0x58f   :  { %4481 = vst.msk [vmem:[%s8932_s5 + $0x150] sm:$0xff] %vm1306_vm1, %v4373_v32  ;;  %v3391_v57 = vpop.permute.xlu0 %3390  ;;  %v3140_v11 = vsub.f32 %v2924_v41, %v3032_v26  ;;  %v3034_v32 = vmul.f32 %v8103_v16, %v9823_v30 }
 0x590   :  { %4298 = vperm.xlu0 %4732, %v3136_v42   ;;  %4233 = vperm.xlu1 %4733, %v3123_v63   ;;  %v3366_v59 = vpop.permute.xlu1 %3365  ;;  %v3732_v23 = vmul.f32 %v3391_v57, %v9822_v20  ;;  %v9824_v42 = vld [vmem:[#allocation207_spill] sm:$0xff] }
 0x591   :  { %v3021_v63 = vmul.f32 %v7945_v38, %v9824_v42  ;;  %v3727_v55 = vmul.f32 %v3366_v59, %v9825_v34  ;;  %v3142_v38 = vsub.f32 %v2926_v37, %v3034_v32  ;;  %v9826_v59 = vld [vmem:[#allocation226_spill] sm:$0xff]  ;;  %v9832_v37 = vld [vmem:[#allocation8_spill] sm:$0xff] }
 0x592   :  { %v3023_v46 = vmul.f32 %v7989_v0, %v9826_v59  ;;  %v2917_v0 = vld [vmem:[%s8931_s4 + $0x310] sm:$0xff]  ;;  %v9831_v32 = vld [vmem:[#allocation106_spill] sm:$0xff] }
 0x593   :  { %v3661_v39 = vpop.permute.xlu0 %3660  ;;  %v3129_v16 = vsub.f32 %v2913_v22, %v3021_v63  ;;  %v2919_v63 = vld [vmem:[%s8931_s4 + $0x320] sm:$0xff]  ;;  %v3029_v22 = vmul.f32 %v8120_v25, %v9832_v37 }
 0x594   :  { %v8514_v7 = vmul.f32 %v3661_v39, %v9820_v44  ;;  %4308 = vperm.xlu0 %4732, %v3138_v29   ;;  %4243 = vperm.xlu1 %4733, %v3125_v51   ;;  %v3636_v43 = vpop.permute.xlu1 %3635  ;;  %v2915_v51 = vld [vmem:[%s8931_s4 + $0x300] sm:$0xff]  ;;  %v3025_v39 = vmul.f32 %v8034_v27, %v9827_v56  ;;  %v9828_v44 = vld [vmem:[#allocation121_spill] sm:$0xff] }
 0x595   :  { %v8517_v53 = vmul.f32 %v3636_v43, %v9821_v33  ;;  %v3131_v26 = vsub.f32 %v2915_v51, %v3023_v46  ;;  %v9835_v51 = vld [vmem:[#allocation12_spill] sm:$0xff] }
 0x596   :  { %v3031_v25 = vmul.f32 %v8160_v5, %v9835_v51  ;;  %v9838_v5 = vld [vmem:[#allocation191_spill] sm:$0xff] }
 0x597   :  { %v4039_v62 = vpop.permute.xlu0 %4038  ;;  %v9844_v51 = vld [vmem:[#allocation119_spill] sm:$0xff] }
 0x598   :  { %v4380_v13 = vadd.f32 %v4039_v62, %v3732_v23  ;;  %4318 = vperm.xlu0 %4732, %v3140_v11   ;;  %4253 = vperm.xlu1 %4733, %v3127_v36   ;;  %v4014_v57 = vpop.permute.xlu1 %4013  ;;  %v9829_v36 = vld [vmem:[#allocation107_spill] sm:$0xff]  ;;  %v3133_v23 = vsub.f32 %v2917_v0, %v3025_v39  ;;  %v9830_v11 = vld [vmem:[#allocation5_spill] sm:$0xff] }
 0x599   :  { %v4375_v17 = vadd.f32 %v4014_v57, %v3727_v55  ;;  %v3027_v30 = vmul.f32 %v8075_v28, %v9830_v11  ;;  %v9833_v57 = vld [vmem:[#allocation128_spill] sm:$0xff] }
 0x59a   :  { %4488 = vst.msk [vmem:[%s8932_s5 + $0x188] sm:$0xff] %vm1306_vm1, %v4380_v13  ;;  %v2921_v13 = vld [vmem:[%s8931_s4 + $0x330] sm:$0xff] }
 0x59b   :  { %4483 = vst.msk [vmem:[%s8932_s5 + $0x160] sm:$0xff] %vm1306_vm1, %v4375_v17  ;;  %v3401_v29 = vpop.permute.xlu0 %3400  ;;  %v3135_v62 = vsub.f32 %v2919_v63, %v3027_v30  ;;  %v3137_v46 = vsub.f32 %v2921_v13, %v3029_v22  ;;  %v9842_v13 = vld [vmem:[#allocation9_spill] sm:$0xff] }
 0x59c   :  { %4328 = vperm.xlu0 %4732, %v3142_v38   ;;  %4263 = vperm.xlu1 %4733, %v3129_v16   ;;  %v3376_v60 = vpop.permute.xlu1 %3375  ;;  %v9834_v16 = vld [vmem:[#allocation120_spill] sm:$0xff] }
 0x59d   :  { %v3729_v42 = vmul.f32 %v3376_v60, %v9831_v32  ;;  %v3734_v59 = vmul.f32 %v3401_v29, %v9834_v16  ;;  %v2925_v32 = vld [vmem:[%s8931_s4 + $0x350] sm:$0xff] }
 0x59f   :  { %v3671_v41 = vpop.permute.xlu0 %3670 }
 0x5a0   :  { %v8550_v43 = vmul.f32 %v3671_v41, %v9828_v44  ;;  %4273 = vperm.xlu1 %4733, %v3131_v26   ;;  %v3646_v33 = vpop.permute.xlu1 %3645  ;;  %v2923_v26 = vld [vmem:[%s8931_s4 + $0x340] sm:$0xff]  ;;  %v9836_v41 = vld [vmem:[#allocation112_spill] sm:$0xff]  ;;  %v9837_v44 = vld [vmem:[#allocation127_spill] sm:$0xff] }
 0x5a1   :  { %v8553_v20 = vmul.f32 %v3646_v33, %v9829_v36  ;;  %v3139_v29 = vsub.f32 %v2923_v26, %v3031_v25  ;;  %v3033_v36 = vmul.f32 %v8190_v10, %v9838_v5  ;;  %v9846_v26 = vld [vmem:[#allocation126_spill] sm:$0xff] }
 0x5a3   :  { %v3411_v27 = vpop.permute.xlu0 %3410  ;;  %v3141_v10 = vsub.f32 %v2925_v32, %v3033_v36 }
 0x5a4   :  { %4283 = vperm.xlu1 %4733, %v3133_v23   ;;  %v4024_v34 = vpop.permute.xlu1 %4023  ;;  %v3736_v33 = vmul.f32 %v3411_v27, %v9837_v44  ;;  %v9839_v23 = vld [vmem:[#allocation111_spill] sm:$0xff] }
 0x5a5   :  { %v4377_v55 = vadd.f32 %v4024_v34, %v3729_v42  ;;  %v9840_v34 = vld [vmem:[#allocation4_spill] sm:$0xff] }
 0x5a7   :  { %4485 = vst.msk [vmem:[%s8932_s5 + $0x170] sm:$0xff] %vm1306_vm1, %v4377_v55  ;;  %v3681_v28 = vpop.permute.xlu0 %3680  ;;  %v9841_v55 = vld [vmem:[#allocation254_spill] sm:$0xff] }
 0x5a8   :  { %v8571_v17 = vmul.f32 %v3681_v28, %v9833_v57  ;;  %4293 = vperm.xlu1 %4733, %v3135_v62   ;;  %v3386_v38 = vpop.permute.xlu1 %3385  ;;  %v3738_v62 = vmul.f32 %v9841_v55, %v9840_v34  ;;  %v9843_v57 = vld [vmem:[#allocation255_spill] sm:$0xff]  ;;  %v9852_v34 = vld [vmem:[#allocation118_spill] sm:$0xff] }
 0x5a9   :  { %v3731_v11 = vmul.f32 %v3386_v38, %v9839_v23  ;;  %v3740_v38 = vmul.f32 %v9843_v57, %v9842_v13  ;;  %v9853_v13 = vld [vmem:[#allocation25_spill] sm:$0xff]  ;;  %v9854_v57 = vld [vmem:[#allocation208_spill] sm:$0xff] }
 0x5ab   :  { %v4049_v60 = vpop.permute.xlu0 %4048 }
 0x5ac   :  { %v4382_v56 = vadd.f32 %v4049_v60, %v3734_v59  ;;  %4303 = vperm.xlu1 %4733, %v3137_v46   ;;  %v3656_v39 = vpop.permute.xlu1 %3655  ;;  %v9845_v60 = vld [vmem:[#allocation13_spill] sm:$0xff] }
 0x5ad   :  { %v8580_v0 = vmul.f32 %v3656_v39, %v9836_v41 }
 0x5ae   :  { %4490 = vst.msk [vmem:[%s8932_s5 + $0x198] sm:$0xff] %vm1306_vm1, %v4382_v56  ;;  %v3742_v56 = vmul.f32 %v9846_v26, %v9845_v60  ;;  %v9856_v26 = vld [vmem:[#allocation29_spill] sm:$0xff] }
 0x5af   :  { %v4059_v30 = vpop.permute.xlu0 %4058 }
 0x5b0   :  { %v4384_v42 = vadd.f32 %v4059_v30, %v3736_v33  ;;  %4313 = vperm.xlu1 %4733, %v3139_v29   ;;  %v4034_v63 = vpop.permute.xlu1 %4033  ;;  %v9847_v33 = vld [vmem:[#allocation17_spill] sm:$0xff]  ;;  %v9848_v29 = vld [vmem:[#allocation122_spill] sm:$0xff]  ;;  %v9849_v30 = vld [vmem:[#allocation124_spill] sm:$0xff] }
 0x5b1   :  { %v4379_v27 = vadd.f32 %v4034_v63, %v3731_v11  ;;  %v3744_v5 = vmul.f32 %v9848_v29, %v9847_v33  ;;  %v9851_v63 = vld [vmem:[#allocation201_spill] sm:$0xff]  ;;  %v9859_v33 = vld [vmem:[#allocation250_spill] sm:$0xff] }
 0x5b2   :  { %4492 = vst.msk [vmem:[%s8932_s5 + $0x1a8] sm:$0xff] %vm1306_vm1, %v4384_v42  ;;  %v9850_v42 = vld [vmem:[#allocation21_spill] sm:$0xff] }
 0x5b3   :  { %4487 = vst.msk [vmem:[%s8932_s5 + $0x180] sm:$0xff] %vm1306_vm1, %v4379_v27  ;;  %v4069_v37 = vpop.permute.xlu0 %4068  ;;  %v3746_v27 = vmul.f32 %v9851_v63, %v9850_v42  ;;  %v9862_v63 = vld [vmem:[#allocation7_spill] sm:$0xff] }
 0x5b4   :  { %v4386_v22 = vadd.f32 %v4069_v37, %v3738_v62  ;;  %4323 = vperm.xlu1 %4733, %v3141_v10   ;;  %v3396_v28 = vpop.permute.xlu1 %3395 }
 0x5b5   :  { %v3733_v55 = vmul.f32 %v3396_v28, %v9852_v34 }
 0x5b6   :  { %4494 = vst.msk [vmem:[%s8932_s5 + $0x1b8] sm:$0xff] %vm1306_vm1, %v4386_v22 }
 0x5b7   :  { %v4079_v16 = vpop.permute.xlu0 %4078 }
 0x5b8   :  { %v4388_v59 = vadd.f32 %v4079_v16, %v3740_v38  ;;  %v3666_v46 = vpop.permute.xlu1 %3665  ;;  %v3748_v38 = vmul.f32 %v9854_v57, %v9853_v13  ;;  %v9855_v16 = vld [vmem:[#allocation123_spill] sm:$0xff]  ;;  %v9865_v13 = vld [vmem:[#allocation214_spill] sm:$0xff] }
 0x5b9   :  { %v8610_v25 = vmul.f32 %v3666_v46, %v9844_v51 }
 0x5ba   :  { %4496 = vst.msk [vmem:[%s8932_s5 + $0x1c8] sm:$0xff] %vm1306_vm1, %v4388_v59 }
 0x5bb   :  { %v4089_v39 = vpop.permute.xlu0 %4088 }
 0x5bc   :  { %v4390_v41 = vadd.f32 %v4089_v39, %v3742_v56  ;;  %v3406_v44 = vpop.permute.xlu1 %3405  ;;  %v9857_v56 = vld [vmem:[#allocation200_spill] sm:$0xff] }
 0x5bd   :  { %v3735_v59 = vmul.f32 %v3406_v44, %v9855_v16  ;;  %v3750_v39 = vmul.f32 %v9857_v56, %v9856_v26  ;;  %v9867_v16 = vld [vmem:[#allocation110_spill] sm:$0xff]  ;;  %v9868_v26 = vld [vmem:[#allocation41_spill] sm:$0xff]  ;;  %v9869_v56 = vld [vmem:[#allocation148_spill] sm:$0xff] }
 0x5be   :  { %4498 = vst.msk [vmem:[%s8932_s5 + $0x1d8] sm:$0xff] %vm1306_vm1, %v4390_v41  ;;  %v9858_v41 = vld [vmem:[#allocation3_spill] sm:$0xff] }
 0x5bf   :  { %v4099_v36 = vpop.permute.xlu0 %4098  ;;  %v3737_v44 = vmul.f32 %v9859_v33, %v9858_v41  ;;  %v9870_v41 = vld [vmem:[#allocation15_spill] sm:$0xff]  ;;  %v9871_v33 = vld [vmem:[#allocation196_spill] sm:$0xff] }
 0x5c0   :  { %v4392_v23 = vadd.f32 %v4099_v36, %v3744_v5  ;;  %v3676_v11 = vpop.permute.xlu1 %3675 }
 0x5c1   :  { %v8625_v32 = vmul.f32 %v3676_v11, %v9849_v30  ;;  %v9860_v11 = vld [vmem:[#allocation33_spill] sm:$0xff]  ;;  %v9861_v30 = vld [vmem:[#allocation211_spill] sm:$0xff] }
 0x5c2   :  { %4500 = vst.msk [vmem:[%s8932_s5 + $0x1e8] sm:$0xff] %vm1306_vm1, %v4392_v23  ;;  %v3752_v42 = vmul.f32 %v9861_v30, %v9860_v11  ;;  %v9872_v11 = vld [vmem:[#allocation45_spill] sm:$0xff] }
 0x5c3   :  { %v4109_v62 = vpop.permute.xlu0 %4108  ;;  %v3758_v30 = vmul.f32 %v7885_v3, %v9872_v11 }
 0x5c4   :  { %v4394_v10 = vadd.f32 %v4109_v62, %v3746_v27  ;;  %v4044_v37 = vpop.permute.xlu1 %4043  ;;  %v9863_v27 = vld [vmem:[#allocation114_spill] sm:$0xff] }
 0x5c5   :  { %v4381_v22 = vadd.f32 %v4044_v37, %v3733_v55  ;;  %v3739_v34 = vmul.f32 %v9863_v27, %v9862_v63  ;;  %v9874_v63 = vld [vmem:[#allocation16_spill] sm:$0xff] }
 0x5c6   :  { %4502 = vst.msk [vmem:[%s8932_s5 + $0x1f8] sm:$0xff] %vm1306_vm1, %v4394_v10 }
 0x5c7   :  { %4489 = vst.msk [vmem:[%s8932_s5 + $0x190] sm:$0xff] %vm1306_vm1, %v4381_v22  ;;  %v4119_v28 = vpop.permute.xlu0 %4118  ;;  %v9864_v22 = vld [vmem:[#allocation37_spill] sm:$0xff] }
 0x5c8   :  { %v4396_v46 = vadd.f32 %v4119_v28, %v3748_v38  ;;  %v4054_v51 = vpop.permute.xlu1 %4053  ;;  %v3754_v57 = vmul.f32 %v9865_v13, %v9864_v22  ;;  %v9866_v38 = vld [vmem:[#allocation11_spill] sm:$0xff]  ;;  %v9877_v13 = vld [vmem:[#allocation197_spill] sm:$0xff] }
 0x5c9   :  { %v4383_v60 = vadd.f32 %v4054_v51, %v3735_v59  ;;  %v3741_v59 = vmul.f32 %v9867_v16, %v9866_v38  ;;  %v9876_v22 = vld [vmem:[#allocation23_spill] sm:$0xff] }
 0x5ca   :  { %4504 = vst.msk [vmem:[%s8932_s5 + $0x208] sm:$0xff] %vm1306_vm1, %v4396_v46 }
 0x5cb   :  { %4491 = vst.msk [vmem:[%s8932_s5 + $0x1a0] sm:$0xff] %vm1306_vm1, %v4383_v60  ;;  %v4129_v29 = vpop.permute.xlu0 %4128 }
 0x5cc   :  { %v4398_v5 = vadd.f32 %v4129_v29, %v3750_v39  ;;  %v4064_v36 = vpop.permute.xlu1 %4063  ;;  %v3756_v39 = vmul.f32 %v9869_v56, %v9868_v26 }
 0x5cd   :  { %v4385_v23 = vadd.f32 %v4064_v36, %v3737_v44  ;;  %v3743_v44 = vmul.f32 %v9871_v33, %v9870_v41 }
 0x5ce   :  { %4506 = vst.msk [vmem:[%s8932_s5 + $0x218] sm:$0xff] %vm1306_vm1, %v4398_v5 }
 0x5cf   :  { %4493 = vst.msk [vmem:[%s8932_s5 + $0x1b0] sm:$0xff] %vm1306_vm1, %v4385_v23  ;;  %v4139_v55 = vpop.permute.xlu0 %4138 }
 0x5d0   :  { %v4400_v62 = vadd.f32 %v4139_v55, %v3752_v42  ;;  %v4074_v10 = vpop.permute.xlu1 %4073  ;;  %v9873_v42 = vld [vmem:[#allocation19_spill] sm:$0xff] }
 0x5d1   :  { %v4387_v37 = vadd.f32 %v4074_v10, %v3739_v34  ;;  %v3745_v27 = vmul.f32 %v9874_v63, %v9873_v42  ;;  %v9884_v63 = vld [vmem:[#allocation61_spill] sm:$0xff] }
 0x5d2   :  { %4508 = vst.msk [vmem:[%s8932_s5 + $0x228] sm:$0xff] %vm1306_vm1, %v4400_v62 }
 0x5d3   :  { %4495 = vst.msk [vmem:[%s8932_s5 + $0x1c0] sm:$0xff] %vm1306_vm1, %v4387_v37  ;;  %v4149_v28 = vpop.permute.xlu0 %4148  ;;  %v9875_v37 = vld [vmem:[#allocation49_spill] sm:$0xff] }
 0x5d4   :  { %v4402_v46 = vadd.f32 %v4149_v28, %v3754_v57  ;;  %v4084_v51 = vpop.permute.xlu1 %4083  ;;  %v3760_v3 = vmul.f32 %v7929_v15, %v9875_v37  ;;  %v3747_v57 = vmul.f32 %v9877_v13, %v9876_v22  ;;  %v9887_v22 = vld [vmem:[#allocation65_spill] sm:$0xff]  ;;  %v9888_v13 = vld [vmem:[#allocation39_spill] sm:$0xff] }
 0x5d5   :  { %v4389_v60 = vadd.f32 %v4084_v51, %v3741_v59  ;;  %v9879_v51 = vld [vmem:[#allocation27_spill] sm:$0xff] }
 0x5d6   :  { %4510 = vst.msk [vmem:[%s8932_s5 + $0x238] sm:$0xff] %vm1306_vm1, %v4402_v46  ;;  %v9878_v46 = vld [vmem:[#allocation53_spill] sm:$0xff] }
 0x5d7   :  { %4497 = vst.msk [vmem:[%s8932_s5 + $0x1d0] sm:$0xff] %vm1306_vm1, %v4389_v60  ;;  %v4159_v29 = vpop.permute.xlu0 %4158  ;;  %v3762_v15 = vmul.f32 %v7973_v52, %v9878_v46  ;;  %v9880_v60 = vld [vmem:[#allocation18_spill] sm:$0xff]  ;;  %v9889_v46 = vld [vmem:[#allocation69_spill] sm:$0xff] }
 0x5d8   :  { %v4404_v5 = vadd.f32 %v4159_v29, %v3756_v39  ;;  %v4094_v36 = vpop.permute.xlu1 %4093  ;;  %v3749_v26 = vmul.f32 %v9880_v60, %v9879_v51  ;;  %v9882_v29 = vld [vmem:[#allocation31_spill] sm:$0xff] }
 0x5d9   :  { %v4391_v23 = vadd.f32 %v4094_v36, %v3743_v44  ;;  %v9881_v44 = vld [vmem:[#allocation57_spill] sm:$0xff] }
 0x5da   :  { %4512 = vst.msk [vmem:[%s8932_s5 + $0x248] sm:$0xff] %vm1306_vm1, %v4404_v5  ;;  %v3764_v52 = vmul.f32 %v8018_v35, %v9881_v44  ;;  %v9883_v5 = vld [vmem:[#allocation138_spill] sm:$0xff]  ;;  %v3766_v35 = vmul.f32 %v8061_v12, %v9884_v63  ;;  %v3768_v12 = vmul.f32 %v8106_v21, %v9887_v22  ;;  %v3770_v21 = vmul.f32 %v8149_v58, %v9889_v46  ;;  %v9895_v63 = vld [vmem:[#allocation85_spill] sm:$0xff] }
 0x5db   :  { %4499 = vst.msk [vmem:[%s8932_s5 + $0x1e0] sm:$0xff] %vm1306_vm1, %v4391_v23  ;;  %v4169_v34 = vpop.permute.xlu0 %4168  ;;  %v3751_v36 = vmul.f32 %v9883_v5, %v9882_v29  ;;  %v9893_v5 = vld [vmem:[#allocation79_spill] sm:$0xff] }
 0x5dc   :  { %v4406_v55 = vadd.f32 %v4169_v34, %v3758_v30  ;;  %v4104_v62 = vpop.permute.xlu1 %4103  ;;  %v9886_v34 = vld [vmem:[#allocation215_spill] sm:$0xff] }
 0x5dd   :  { %v4393_v10 = vadd.f32 %v4104_v62, %v3745_v27  ;;  %v9885_v27 = vld [vmem:[#allocation35_spill] sm:$0xff] }
 0x5de   :  { %4514 = vst.msk [vmem:[%s8932_s5 + $0x258] sm:$0xff] %vm1306_vm1, %v4406_v55  ;;  %v3753_v55 = vmul.f32 %v9886_v34, %v9885_v27 }
 0x5df   :  { %4501 = vst.msk [vmem:[%s8932_s5 + $0x1f0] sm:$0xff] %vm1306_vm1, %v4393_v10  ;;  %v4179_v38 = vpop.permute.xlu0 %4178 }
 0x5e0   :  { %v4408_v16 = vadd.f32 %v4179_v38, %v3760_v3  ;;  %v4114_v59 = vpop.permute.xlu1 %4113 }
 0x5e1   :  { %v4395_v28 = vadd.f32 %v4114_v59, %v3747_v57  ;;  %v3755_v57 = vmul.f32 %v7938_v49, %v9888_v13 }
 0x5e2   :  { %4516 = vst.msk [vmem:[%s8932_s5 + $0x268] sm:$0xff] %vm1306_vm1, %v4408_v16 }
 0x5e3   :  { %4503 = vst.msk [vmem:[%s8932_s5 + $0x200] sm:$0xff] %vm1306_vm1, %v4395_v28  ;;  %v4189_v56 = vpop.permute.xlu0 %4188 }
 0x5e4   :  { %v4410_v39 = vadd.f32 %v4189_v56, %v3762_v15  ;;  %v4124_v41 = vpop.permute.xlu1 %4123  ;;  %v9890_v15 = vld [vmem:[#allocation43_spill] sm:$0xff] }
 0x5e5   :  { %v4397_v33 = vadd.f32 %v4124_v41, %v3749_v26  ;;  %v3757_v49 = vmul.f32 %v7982_v19, %v9890_v15  ;;  %v9892_v41 = vld [vmem:[#allocation47_spill] sm:$0xff] }
 0x5e6   :  { %4518 = vst.msk [vmem:[%s8932_s5 + $0x278] sm:$0xff] %vm1306_vm1, %v4410_v39  ;;  %v9891_v39 = vld [vmem:[#allocation73_spill] sm:$0xff]  ;;  %v3759_v19 = vmul.f32 %v8027_v47, %v9892_v41  ;;  %v9903_v41 = vld [vmem:[#allocation219_spill] sm:$0xff] }
 0x5e7   :  { %4505 = vst.msk [vmem:[%s8932_s5 + $0x210] sm:$0xff] %vm1306_vm1, %v4397_v33  ;;  %v4199_v23 = vpop.permute.xlu0 %4198  ;;  %v3772_v58 = vmul.f32 %v8196_v48, %v9891_v39  ;;  %v3774_v48 = vmul.f32 %v8240_v8, %v9893_v5  ;;  %v3776_v8 = vmul.f32 %v8284_v18, %v9895_v63  ;;  %v9897_v18 = vld [vmem:[#allocation59_spill] sm:$0xff] }
 0x5e8   :  { %v4412_v11 = vadd.f32 %v4199_v23, %v3764_v52  ;;  %v4134_v30 = vpop.permute.xlu1 %4133 }
 0x5e9   :  { %v4399_v42 = vadd.f32 %v4134_v30, %v3751_v36  ;;  %v9894_v36 = vld [vmem:[#allocation51_spill] sm:$0xff] }
 0x5ea   :  { %4520 = vst.msk [vmem:[%s8932_s5 + $0x288] sm:$0xff] %vm1306_vm1, %v4412_v11  ;;  %v3761_v47 = vmul.f32 %v8069_v6, %v9894_v36 }
 0x5eb   :  { %4507 = vst.msk [vmem:[%s8932_s5 + $0x220] sm:$0xff] %vm1306_vm1, %v4399_v42  ;;  %v4209_v62 = vpop.permute.xlu0 %4208 }
 0x5ec   :  { %v4414_v10 = vadd.f32 %v4209_v62, %v3766_v35  ;;  %v4144_v37 = vpop.permute.xlu1 %4143  ;;  %v9896_v35 = vld [vmem:[#allocation55_spill] sm:$0xff] }
 0x5ed   :  { %v4401_v3 = vadd.f32 %v4144_v37, %v3753_v55  ;;  %v3763_v6 = vmul.f32 %v8115_v1, %v9896_v35 }
 0x5ee   :  { %4522 = vst.msk [vmem:[%s8932_s5 + $0x298] sm:$0xff] %vm1306_vm1, %v4414_v10  ;;  %v3765_v10 = vmul.f32 %v8157_v45, %v9897_v18 }
 0x5ef   :  { %4509 = vst.msk [vmem:[%s8932_s5 + $0x230] sm:$0xff] %vm1306_vm1, %v4401_v3  ;;  %v4219_v38 = vpop.permute.xlu0 %4218 }
 0x5f0   :  { %v4416_v16 = vadd.f32 %v4219_v38, %v3768_v12  ;;  %v4154_v59 = vpop.permute.xlu1 %4153  ;;  %v9898_v12 = vld [vmem:[#allocation63_spill] sm:$0xff] }
 0x5f1   :  { %v4403_v28 = vadd.f32 %v4154_v59, %v3755_v57  ;;  %v3767_v13 = vmul.f32 %v8202_v61, %v9898_v12 }
 0x5f2   :  { %4524 = vst.msk [vmem:[%s8932_s5 + $0x2a8] sm:$0xff] %vm1306_vm1, %v4416_v16  ;;  %v9899_v16 = vld [vmem:[#allocation67_spill] sm:$0xff] }
 0x5f3   :  { %4511 = vst.msk [vmem:[%s8932_s5 + $0x240] sm:$0xff] %vm1306_vm1, %v4403_v28  ;;  %v4229_v51 = vpop.permute.xlu0 %4228  ;;  %v3769_v59 = vmul.f32 %v8245_v50, %v9899_v16 }
 0x5f4   :  { %v4418_v60 = vadd.f32 %v4229_v51, %v3770_v21  ;;  %v4164_v26 = vpop.permute.xlu1 %4163  ;;  %v9900_v21 = vld [vmem:[#allocation71_spill] sm:$0xff] }
 0x5f5   :  { %v4405_v56 = vadd.f32 %v4164_v26, %v3757_v49  ;;  %v3771_v15 = vmul.f32 %v8289_v4, %v9900_v21 }
 0x5f6   :  { %4526 = vst.msk [vmem:[%s8932_s5 + $0x2b8] sm:$0xff] %vm1306_vm1, %v4418_v60  ;;  %v9901_v60 = vld [vmem:[#allocation76_spill] sm:$0xff] }
 0x5f7   :  { %4513 = vst.msk [vmem:[%s8932_s5 + $0x250] sm:$0xff] %vm1306_vm1, %v4405_v56  ;;  %v4239_v33 = vpop.permute.xlu0 %4238  ;;  %v3773_v26 = vmul.f32 %v8334_v2, %v9901_v60 }
 0x5f8   :  { %v4420_v44 = vadd.f32 %v4239_v33, %v3772_v58  ;;  %v4174_v52 = vpop.permute.xlu1 %4173  ;;  %v9902_v58 = vld [vmem:[#allocation83_spill] sm:$0xff] }
 0x5f9   :  { %v4407_v29 = vadd.f32 %v4174_v52, %v3759_v19  ;;  %v3775_v19 = vmul.f32 %v9903_v41, %v9902_v58 }
 0x5fa   :  { %4528 = vst.msk [vmem:[%s8932_s5 + $0x2c8] sm:$0xff] %vm1306_vm1, %v4420_v44 }
 0x5fb   :  { %4515 = vst.msk [vmem:[%s8932_s5 + $0x260] sm:$0xff] %vm1306_vm1, %v4407_v29  ;;  %v4249_v23 = vpop.permute.xlu0 %4248 }
 0x5fc   :  { %v4422_v11 = vadd.f32 %v4249_v23, %v3774_v48  ;;  %v4184_v30 = vpop.permute.xlu1 %4183 }
 0x5fd   :  { %v4409_v42 = vadd.f32 %v4184_v30, %v3761_v47 }
 0x5fe   :  { %4530 = vst.msk [vmem:[%s8932_s5 + $0x2d8] sm:$0xff] %vm1306_vm1, %v4422_v11 }
 0x5ff   :  { %4517 = vst.msk [vmem:[%s8932_s5 + $0x270] sm:$0xff] %vm1306_vm1, %v4409_v42  ;;  %v4259_v27 = vpop.permute.xlu0 %4258 }
 0x600   :  { %v4424_v34 = vadd.f32 %v4259_v27, %v3776_v8  ;;  %v4194_v55 = vpop.permute.xlu1 %4193 }
 0x601   :  { %v4411_v62 = vadd.f32 %v4194_v55, %v3763_v6 }
 0x602   :  { %4532 = vst.msk [vmem:[%s8932_s5 + $0x2e8] sm:$0xff] %vm1306_vm1, %v4424_v34 }
 0x603   :  { %4519 = vst.msk [vmem:[%s8932_s5 + $0x280] sm:$0xff] %vm1306_vm1, %v4411_v62  ;;  %v4269_v1 = vpop.permute.xlu0 %4268 }
 0x604   :  { %v4426_v37 = vadd.f32 %v4269_v1, %v8332_v31  ;;  %v4204_v3 = vpop.permute.xlu1 %4203 }
 0x605   :  { %v4413_v22 = vadd.f32 %v4204_v3, %v3765_v10 }
 0x606   :  { %4534 = vst.msk [vmem:[%s8932_s5 + $0x2f8] sm:$0xff] %vm1306_vm1, %v4426_v37 }
 0x607   :  { %4521 = vst.msk [vmem:[%s8932_s5 + $0x290] sm:$0xff] %vm1306_vm1, %v4413_v22  ;;  %v4279_v45 = vpop.permute.xlu0 %4278 }
 0x608   :  { %v4428_v57 = vadd.f32 %v4279_v45, %v8377_v40  ;;  %v4214_v38 = vpop.permute.xlu1 %4213 }
 0x609   :  { %v4415_v31 = vadd.f32 %v4214_v38, %v3767_v13 }
 0x60a   :  { %4536 = vst.msk [vmem:[%s8932_s5 + $0x308] sm:$0xff] %vm1306_vm1, %v4428_v57 }
 0x60b   :  { %4523 = vst.msk [vmem:[%s8932_s5 + $0x2a0] sm:$0xff] %vm1306_vm1, %v4415_v31  ;;  %v4289_v61 = vpop.permute.xlu0 %4288 }
 0x60c   :  { %v4430_v28 = vadd.f32 %v4289_v61, %v8422_v54  ;;  %v4224_v46 = vpop.permute.xlu1 %4223 }
 0x60d   :  { %v4417_v40 = vadd.f32 %v4224_v46, %v3769_v59 }
 0x60e   :  { %4538 = vst.msk [vmem:[%s8932_s5 + $0x318] sm:$0xff] %vm1306_vm1, %v4430_v28 }
 0x60f   :  { %4525 = vst.msk [vmem:[%s8932_s5 + $0x2b0] sm:$0xff] %vm1306_vm1, %v4417_v40  ;;  %v4299_v50 = vpop.permute.xlu0 %4298 }
 0x610   :  { %v4432_v49 = vadd.f32 %v4299_v50, %v8468_v9  ;;  %v4234_v51 = vpop.permute.xlu1 %4233 }
 0x611   :  { %v4419_v54 = vadd.f32 %v4234_v51, %v3771_v15 }
 0x612   :  { %4540 = vst.msk [vmem:[%s8932_s5 + $0x328] sm:$0xff] %vm1306_vm1, %v4432_v49 }
 0x613   :  { %4527 = vst.msk [vmem:[%s8932_s5 + $0x2c0] sm:$0xff] %vm1306_vm1, %v4419_v54  ;;  %v4309_v4 = vpop.permute.xlu0 %4308 }
 0x614   :  { %v4434_v56 = vadd.f32 %v4309_v4, %v8514_v7  ;;  %v4244_v39 = vpop.permute.xlu1 %4243 }
 0x615   :  { %v4421_v9 = vadd.f32 %v4244_v39, %v3773_v26 }
 0x616   :  { %4542 = vst.msk [vmem:[%s8932_s5 + $0x338] sm:$0xff] %vm1306_vm1, %v4434_v56 }
 0x617   :  { %4529 = vst.msk [vmem:[%s8932_s5 + $0x2d0] sm:$0xff] %vm1306_vm1, %v4421_v9  ;;  %v4319_v2 = vpop.permute.xlu0 %4318 }
 0x618   :  { %v4436_v33 = vadd.f32 %v4319_v2, %v8550_v43  ;;  %v4254_v44 = vpop.permute.xlu1 %4253 }
 0x619   :  { %v4423_v7 = vadd.f32 %v4254_v44, %v3775_v19 }
 0x61a   :  { %4544 = vst.msk [vmem:[%s8932_s5 + $0x348] sm:$0xff] %vm1306_vm1, %v4436_v33 }
 0x61b   :  { %4531 = vst.msk [vmem:[%s8932_s5 + $0x2e0] sm:$0xff] %vm1306_vm1, %v4423_v7  ;;  %v4329_v52 = vpop.permute.xlu0 %4328 }
 0x61c   :  { %v4438_v29 = vadd.f32 %v4329_v52, %v8571_v17  ;;  %v4264_v5 = vpop.permute.xlu1 %4263 }
 0x61d   :  { %v4425_v48 = vadd.f32 %v4264_v5, %v8425_v14 }
 0x61e   :  { %4546 = vst.msk [vmem:[%s8932_s5 + $0x358] sm:$0xff] %vm1306_vm1, %v4438_v29 }
 0x61f   :  { %4533 = vst.msk [vmem:[%s8932_s5 + $0x2f0] sm:$0xff] %vm1306_vm1, %v4425_v48 }
 0x620   :  { %v4274_v43 = vpop.permute.xlu1 %4273 }
 0x621   :  { %v4427_v36 = vadd.f32 %v4274_v43, %v8471_v24 }
 0x623   :  { %4535 = vst.msk [vmem:[%s8932_s5 + $0x300] sm:$0xff] %vm1306_vm1, %v4427_v36 }
 0x624   :  { %v4284_v17 = vpop.permute.xlu1 %4283 }
 0x625   :  { %v4429_v14 = vadd.f32 %v4284_v17, %v8517_v53 }
 0x627   :  { %4537 = vst.msk [vmem:[%s8932_s5 + $0x310] sm:$0xff] %vm1306_vm1, %v4429_v14 }
 0x628   :  { %v4294_v47 = vpop.permute.xlu1 %4293 }
 0x629   :  { %v4431_v23 = vadd.f32 %v4294_v47, %v8553_v20 }
 0x62b   :  { %4539 = vst.msk [vmem:[%s8932_s5 + $0x320] sm:$0xff] %vm1306_vm1, %v4431_v23 }
 0x62c   :  { %v4304_v24 = vpop.permute.xlu1 %4303 }
 0x62d   :  { %v4433_v11 = vadd.f32 %v4304_v24, %v8580_v0 }
 0x62f   :  { %4541 = vst.msk [vmem:[%s8932_s5 + $0x330] sm:$0xff] %vm1306_vm1, %v4433_v11 }
 0x630   :  { %v4314_v53 = vpop.permute.xlu1 %4313 }
 0x631   :  { %v4435_v30 = vadd.f32 %v4314_v53, %v8610_v25 }
 0x633   :  { %4543 = vst.msk [vmem:[%s8932_s5 + $0x340] sm:$0xff] %vm1306_vm1, %v4435_v30 }
 0x634   :  { %v4324_v20 = vpop.permute.xlu1 %4323 }
 0x635   :  { %v4437_v42 = vadd.f32 %v4324_v20, %v8625_v32 }
 0x637   :  { %4545 = vst.msk [vmem:[%s8932_s5 + $0x350] sm:$0xff] %vm1306_vm1, %v4437_v42 }

</bundles_post_ra>
